<compile_context>
chip_gen: v6e
topology: v6e:2x2x1
jax: 0.10.0
libtpu: 0.0.40
codegen_flags: <defaults>
</compile_context>

<pallas_src>
import numpy as np
import jax
import jax.numpy as jnp
from jax.experimental import pallas as pl
from jax.experimental.pallas import tpu as pltpu

# ---------------------------------------------------------------------------
# Static model geometry (implied by the PyTorch module)
# ---------------------------------------------------------------------------
C = 256                      # channel width of every conv layer
K1, K2, K3 = 4, 3, 3         # conv kernel sizes
H1 = W1 = 8                  # stacked image spatial size (4 x 8 x 8 input)
OH1 = OW1 = H1 - K1 + 1      # 5 : conv1 output spatial
OH2 = OW2 = OH1 - K2 + 1     # 3 : conv2 output spatial
K1_PAD = 128                 # conv1 contraction 4*4*4=64 zero-padded to 128 lanes
N_PAD = 128                  # lane-dense padded head output width


# ---------------------------------------------------------------------------
# Pallas kernel: the whole forward pass, fused, VMEM-resident
# ---------------------------------------------------------------------------
def _make_fused_kernel(B: int, apply_sigmoid: bool, eps: float = 1e-5):
    M1 = B * OH1 * OW1       # rows of conv1 output (B*25)
    M2 = B * OH2 * OW2       # rows of conv2 output (B*9)

    def kernel(p1_ref, w1_ref, b1_ref, g1_ref, be1_ref,
               w2_ref, b2_ref, g2_ref, be2_ref,
               w3_ref, b3_ref,
               wh_ref, bh_ref,
               o_ref,
               x1s, p2s, x2s, p3s):
        # Training-mode BatchNorm2d: biased batch stats over the (N,H,W) rows,
        # per channel (channels are the lane dim). f32 throughout.
        def bn_train(y, g, be):
            mu = jnp.mean(y, axis=0, keepdims=True)
            var = jnp.mean((y - mu) * (y - mu), axis=0, keepdims=True)
            return (y - mu) * jax.lax.rsqrt(var + eps) * g + be

        # ---- conv1 (im2col precomputed outside): (B*25, 128) @ (128, 256) ----
        y1 = jnp.dot(p1_ref[...], w1_ref[...], preferred_element_type=jnp.float32)
        y1 = jnp.maximum(y1 + b1_ref[...], 0.0)                    # Conv -> ReLU
        x1s[...] = bn_train(y1, g1_ref[...], be1_ref[...])         # -> BN1

        # ---- in-kernel im2col for conv2 (static ref-slice copies, NHWC rows) ----
        # x1s row = b*25 + h*5 + w ; p2s row = b*9 + oh*3 + ow ; col = (kh*3+kw)*C + c
        for b in range(B):
            for oh in range(OH2):
                dst_r = b * (OH2 * OW2) + oh * OW2
                for kh in range(K2):
                    src_r = b * (OH1 * OW1) + (oh + kh) * OW1
                    for kw in range(K2):
                        dst_c = (kh * K2 + kw) * C
                        p2s[dst_r:dst_r + OW2, dst_c:dst_c + C] = \
                            x1s[src_r + kw:src_r + kw + OW2, :]

        # ---- conv2: (B*9, 2304) @ (2304, 256), bf16 MXU operands, f32 accum ----
        y2 = jnp.dot(p2s[...].astype(jnp.bfloat16), w2_ref[...],
                     preferred_element_type=jnp.float32)
        y2 = jnp.maximum(y2 + b2_ref[...], 0.0)                    # Conv -> ReLU
        x2s[...] = bn_train(y2, g2_ref[...], be2_ref[...])         # -> BN2

        # ---- conv3 patches: 3x3 -> 1x1, so each batch row is the full 3x3 block ----
        for b in range(B):
            for j in range(OH2 * OW2):
                src = b * OH2 * OW2 + j
                p3s[b:b + 1, j * C:(j + 1) * C] = x2s[src:src + 1, :]

        # ---- conv3: (B, 2304) @ (2304, 256) + ReLU ; Flatten is a no-op (1x1) ----
        y3 = jnp.dot(p3s[...].astype(jnp.bfloat16), w3_ref[...],
                     preferred_element_type=jnp.float32)
        y3 = jnp.maximum(y3 + b3_ref[...], 0.0)

        # ---- head: (B, 256) @ (256, 128-padded) [+ sigmoid] ----
        out = jnp.dot(y3.astype(jnp.bfloat16), wh_ref[...],
                      preferred_element_type=jnp.float32) + bh_ref[...]
        if apply_sigmoid:
            out = jax.nn.sigmoid(out)
        o_ref[...] = out

    return kernel


def fused_forward(p1, prep, wh, bh, *, B, apply_sigmoid):
    """Single fused pallas_call. p1: (B*25, 128) bf16 conv1 patches; wh/bh: head."""
    kernel = _make_fused_kernel(B, apply_sigmoid)
    inputs = [p1, prep['w1'], prep['b1'], prep['g1'], prep['be1'],
              prep['w2'], prep['b2'], prep['g2'], prep['be2'],
              prep['w3'], prep['b3'], wh, bh]

    def full_spec(shape):
        # block == full array, single grid point
        return pl.BlockSpec(tuple(shape), lambda i: (0,) * len(shape))

    M1 = B * OH1 * OW1
    M2 = B * OH2 * OW2
    return pl.pallas_call(
        kernel,
        out_shape=jax.ShapeDtypeStruct((B, N_PAD), jnp.float32),
        grid=(1,),
        in_specs=[full_spec(x.shape) for x in inputs],
        out_specs=full_spec((B, N_PAD)),
        scratch_shapes=[
            pltpu.VMEM((M1, C), jnp.float32),             # conv1 output (post-BN)
            pltpu.VMEM((M2, K2 * K2 * C), jnp.float32),   # conv2 im2col patches
            pltpu.VMEM((M2, C), jnp.float32),             # conv2 output (post-BN)
            pltpu.VMEM((B, K3 * K3 * C), jnp.float32),    # conv3 patches
        ],
        compiler_params=pltpu.CompilerParams(
            dimension_semantics=("arbitrary",),
            vmem_limit_bytes=32 * 1024 * 1024),
    )(*inputs)


# ---------------------------------------------------------------------------
# Parameters (deterministic init, PyTorch-default-style uniform bounds)
# ---------------------------------------------------------------------------
def init_params(key, n_actions):
    keys = jax.random.split(key, 5)

    def conv_init(k, cin, cout, ksz):
        kw_, kb_ = jax.random.split(k)
        bound = 1.0 / np.sqrt(cin * ksz * ksz)
        w = jax.random.uniform(kw_, (cout, cin, ksz, ksz), jnp.float32, -bound, bound)
        b = jax.random.uniform(kb_, (cout,), jnp.float32, -bound, bound)
        return w, b

    def linear_init(k, fan_in, fan_out):
        kw_, kb_ = jax.random.split(k)
        bound = 1.0 / np.sqrt(fan_in)
        w = jax.random.uniform(kw_, (fan_out, fan_in), jnp.float32, -bound, bound)
        b = jax.random.uniform(kb_, (fan_out,), jnp.float32, -bound, bound)
        return w, b

    p = {}
    p['conv1_w'], p['conv1_b'] = conv_init(keys[0], 4, C, K1)
    p['conv2_w'], p['conv2_b'] = conv_init(keys[1], C, C, K2)
    p['conv3_w'], p['conv3_b'] = conv_init(keys[2], C, C, K3)
    p['lin_w'],   p['lin_b']   = linear_init(keys[3], C, 1)
    p['head_w'],  p['head_b']  = linear_init(keys[4], C, n_actions)
    p['bn1_gamma'] = jnp.ones((C,), jnp.float32)
    p['bn1_beta']  = jnp.zeros((C,), jnp.float32)
    p['bn2_gamma'] = jnp.ones((C,), jnp.float32)
    p['bn2_beta']  = jnp.zeros((C,), jnp.float32)
    return p


def prepare_params(params):
    """One-time weight prep: flatten conv weights to (kh*kw*cin, cout), pad, cast bf16."""
    def flat_conv_w(w):                        # (cout, cin, kh, kw) -> (kh*kw*cin, cout)
        cout, cin, kh, kw = w.shape
        return jnp.transpose(w, (2, 3, 1, 0)).reshape(kh * kw * cin, cout)

    w1 = flat_conv_w(params['conv1_w'])                                 # (64, 256)
    w1 = jnp.pad(w1, ((0, K1_PAD - w1.shape[0]), (0, 0)))               # K 64 -> 128

    def pad_linear(w, b):                      # (n, 256) -> (256, 128) lane-dense
        wt = w.T
        n = wt.shape[1]
        assert n <= N_PAD, "head width > 128 would need N tiling"  # TODO(synk)
        wtp = jnp.pad(wt, ((0, 0), (0, N_PAD - n))).astype(jnp.bfloat16)
        bp = jnp.pad(b, (0, N_PAD - n)).reshape(1, N_PAD).astype(jnp.float32)
        return wtp, bp

    prep = {
        'w1': w1.astype(jnp.bfloat16),
        'b1': params['conv1_b'].reshape(1, C).astype(jnp.float32),
        'g1': params['bn1_gamma'].reshape(1, C).astype(jnp.float32),
        'be1': params['bn1_beta'].reshape(1, C).astype(jnp.float32),
        'w2': flat_conv_w(params['conv2_w']).astype(jnp.bfloat16),      # (2304, 256)
        'b2': params['conv2_b'].reshape(1, C).astype(jnp.float32),
        'g2': params['bn2_gamma'].reshape(1, C).astype(jnp.float32),
        'be2': params['bn2_beta'].reshape(1, C).astype(jnp.float32),
        'w3': flat_conv_w(params['conv3_w']).astype(jnp.bfloat16),      # (2304, 256)
        'b3': params['conv3_b'].reshape(1, C).astype(jnp.float32),
    }
    prep['head_w'], prep['head_b'] = pad_linear(params['head_w'], params['head_b'])
    prep['lin_w'], prep['lin_b'] = pad_linear(params['lin_w'], params['lin_b'])
    return prep


# ---------------------------------------------------------------------------
# Forward pass (thin NHWC glue + one fused Pallas kernel)
# ---------------------------------------------------------------------------
def model_cnn1_forward(prep, data, task_type, n_out):
    B, Htot, W = data.shape
    S = Htot // 4
    # torch.stack of the 4 vertical slabs, kept channels-LAST (NHWC) end-to-end.
    x = data.reshape(B, 4, S, W).transpose(0, 2, 3, 1)                  # (B, S, W, 4)

    # im2col for conv1 (4x4, valid); column order (kh, kw, cin) matches flat_conv_w.
    oh, ow = S - K1 + 1, W - K1 + 1
    assert oh == OH1 and ow == OW1, "conv stack must end at 256x1x1 (input 4x8x8)"
    cols = [x[:, kh:kh + oh, kw:kw + ow, :] for kh in range(K1) for kw in range(K1)]
    p1 = jnp.concatenate(cols, axis=-1).reshape(B * oh * ow, K1 * K1 * 4)
    p1 = jnp.pad(p1, ((0, 0), (0, K1_PAD - p1.shape[1]))).astype(jnp.bfloat16)

    if task_type == 'ipp_classification':
        wh, bh = prep['head_w'], prep['head_b']
    else:
        wh, bh = prep['lin_w'], prep['lin_b']
    apply_sigmoid = task_type.split('_')[-1] == 'classification'

    out = fused_forward(p1, prep, wh, bh, B=B, apply_sigmoid=apply_sigmoid)
    return out[:, :n_out]


# ---------------------------------------------------------------------------
# Pure-JAX reference (same bf16-operand / f32-accumulate MXU policy as the kernel)
# ---------------------------------------------------------------------------
def reference_forward(params, data, task_type):
    B, Htot, W = data.shape
    S = Htot // 4
    x = data.reshape(B, 4, S, W)                                        # NCHW

    def conv(x, w, b):
        y = jax.lax.conv_general_dilated(
            x.astype(jnp.bfloat16), w.astype(jnp.bfloat16), (1, 1), 'VALID',
            dimension_numbers=('NCHW', 'OIHW', 'NCHW'),
            preferred_element_type=jnp.float32)
        return y + b[None, :, None, None]

    def bn(x, g, be, eps=1e-5):
        mu = jnp.mean(x, axis=(0, 2, 3), keepdims=True)
        var = jnp.mean((x - mu) ** 2, axis=(0, 2, 3), keepdims=True)
        return (x - mu) * jax.lax.rsqrt(var + eps) * g[None, :, None, None] \
            + be[None, :, None, None]

    y = jnp.maximum(conv(x, params['conv1_w'], params['conv1_b']), 0.0)
    y = bn(y, params['bn1_gamma'], params['bn1_beta'])
    y = jnp.maximum(conv(y, params['conv2_w'], params['conv2_b']), 0.0)
    y = bn(y, params['bn2_gamma'], params['bn2_beta'])
    y = jnp.maximum(conv(y, params['conv3_w'], params['conv3_b']), 0.0)
    flat = y.reshape(B, -1)
    if task_type == 'ipp_classification':
        w, b = params['head_w'], params['head_b']
    else:
        w, b = params['lin_w'], params['lin_b']
    out = jnp.dot(flat.astype(jnp.bfloat16), w.T.astype(jnp.bfloat16),
                  preferred_element_type=jnp.float32) + b
    if task_type.split('_')[-1] == 'classification':
        out = jax.nn.sigmoid(out)
    return out


if __name__ == "__main__":
    B, H_TOTAL, W, N_ACTIONS = 2, 32, 8, 4   # raw data (B, 32, 8) -> stacked (B, 4, 8, 8)

    key = jax.random.PRNGKey(0)
    k_data, k_params = jax.random.split(key)
    data = jax.random.normal(k_data, (B, H_TOTAL, W), dtype=jnp.float32)
    params = init_params(k_params, N_ACTIONS)
    prep = prepare_params(params)

    forward = jax.jit(model_cnn1_forward, static_argnames=("task_type", "n_out"))

    # classification head branch (linear_head + sigmoid)
    out_cls = forward(prep, data, task_type='ipp_classification', n_out=N_ACTIONS)
    out_cls = jax.block_until_ready(out_cls)
    ref_cls = jax.block_until_ready(reference_forward(params, data, 'ipp_classification'))
    np.testing.assert_allclose(np.asarray(out_cls), np.asarray(ref_cls),
                               rtol=1e-2, atol=1e-2)

    # value branch (Linear(256,1), no sigmoid)
    out_reg = forward(prep, data, task_type='ipp_regression', n_out=1)
    out_reg = jax.block_until_ready(out_reg)
    ref_reg = jax.block_until_ready(reference_forward(params, data, 'ipp_regression'))
    np.testing.assert_allclose(np.asarray(out_reg), np.asarray(ref_reg),
                               rtol=1e-2, atol=1e-2)

    print("KERNEL_OK")
</pallas_src>

<mosaic_0001>
module attributes {stable_mosaic.version = 11 : i64} {
  func.func @kernel(%arg0: i32, %arg1: memref<50x128xbf16, #tpu.memory_space<vmem>>, %arg2: memref<128x256xbf16, #tpu.memory_space<vmem>>, %arg3: memref<1x256xf32, #tpu.memory_space<vmem>>, %arg4: memref<1x256xf32, #tpu.memory_space<vmem>>, %arg5: memref<1x256xf32, #tpu.memory_space<vmem>>, %arg6: memref<2304x256xbf16, #tpu.memory_space<vmem>>, %arg7: memref<1x256xf32, #tpu.memory_space<vmem>>, %arg8: memref<1x256xf32, #tpu.memory_space<vmem>>, %arg9: memref<1x256xf32, #tpu.memory_space<vmem>>, %arg10: memref<2304x256xbf16, #tpu.memory_space<vmem>>, %arg11: memref<1x256xf32, #tpu.memory_space<vmem>>, %arg12: memref<256x128xbf16, #tpu.memory_space<vmem>>, %arg13: memref<1x128xf32, #tpu.memory_space<vmem>>, %arg14: memref<2x128xf32, #tpu.memory_space<vmem>>, %arg15: memref<50x256xf32, #tpu.memory_space<vmem>>, %arg16: memref<18x2304xf32, #tpu.memory_space<vmem>>, %arg17: memref<18x256xf32, #tpu.memory_space<vmem>>, %arg18: memref<2x2304xf32, #tpu.memory_space<vmem>>) attributes {dimension_semantics = [#tpu.dimension_semantics<arbitrary>], iteration_bounds = array<i64: 1>, scalar_prefetch = 0 : i64, scratch_operands = 4 : i64, tpu.core_type = #tpu.core_type<tc>, window_params = [{pipeline_mode = #tpu.pipeline_mode<synchronous>, transform_indices = @transform_0, window_bounds = array<i64: 50, 128>}, {pipeline_mode = #tpu.pipeline_mode<synchronous>, transform_indices = @transform_1, window_bounds = array<i64: 128, 256>}, {pipeline_mode = #tpu.pipeline_mode<synchronous>, transform_indices = @transform_2, window_bounds = array<i64: 1, 256>}, {pipeline_mode = #tpu.pipeline_mode<synchronous>, transform_indices = @transform_3, window_bounds = array<i64: 1, 256>}, {pipeline_mode = #tpu.pipeline_mode<synchronous>, transform_indices = @transform_4, window_bounds = array<i64: 1, 256>}, {pipeline_mode = #tpu.pipeline_mode<synchronous>, transform_indices = @transform_5, window_bounds = array<i64: 2304, 256>}, {pipeline_mode = #tpu.pipeline_mode<synchronous>, transform_indices = @transform_6, window_bounds = array<i64: 1, 256>}, {pipeline_mode = #tpu.pipeline_mode<synchronous>, transform_indices = @transform_7, window_bounds = array<i64: 1, 256>}, {pipeline_mode = #tpu.pipeline_mode<synchronous>, transform_indices = @transform_8, window_bounds = array<i64: 1, 256>}, {pipeline_mode = #tpu.pipeline_mode<synchronous>, transform_indices = @transform_9, window_bounds = array<i64: 2304, 256>}, {pipeline_mode = #tpu.pipeline_mode<synchronous>, transform_indices = @transform_10, window_bounds = array<i64: 1, 256>}, {pipeline_mode = #tpu.pipeline_mode<synchronous>, transform_indices = @transform_11, window_bounds = array<i64: 256, 128>}, {pipeline_mode = #tpu.pipeline_mode<synchronous>, transform_indices = @transform_12, window_bounds = array<i64: 1, 128>}, {pipeline_mode = #tpu.pipeline_mode<synchronous>, transform_indices = @transform_13, window_bounds = array<i64: 2, 128>}]} {
    %c0 = arith.constant 0 : index
    %c0_0 = arith.constant 0 : index
    %0 = vector.load %arg1[%c0, %c0_0] : memref<50x128xbf16, #tpu.memory_space<vmem>>, vector<50x128xbf16>
    %c0_1 = arith.constant 0 : index
    %c0_2 = arith.constant 0 : index
    %1 = vector.load %arg2[%c0_1, %c0_2] : memref<128x256xbf16, #tpu.memory_space<vmem>>, vector<128x256xbf16>
    %cst = arith.constant dense<0.000000e+00> : vector<50x256xf32>
    %2 = tpu.matmul %0, %1, %cst {dimension_numbers = #tpu.dot_dimension_numbers<[1], [0], [0], [1], [0, 0, 1, 1], [], []>} : vector<50x128xbf16>, vector<128x256xbf16>, vector<50x256xf32> -> vector<50x256xf32>
    %c0_3 = arith.constant 0 : index
    %c0_4 = arith.constant 0 : index
    %3 = vector.load %arg3[%c0_3, %c0_4] : memref<1x256xf32, #tpu.memory_space<vmem>>, vector<1x256xf32>
    %4 = vector.broadcast %3 : vector<1x256xf32> to vector<50x256xf32>
    %5 = arith.addf %2, %4 : vector<50x256xf32>
    %cst_5 = arith.constant 0.000000e+00 : f32
    %6 = vector.broadcast %cst_5 : f32 to vector<50x256xf32>
    %7 = arith.maximumf %5, %6 : vector<50x256xf32>
    %c0_6 = arith.constant 0 : index
    %c0_7 = arith.constant 0 : index
    %8 = vector.load %arg4[%c0_6, %c0_7] : memref<1x256xf32, #tpu.memory_space<vmem>>, vector<1x256xf32>
    %c0_8 = arith.constant 0 : index
    %c0_9 = arith.constant 0 : index
    %9 = vector.load %arg5[%c0_8, %c0_9] : memref<1x256xf32, #tpu.memory_space<vmem>>, vector<1x256xf32>
    %cst_10 = arith.constant dense<0.000000e+00> : vector<256xf32>
    %10 = vector.multi_reduction <add>, %7, %cst_10 [0] : vector<50x256xf32> to vector<256xf32>
    %11 = vector.shape_cast %10 : vector<256xf32> to vector<1x256xf32>
    %cst_11 = arith.constant 5.000000e+01 : f32
    %12 = vector.broadcast %cst_11 : f32 to vector<1x256xf32>
    %13 = arith.divf %11, %12 : vector<1x256xf32>
    %14 = vector.broadcast %13 : vector<1x256xf32> to vector<50x256xf32>
    %15 = arith.subf %7, %14 : vector<50x256xf32>
    %16 = vector.broadcast %13 : vector<1x256xf32> to vector<50x256xf32>
    %17 = arith.subf %7, %16 : vector<50x256xf32>
    %18 = arith.mulf %15, %17 : vector<50x256xf32>
    %cst_12 = arith.constant dense<0.000000e+00> : vector<256xf32>
    %19 = vector.multi_reduction <add>, %18, %cst_12 [0] : vector<50x256xf32> to vector<256xf32>
    %20 = vector.shape_cast %19 : vector<256xf32> to vector<1x256xf32>
    %cst_13 = arith.constant 5.000000e+01 : f32
    %21 = vector.broadcast %cst_13 : f32 to vector<1x256xf32>
    %22 = arith.divf %20, %21 : vector<1x256xf32>
    %23 = vector.broadcast %13 : vector<1x256xf32> to vector<50x256xf32>
    %24 = arith.subf %7, %23 : vector<50x256xf32>
    %cst_14 = arith.constant 9.99999974E-6 : f32
    %25 = vector.broadcast %cst_14 : f32 to vector<1x256xf32>
    %26 = arith.addf %22, %25 : vector<1x256xf32>
    %27 = math.rsqrt %26 : vector<1x256xf32>
    %28 = vector.broadcast %27 : vector<1x256xf32> to vector<50x256xf32>
    %29 = arith.mulf %24, %28 : vector<50x256xf32>
    %30 = vector.broadcast %8 : vector<1x256xf32> to vector<50x256xf32>
    %31 = arith.mulf %29, %30 : vector<50x256xf32>
    %32 = vector.broadcast %9 : vector<1x256xf32> to vector<50x256xf32>
    %33 = arith.addf %31, %32 : vector<50x256xf32>
    %c0_15 = arith.constant 0 : index
    %c0_16 = arith.constant 0 : index
    %34 = vector.load %arg15[%c0_15, %c0_16] : memref<50x256xf32, #tpu.memory_space<vmem>>, vector<50x256xf32>
    tpu.vector_store %arg15[%c0_15, %c0_16], %33 {strides = array<i32>} : memref<50x256xf32, #tpu.memory_space<vmem>>, vector<50x256xf32>,
    %c0_17 = arith.constant 0 : index
    %c0_18 = arith.constant 0 : index
    %35 = vector.load %arg15[%c0_17, %c0_18] : memref<50x256xf32, #tpu.memory_space<vmem>>, vector<3x256xf32>
    %c0_19 = arith.constant 0 : index
    %c0_20 = arith.constant 0 : index
    %36 = vector.load %arg16[%c0_19, %c0_20] : memref<18x2304xf32, #tpu.memory_space<vmem>>, vector<3x256xf32>
    tpu.vector_store %arg16[%c0_19, %c0_20], %35 {strides = array<i32>} : memref<18x2304xf32, #tpu.memory_space<vmem>>, vector<3x256xf32>,
    %c1 = arith.constant 1 : index
    %c0_21 = arith.constant 0 : index
    %37 = vector.load %arg15[%c1, %c0_21] : memref<50x256xf32, #tpu.memory_space<vmem>>, vector<3x256xf32>
    %c0_22 = arith.constant 0 : index
    %c256 = arith.constant 256 : index
    %38 = vector.load %arg16[%c0_22, %c256] : memref<18x2304xf32, #tpu.memory_space<vmem>>, vector<3x256xf32>
    tpu.vector_store %arg16[%c0_22, %c256], %37 {strides = array<i32>} : memref<18x2304xf32, #tpu.memory_space<vmem>>, vector<3x256xf32>,
    %c2 = arith.constant 2 : index
    %c0_23 = arith.constant 0 : index
    %39 = vector.load %arg15[%c2, %c0_23] : memref<50x256xf32, #tpu.memory_space<vmem>>, vector<3x256xf32>
    %c0_24 = arith.constant 0 : index
    %c512 = arith.constant 512 : index
    %40 = vector.load %arg16[%c0_24, %c512] : memref<18x2304xf32, #tpu.memory_space<vmem>>, vector<3x256xf32>
    tpu.vector_store %arg16[%c0_24, %c512], %39 {strides = array<i32>} : memref<18x2304xf32, #tpu.memory_space<vmem>>, vector<3x256xf32>,
    %c5 = arith.constant 5 : index
    %c0_25 = arith.constant 0 : index
    %41 = vector.load %arg15[%c5, %c0_25] : memref<50x256xf32, #tpu.memory_space<vmem>>, vector<3x256xf32>
    %c0_26 = arith.constant 0 : index
    %c768 = arith.constant 768 : index
    %42 = vector.load %arg16[%c0_26, %c768] : memref<18x2304xf32, #tpu.memory_space<vmem>>, vector<3x256xf32>
    tpu.vector_store %arg16[%c0_26, %c768], %41 {strides = array<i32>} : memref<18x2304xf32, #tpu.memory_space<vmem>>, vector<3x256xf32>,
    %c6 = arith.constant 6 : index
    %c0_27 = arith.constant 0 : index
    %43 = vector.load %arg15[%c6, %c0_27] : memref<50x256xf32, #tpu.memory_space<vmem>>, vector<3x256xf32>
    %c0_28 = arith.constant 0 : index
    %c1024 = arith.constant 1024 : index
    %44 = vector.load %arg16[%c0_28, %c1024] : memref<18x2304xf32, #tpu.memory_space<vmem>>, vector<3x256xf32>
    tpu.vector_store %arg16[%c0_28, %c1024], %43 {strides = array<i32>} : memref<18x2304xf32, #tpu.memory_space<vmem>>, vector<3x256xf32>,
    %c7 = arith.constant 7 : index
    %c0_29 = arith.constant 0 : index
    %45 = vector.load %arg15[%c7, %c0_29] : memref<50x256xf32, #tpu.memory_space<vmem>>, vector<3x256xf32>
    %c0_30 = arith.constant 0 : index
    %c1280 = arith.constant 1280 : index
    %46 = vector.load %arg16[%c0_30, %c1280] : memref<18x2304xf32, #tpu.memory_space<vmem>>, vector<3x256xf32>
    tpu.vector_store %arg16[%c0_30, %c1280], %45 {strides = array<i32>} : memref<18x2304xf32, #tpu.memory_space<vmem>>, vector<3x256xf32>,
    %c10 = arith.constant 10 : index
    %c0_31 = arith.constant 0 : index
    %47 = vector.load %arg15[%c10, %c0_31] : memref<50x256xf32, #tpu.memory_space<vmem>>, vector<3x256xf32>
    %c0_32 = arith.constant 0 : index
    %c1536 = arith.constant 1536 : index
    %48 = vector.load %arg16[%c0_32, %c1536] : memref<18x2304xf32, #tpu.memory_space<vmem>>, vector<3x256xf32>
    tpu.vector_store %arg16[%c0_32, %c1536], %47 {strides = array<i32>} : memref<18x2304xf32, #tpu.memory_space<vmem>>, vector<3x256xf32>,
    %c11 = arith.constant 11 : index
    %c0_33 = arith.constant 0 : index
    %49 = vector.load %arg15[%c11, %c0_33] : memref<50x256xf32, #tpu.memory_space<vmem>>, vector<3x256xf32>
    %c0_34 = arith.constant 0 : index
    %c1792 = arith.constant 1792 : index
    %50 = vector.load %arg16[%c0_34, %c1792] : memref<18x2304xf32, #tpu.memory_space<vmem>>, vector<3x256xf32>
    tpu.vector_store %arg16[%c0_34, %c1792], %49 {strides = array<i32>} : memref<18x2304xf32, #tpu.memory_space<vmem>>, vector<3x256xf32>,
    %c12 = arith.constant 12 : index
    %c0_35 = arith.constant 0 : index
    %51 = vector.load %arg15[%c12, %c0_35] : memref<50x256xf32, #tpu.memory_space<vmem>>, vector<3x256xf32>
    %c0_36 = arith.constant 0 : index
    %c2048 = arith.constant 2048 : index
    %52 = vector.load %arg16[%c0_36, %c2048] : memref<18x2304xf32, #tpu.memory_space<vmem>>, vector<3x256xf32>
    tpu.vector_store %arg16[%c0_36, %c2048], %51 {strides = array<i32>} : memref<18x2304xf32, #tpu.memory_space<vmem>>, vector<3x256xf32>,
    %c5_37 = arith.constant 5 : index
    %c0_38 = arith.constant 0 : index
    %53 = vector.load %arg15[%c5_37, %c0_38] : memref<50x256xf32, #tpu.memory_space<vmem>>, vector<3x256xf32>
    %c3 = arith.constant 3 : index
    %c0_39 = arith.constant 0 : index
    %54 = vector.load %arg16[%c3, %c0_39] : memref<18x2304xf32, #tpu.memory_space<vmem>>, vector<3x256xf32>
    tpu.vector_store %arg16[%c3, %c0_39], %53 {strides = array<i32>} : memref<18x2304xf32, #tpu.memory_space<vmem>>, vector<3x256xf32>,
    %c6_40 = arith.constant 6 : index
    %c0_41 = arith.constant 0 : index
    %55 = vector.load %arg15[%c6_40, %c0_41] : memref<50x256xf32, #tpu.memory_space<vmem>>, vector<3x256xf32>
    %c3_42 = arith.constant 3 : index
    %c256_43 = arith.constant 256 : index
    %56 = vector.load %arg16[%c3_42, %c256_43] : memref<18x2304xf32, #tpu.memory_space<vmem>>, vector<3x256xf32>
    tpu.vector_store %arg16[%c3_42, %c256_43], %55 {strides = array<i32>} : memref<18x2304xf32, #tpu.memory_space<vmem>>, vector<3x256xf32>,
    %c7_44 = arith.constant 7 : index
    %c0_45 = arith.constant 0 : index
    %57 = vector.load %arg15[%c7_44, %c0_45] : memref<50x256xf32, #tpu.memory_space<vmem>>, vector<3x256xf32>
    %c3_46 = arith.constant 3 : index
    %c512_47 = arith.constant 512 : index
    %58 = vector.load %arg16[%c3_46, %c512_47] : memref<18x2304xf32, #tpu.memory_space<vmem>>, vector<3x256xf32>
    tpu.vector_store %arg16[%c3_46, %c512_47], %57 {strides = array<i32>} : memref<18x2304xf32, #tpu.memory_space<vmem>>, vector<3x256xf32>,
    %c10_48 = arith.constant 10 : index
    %c0_49 = arith.constant 0 : index
    %59 = vector.load %arg15[%c10_48, %c0_49] : memref<50x256xf32, #tpu.memory_space<vmem>>, vector<3x256xf32>
    %c3_50 = arith.constant 3 : index
    %c768_51 = arith.constant 768 : index
    %60 = vector.load %arg16[%c3_50, %c768_51] : memref<18x2304xf32, #tpu.memory_space<vmem>>, vector<3x256xf32>
    tpu.vector_store %arg16[%c3_50, %c768_51], %59 {strides = array<i32>} : memref<18x2304xf32, #tpu.memory_space<vmem>>, vector<3x256xf32>,
    %c11_52 = arith.constant 11 : index
    %c0_53 = arith.constant 0 : index
    %61 = vector.load %arg15[%c11_52, %c0_53] : memref<50x256xf32, #tpu.memory_space<vmem>>, vector<3x256xf32>
    %c3_54 = arith.constant 3 : index
    %c1024_55 = arith.constant 1024 : index
    %62 = vector.load %arg16[%c3_54, %c1024_55] : memref<18x2304xf32, #tpu.memory_space<vmem>>, vector<3x256xf32>
    tpu.vector_store %arg16[%c3_54, %c1024_55], %61 {strides = array<i32>} : memref<18x2304xf32, #tpu.memory_space<vmem>>, vector<3x256xf32>,
    %c12_56 = arith.constant 12 : index
    %c0_57 = arith.constant 0 : index
    %63 = vector.load %arg15[%c12_56, %c0_57] : memref<50x256xf32, #tpu.memory_space<vmem>>, vector<3x256xf32>
    %c3_58 = arith.constant 3 : index
    %c1280_59 = arith.constant 1280 : index
    %64 = vector.load %arg16[%c3_58, %c1280_59] : memref<18x2304xf32, #tpu.memory_space<vmem>>, vector<3x256xf32>
    tpu.vector_store %arg16[%c3_58, %c1280_59], %63 {strides = array<i32>} : memref<18x2304xf32, #tpu.memory_space<vmem>>, vector<3x256xf32>,
    %c15 = arith.constant 15 : index
    %c0_60 = arith.constant 0 : index
    %65 = vector.load %arg15[%c15, %c0_60] : memref<50x256xf32, #tpu.memory_space<vmem>>, vector<3x256xf32>
    %c3_61 = arith.constant 3 : index
    %c1536_62 = arith.constant 1536 : index
    %66 = vector.load %arg16[%c3_61, %c1536_62] : memref<18x2304xf32, #tpu.memory_space<vmem>>, vector<3x256xf32>
    tpu.vector_store %arg16[%c3_61, %c1536_62], %65 {strides = array<i32>} : memref<18x2304xf32, #tpu.memory_space<vmem>>, vector<3x256xf32>,
    %c16 = arith.constant 16 : index
    %c0_63 = arith.constant 0 : index
    %67 = vector.load %arg15[%c16, %c0_63] : memref<50x256xf32, #tpu.memory_space<vmem>>, vector<3x256xf32>
    %c3_64 = arith.constant 3 : index
    %c1792_65 = arith.constant 1792 : index
    %68 = vector.load %arg16[%c3_64, %c1792_65] : memref<18x2304xf32, #tpu.memory_space<vmem>>, vector<3x256xf32>
    tpu.vector_store %arg16[%c3_64, %c1792_65], %67 {strides = array<i32>} : memref<18x2304xf32, #tpu.memory_space<vmem>>, vector<3x256xf32>,
    %c17 = arith.constant 17 : index
    %c0_66 = arith.constant 0 : index
    %69 = vector.load %arg15[%c17, %c0_66] : memref<50x256xf32, #tpu.memory_space<vmem>>, vector<3x256xf32>
    %c3_67 = arith.constant 3 : index
    %c2048_68 = arith.constant 2048 : index
    %70 = vector.load %arg16[%c3_67, %c2048_68] : memref<18x2304xf32, #tpu.memory_space<vmem>>, vector<3x256xf32>
    tpu.vector_store %arg16[%c3_67, %c2048_68], %69 {strides = array<i32>} : memref<18x2304xf32, #tpu.memory_space<vmem>>, vector<3x256xf32>,
    %c10_69 = arith.constant 10 : index
    %c0_70 = arith.constant 0 : index
    %71 = vector.load %arg15[%c10_69, %c0_70] : memref<50x256xf32, #tpu.memory_space<vmem>>, vector<3x256xf32>
    %c6_71 = arith.constant 6 : index
    %c0_72 = arith.constant 0 : index
    %72 = vector.load %arg16[%c6_71, %c0_72] : memref<18x2304xf32, #tpu.memory_space<vmem>>, vector<3x256xf32>
    tpu.vector_store %arg16[%c6_71, %c0_72], %71 {strides = array<i32>} : memref<18x2304xf32, #tpu.memory_space<vmem>>, vector<3x256xf32>,
    %c11_73 = arith.constant 11 : index
    %c0_74 = arith.constant 0 : index
    %73 = vector.load %arg15[%c11_73, %c0_74] : memref<50x256xf32, #tpu.memory_space<vmem>>, vector<3x256xf32>
    %c6_75 = arith.constant 6 : index
    %c256_76 = arith.constant 256 : index
    %74 = vector.load %arg16[%c6_75, %c256_76] : memref<18x2304xf32, #tpu.memory_space<vmem>>, vector<3x256xf32>
    tpu.vector_store %arg16[%c6_75, %c256_76], %73 {strides = array<i32>} : memref<18x2304xf32, #tpu.memory_space<vmem>>, vector<3x256xf32>,
    %c12_77 = arith.constant 12 : index
    %c0_78 = arith.constant 0 : index
    %75 = vector.load %arg15[%c12_77, %c0_78] : memref<50x256xf32, #tpu.memory_space<vmem>>, vector<3x256xf32>
    %c6_79 = arith.constant 6 : index
    %c512_80 = arith.constant 512 : index
    %76 = vector.load %arg16[%c6_79, %c512_80] : memref<18x2304xf32, #tpu.memory_space<vmem>>, vector<3x256xf32>
    tpu.vector_store %arg16[%c6_79, %c512_80], %75 {strides = array<i32>} : memref<18x2304xf32, #tpu.memory_space<vmem>>, vector<3x256xf32>,
    %c15_81 = arith.constant 15 : index
    %c0_82 = arith.constant 0 : index
    %77 = vector.load %arg15[%c15_81, %c0_82] : memref<50x256xf32, #tpu.memory_space<vmem>>, vector<3x256xf32>
    %c6_83 = arith.constant 6 : index
    %c768_84 = arith.constant 768 : index
    %78 = vector.load %arg16[%c6_83, %c768_84] : memref<18x2304xf32, #tpu.memory_space<vmem>>, vector<3x256xf32>
    tpu.vector_store %arg16[%c6_83, %c768_84], %77 {strides = array<i32>} : memref<18x2304xf32, #tpu.memory_space<vmem>>, vector<3x256xf32>,
    %c16_85 = arith.constant 16 : index
    %c0_86 = arith.constant 0 : index
    %79 = vector.load %arg15[%c16_85, %c0_86] : memref<50x256xf32, #tpu.memory_space<vmem>>, vector<3x256xf32>
    %c6_87 = arith.constant 6 : index
    %c1024_88 = arith.constant 1024 : index
    %80 = vector.load %arg16[%c6_87, %c1024_88] : memref<18x2304xf32, #tpu.memory_space<vmem>>, vector<3x256xf32>
    tpu.vector_store %arg16[%c6_87, %c1024_88], %79 {strides = array<i32>} : memref<18x2304xf32, #tpu.memory_space<vmem>>, vector<3x256xf32>,
    %c17_89 = arith.constant 17 : index
    %c0_90 = arith.constant 0 : index
    %81 = vector.load %arg15[%c17_89, %c0_90] : memref<50x256xf32, #tpu.memory_space<vmem>>, vector<3x256xf32>
    %c6_91 = arith.constant 6 : index
    %c1280_92 = arith.constant 1280 : index
    %82 = vector.load %arg16[%c6_91, %c1280_92] : memref<18x2304xf32, #tpu.memory_space<vmem>>, vector<3x256xf32>
    tpu.vector_store %arg16[%c6_91, %c1280_92], %81 {strides = array<i32>} : memref<18x2304xf32, #tpu.memory_space<vmem>>, vector<3x256xf32>,
    %c20 = arith.constant 20 : index
    %c0_93 = arith.constant 0 : index
    %83 = vector.load %arg15[%c20, %c0_93] : memref<50x256xf32, #tpu.memory_space<vmem>>, vector<3x256xf32>
    %c6_94 = arith.constant 6 : index
    %c1536_95 = arith.constant 1536 : index
    %84 = vector.load %arg16[%c6_94, %c1536_95] : memref<18x2304xf32, #tpu.memory_space<vmem>>, vector<3x256xf32>
    tpu.vector_store %arg16[%c6_94, %c1536_95], %83 {strides = array<i32>} : memref<18x2304xf32, #tpu.memory_space<vmem>>, vector<3x256xf32>,
    %c21 = arith.constant 21 : index
    %c0_96 = arith.constant 0 : index
    %85 = vector.load %arg15[%c21, %c0_96] : memref<50x256xf32, #tpu.memory_space<vmem>>, vector<3x256xf32>
    %c6_97 = arith.constant 6 : index
    %c1792_98 = arith.constant 1792 : index
    %86 = vector.load %arg16[%c6_97, %c1792_98] : memref<18x2304xf32, #tpu.memory_space<vmem>>, vector<3x256xf32>
    tpu.vector_store %arg16[%c6_97, %c1792_98], %85 {strides = array<i32>} : memref<18x2304xf32, #tpu.memory_space<vmem>>, vector<3x256xf32>,
    %c22 = arith.constant 22 : index
    %c0_99 = arith.constant 0 : index
    %87 = vector.load %arg15[%c22, %c0_99] : memref<50x256xf32, #tpu.memory_space<vmem>>, vector<3x256xf32>
    %c6_100 = arith.constant 6 : index
    %c2048_101 = arith.constant 2048 : index
    %88 = vector.load %arg16[%c6_100, %c2048_101] : memref<18x2304xf32, #tpu.memory_space<vmem>>, vector<3x256xf32>
    tpu.vector_store %arg16[%c6_100, %c2048_101], %87 {strides = array<i32>} : memref<18x2304xf32, #tpu.memory_space<vmem>>, vector<3x256xf32>,
    %c25 = arith.constant 25 : index
    %c0_102 = arith.constant 0 : index
    %89 = vector.load %arg15[%c25, %c0_102] : memref<50x256xf32, #tpu.memory_space<vmem>>, vector<3x256xf32>
    %c9 = arith.constant 9 : index
    %c0_103 = arith.constant 0 : index
    %90 = vector.load %arg16[%c9, %c0_103] : memref<18x2304xf32, #tpu.memory_space<vmem>>, vector<3x256xf32>
    tpu.vector_store %arg16[%c9, %c0_103], %89 {strides = array<i32>} : memref<18x2304xf32, #tpu.memory_space<vmem>>, vector<3x256xf32>,
    %c26 = arith.constant 26 : index
    %c0_104 = arith.constant 0 : index
    %91 = vector.load %arg15[%c26, %c0_104] : memref<50x256xf32, #tpu.memory_space<vmem>>, vector<3x256xf32>
    %c9_105 = arith.constant 9 : index
    %c256_106 = arith.constant 256 : index
    %92 = vector.load %arg16[%c9_105, %c256_106] : memref<18x2304xf32, #tpu.memory_space<vmem>>, vector<3x256xf32>
    tpu.vector_store %arg16[%c9_105, %c256_106], %91 {strides = array<i32>} : memref<18x2304xf32, #tpu.memory_space<vmem>>, vector<3x256xf32>,
    %c27 = arith.constant 27 : index
    %c0_107 = arith.constant 0 : index
    %93 = vector.load %arg15[%c27, %c0_107] : memref<50x256xf32, #tpu.memory_space<vmem>>, vector<3x256xf32>
    %c9_108 = arith.constant 9 : index
    %c512_109 = arith.constant 512 : index
    %94 = vector.load %arg16[%c9_108, %c512_109] : memref<18x2304xf32, #tpu.memory_space<vmem>>, vector<3x256xf32>
    tpu.vector_store %arg16[%c9_108, %c512_109], %93 {strides = array<i32>} : memref<18x2304xf32, #tpu.memory_space<vmem>>, vector<3x256xf32>,
    %c30 = arith.constant 30 : index
    %c0_110 = arith.constant 0 : index
    %95 = vector.load %arg15[%c30, %c0_110] : memref<50x256xf32, #tpu.memory_space<vmem>>, vector<3x256xf32>
    %c9_111 = arith.constant 9 : index
    %c768_112 = arith.constant 768 : index
    %96 = vector.load %arg16[%c9_111, %c768_112] : memref<18x2304xf32, #tpu.memory_space<vmem>>, vector<3x256xf32>
    tpu.vector_store %arg16[%c9_111, %c768_112], %95 {strides = array<i32>} : memref<18x2304xf32, #tpu.memory_space<vmem>>, vector<3x256xf32>,
    %c31 = arith.constant 31 : index
    %c0_113 = arith.constant 0 : index
    %97 = vector.load %arg15[%c31, %c0_113] : memref<50x256xf32, #tpu.memory_space<vmem>>, vector<3x256xf32>
    %c9_114 = arith.constant 9 : index
    %c1024_115 = arith.constant 1024 : index
    %98 = vector.load %arg16[%c9_114, %c1024_115] : memref<18x2304xf32, #tpu.memory_space<vmem>>, vector<3x256xf32>
    tpu.vector_store %arg16[%c9_114, %c1024_115], %97 {strides = array<i32>} : memref<18x2304xf32, #tpu.memory_space<vmem>>, vector<3x256xf32>,
    %c32 = arith.constant 32 : index
    %c0_116 = arith.constant 0 : index
    %99 = vector.load %arg15[%c32, %c0_116] : memref<50x256xf32, #tpu.memory_space<vmem>>, vector<3x256xf32>
    %c9_117 = arith.constant 9 : index
    %c1280_118 = arith.constant 1280 : index
    %100 = vector.load %arg16[%c9_117, %c1280_118] : memref<18x2304xf32, #tpu.memory_space<vmem>>, vector<3x256xf32>
    tpu.vector_store %arg16[%c9_117, %c1280_118], %99 {strides = array<i32>} : memref<18x2304xf32, #tpu.memory_space<vmem>>, vector<3x256xf32>,
    %c35 = arith.constant 35 : index
    %c0_119 = arith.constant 0 : index
    %101 = vector.load %arg15[%c35, %c0_119] : memref<50x256xf32, #tpu.memory_space<vmem>>, vector<3x256xf32>
    %c9_120 = arith.constant 9 : index
    %c1536_121 = arith.constant 1536 : index
    %102 = vector.load %arg16[%c9_120, %c1536_121] : memref<18x2304xf32, #tpu.memory_space<vmem>>, vector<3x256xf32>
    tpu.vector_store %arg16[%c9_120, %c1536_121], %101 {strides = array<i32>} : memref<18x2304xf32, #tpu.memory_space<vmem>>, vector<3x256xf32>,
    %c36 = arith.constant 36 : index
    %c0_122 = arith.constant 0 : index
    %103 = vector.load %arg15[%c36, %c0_122] : memref<50x256xf32, #tpu.memory_space<vmem>>, vector<3x256xf32>
    %c9_123 = arith.constant 9 : index
    %c1792_124 = arith.constant 1792 : index
    %104 = vector.load %arg16[%c9_123, %c1792_124] : memref<18x2304xf32, #tpu.memory_space<vmem>>, vector<3x256xf32>
    tpu.vector_store %arg16[%c9_123, %c1792_124], %103 {strides = array<i32>} : memref<18x2304xf32, #tpu.memory_space<vmem>>, vector<3x256xf32>,
    %c37 = arith.constant 37 : index
    %c0_125 = arith.constant 0 : index
    %105 = vector.load %arg15[%c37, %c0_125] : memref<50x256xf32, #tpu.memory_space<vmem>>, vector<3x256xf32>
    %c9_126 = arith.constant 9 : index
    %c2048_127 = arith.constant 2048 : index
    %106 = vector.load %arg16[%c9_126, %c2048_127] : memref<18x2304xf32, #tpu.memory_space<vmem>>, vector<3x256xf32>
    tpu.vector_store %arg16[%c9_126, %c2048_127], %105 {strides = array<i32>} : memref<18x2304xf32, #tpu.memory_space<vmem>>, vector<3x256xf32>,
    %c30_128 = arith.constant 30 : index
    %c0_129 = arith.constant 0 : index
    %107 = vector.load %arg15[%c30_128, %c0_129] : memref<50x256xf32, #tpu.memory_space<vmem>>, vector<3x256xf32>
    %c12_130 = arith.constant 12 : index
    %c0_131 = arith.constant 0 : index
    %108 = vector.load %arg16[%c12_130, %c0_131] : memref<18x2304xf32, #tpu.memory_space<vmem>>, vector<3x256xf32>
    tpu.vector_store %arg16[%c12_130, %c0_131], %107 {strides = array<i32>} : memref<18x2304xf32, #tpu.memory_space<vmem>>, vector<3x256xf32>,
    %c31_132 = arith.constant 31 : index
    %c0_133 = arith.constant 0 : index
    %109 = vector.load %arg15[%c31_132, %c0_133] : memref<50x256xf32, #tpu.memory_space<vmem>>, vector<3x256xf32>
    %c12_134 = arith.constant 12 : index
    %c256_135 = arith.constant 256 : index
    %110 = vector.load %arg16[%c12_134, %c256_135] : memref<18x2304xf32, #tpu.memory_space<vmem>>, vector<3x256xf32>
    tpu.vector_store %arg16[%c12_134, %c256_135], %109 {strides = array<i32>} : memref<18x2304xf32, #tpu.memory_space<vmem>>, vector<3x256xf32>,
    %c32_136 = arith.constant 32 : index
    %c0_137 = arith.constant 0 : index
    %111 = vector.load %arg15[%c32_136, %c0_137] : memref<50x256xf32, #tpu.memory_space<vmem>>, vector<3x256xf32>
    %c12_138 = arith.constant 12 : index
    %c512_139 = arith.constant 512 : index
    %112 = vector.load %arg16[%c12_138, %c512_139] : memref<18x2304xf32, #tpu.memory_space<vmem>>, vector<3x256xf32>
    tpu.vector_store %arg16[%c12_138, %c512_139], %111 {strides = array<i32>} : memref<18x2304xf32, #tpu.memory_space<vmem>>, vector<3x256xf32>,
    %c35_140 = arith.constant 35 : index
    %c0_141 = arith.constant 0 : index
    %113 = vector.load %arg15[%c35_140, %c0_141] : memref<50x256xf32, #tpu.memory_space<vmem>>, vector<3x256xf32>
    %c12_142 = arith.constant 12 : index
    %c768_143 = arith.constant 768 : index
    %114 = vector.load %arg16[%c12_142, %c768_143] : memref<18x2304xf32, #tpu.memory_space<vmem>>, vector<3x256xf32>
    tpu.vector_store %arg16[%c12_142, %c768_143], %113 {strides = array<i32>} : memref<18x2304xf32, #tpu.memory_space<vmem>>, vector<3x256xf32>,
    %c36_144 = arith.constant 36 : index
    %c0_145 = arith.constant 0 : index
    %115 = vector.load %arg15[%c36_144, %c0_145] : memref<50x256xf32, #tpu.memory_space<vmem>>, vector<3x256xf32>
    %c12_146 = arith.constant 12 : index
    %c1024_147 = arith.constant 1024 : index
    %116 = vector.load %arg16[%c12_146, %c1024_147] : memref<18x2304xf32, #tpu.memory_space<vmem>>, vector<3x256xf32>
    tpu.vector_store %arg16[%c12_146, %c1024_147], %115 {strides = array<i32>} : memref<18x2304xf32, #tpu.memory_space<vmem>>, vector<3x256xf32>,
    %c37_148 = arith.constant 37 : index
    %c0_149 = arith.constant 0 : index
    %117 = vector.load %arg15[%c37_148, %c0_149] : memref<50x256xf32, #tpu.memory_space<vmem>>, vector<3x256xf32>
    %c12_150 = arith.constant 12 : index
    %c1280_151 = arith.constant 1280 : index
    %118 = vector.load %arg16[%c12_150, %c1280_151] : memref<18x2304xf32, #tpu.memory_space<vmem>>, vector<3x256xf32>
    tpu.vector_store %arg16[%c12_150, %c1280_151], %117 {strides = array<i32>} : memref<18x2304xf32, #tpu.memory_space<vmem>>, vector<3x256xf32>,
    %c40 = arith.constant 40 : index
    %c0_152 = arith.constant 0 : index
    %119 = vector.load %arg15[%c40, %c0_152] : memref<50x256xf32, #tpu.memory_space<vmem>>, vector<3x256xf32>
    %c12_153 = arith.constant 12 : index
    %c1536_154 = arith.constant 1536 : index
    %120 = vector.load %arg16[%c12_153, %c1536_154] : memref<18x2304xf32, #tpu.memory_space<vmem>>, vector<3x256xf32>
    tpu.vector_store %arg16[%c12_153, %c1536_154], %119 {strides = array<i32>} : memref<18x2304xf32, #tpu.memory_space<vmem>>, vector<3x256xf32>,
    %c41 = arith.constant 41 : index
    %c0_155 = arith.constant 0 : index
    %121 = vector.load %arg15[%c41, %c0_155] : memref<50x256xf32, #tpu.memory_space<vmem>>, vector<3x256xf32>
    %c12_156 = arith.constant 12 : index
    %c1792_157 = arith.constant 1792 : index
    %122 = vector.load %arg16[%c12_156, %c1792_157] : memref<18x2304xf32, #tpu.memory_space<vmem>>, vector<3x256xf32>
    tpu.vector_store %arg16[%c12_156, %c1792_157], %121 {strides = array<i32>} : memref<18x2304xf32, #tpu.memory_space<vmem>>, vector<3x256xf32>,
    %c42 = arith.constant 42 : index
    %c0_158 = arith.constant 0 : index
    %123 = vector.load %arg15[%c42, %c0_158] : memref<50x256xf32, #tpu.memory_space<vmem>>, vector<3x256xf32>
    %c12_159 = arith.constant 12 : index
    %c2048_160 = arith.constant 2048 : index
    %124 = vector.load %arg16[%c12_159, %c2048_160] : memref<18x2304xf32, #tpu.memory_space<vmem>>, vector<3x256xf32>
    tpu.vector_store %arg16[%c12_159, %c2048_160], %123 {strides = array<i32>} : memref<18x2304xf32, #tpu.memory_space<vmem>>, vector<3x256xf32>,
    %c35_161 = arith.constant 35 : index
    %c0_162 = arith.constant 0 : index
    %125 = vector.load %arg15[%c35_161, %c0_162] : memref<50x256xf32, #tpu.memory_space<vmem>>, vector<3x256xf32>
    %c15_163 = arith.constant 15 : index
    %c0_164 = arith.constant 0 : index
    %126 = vector.load %arg16[%c15_163, %c0_164] : memref<18x2304xf32, #tpu.memory_space<vmem>>, vector<3x256xf32>
    tpu.vector_store %arg16[%c15_163, %c0_164], %125 {strides = array<i32>} : memref<18x2304xf32, #tpu.memory_space<vmem>>, vector<3x256xf32>,
    %c36_165 = arith.constant 36 : index
    %c0_166 = arith.constant 0 : index
    %127 = vector.load %arg15[%c36_165, %c0_166] : memref<50x256xf32, #tpu.memory_space<vmem>>, vector<3x256xf32>
    %c15_167 = arith.constant 15 : index
    %c256_168 = arith.constant 256 : index
    %128 = vector.load %arg16[%c15_167, %c256_168] : memref<18x2304xf32, #tpu.memory_space<vmem>>, vector<3x256xf32>
    tpu.vector_store %arg16[%c15_167, %c256_168], %127 {strides = array<i32>} : memref<18x2304xf32, #tpu.memory_space<vmem>>, vector<3x256xf32>,
    %c37_169 = arith.constant 37 : index
    %c0_170 = arith.constant 0 : index
    %129 = vector.load %arg15[%c37_169, %c0_170] : memref<50x256xf32, #tpu.memory_space<vmem>>, vector<3x256xf32>
    %c15_171 = arith.constant 15 : index
    %c512_172 = arith.constant 512 : index
    %130 = vector.load %arg16[%c15_171, %c512_172] : memref<18x2304xf32, #tpu.memory_space<vmem>>, vector<3x256xf32>
    tpu.vector_store %arg16[%c15_171, %c512_172], %129 {strides = array<i32>} : memref<18x2304xf32, #tpu.memory_space<vmem>>, vector<3x256xf32>,
    %c40_173 = arith.constant 40 : index
    %c0_174 = arith.constant 0 : index
    %131 = vector.load %arg15[%c40_173, %c0_174] : memref<50x256xf32, #tpu.memory_space<vmem>>, vector<3x256xf32>
    %c15_175 = arith.constant 15 : index
    %c768_176 = arith.constant 768 : index
    %132 = vector.load %arg16[%c15_175, %c768_176] : memref<18x2304xf32, #tpu.memory_space<vmem>>, vector<3x256xf32>
    tpu.vector_store %arg16[%c15_175, %c768_176], %131 {strides = array<i32>} : memref<18x2304xf32, #tpu.memory_space<vmem>>, vector<3x256xf32>,
    %c41_177 = arith.constant 41 : index
    %c0_178 = arith.constant 0 : index
    %133 = vector.load %arg15[%c41_177, %c0_178] : memref<50x256xf32, #tpu.memory_space<vmem>>, vector<3x256xf32>
    %c15_179 = arith.constant 15 : index
    %c1024_180 = arith.constant 1024 : index
    %134 = vector.load %arg16[%c15_179, %c1024_180] : memref<18x2304xf32, #tpu.memory_space<vmem>>, vector<3x256xf32>
    tpu.vector_store %arg16[%c15_179, %c1024_180], %133 {strides = array<i32>} : memref<18x2304xf32, #tpu.memory_space<vmem>>, vector<3x256xf32>,
    %c42_181 = arith.constant 42 : index
    %c0_182 = arith.constant 0 : index
    %135 = vector.load %arg15[%c42_181, %c0_182] : memref<50x256xf32, #tpu.memory_space<vmem>>, vector<3x256xf32>
    %c15_183 = arith.constant 15 : index
    %c1280_184 = arith.constant 1280 : index
    %136 = vector.load %arg16[%c15_183, %c1280_184] : memref<18x2304xf32, #tpu.memory_space<vmem>>, vector<3x256xf32>
    tpu.vector_store %arg16[%c15_183, %c1280_184], %135 {strides = array<i32>} : memref<18x2304xf32, #tpu.memory_space<vmem>>, vector<3x256xf32>,
    %c45 = arith.constant 45 : index
    %c0_185 = arith.constant 0 : index
    %137 = vector.load %arg15[%c45, %c0_185] : memref<50x256xf32, #tpu.memory_space<vmem>>, vector<3x256xf32>
    %c15_186 = arith.constant 15 : index
    %c1536_187 = arith.constant 1536 : index
    %138 = vector.load %arg16[%c15_186, %c1536_187] : memref<18x2304xf32, #tpu.memory_space<vmem>>, vector<3x256xf32>
    tpu.vector_store %arg16[%c15_186, %c1536_187], %137 {strides = array<i32>} : memref<18x2304xf32, #tpu.memory_space<vmem>>, vector<3x256xf32>,
    %c46 = arith.constant 46 : index
    %c0_188 = arith.constant 0 : index
    %139 = vector.load %arg15[%c46, %c0_188] : memref<50x256xf32, #tpu.memory_space<vmem>>, vector<3x256xf32>
    %c15_189 = arith.constant 15 : index
    %c1792_190 = arith.constant 1792 : index
    %140 = vector.load %arg16[%c15_189, %c1792_190] : memref<18x2304xf32, #tpu.memory_space<vmem>>, vector<3x256xf32>
    tpu.vector_store %arg16[%c15_189, %c1792_190], %139 {strides = array<i32>} : memref<18x2304xf32, #tpu.memory_space<vmem>>, vector<3x256xf32>,
    %c47 = arith.constant 47 : index
    %c0_191 = arith.constant 0 : index
    %141 = vector.load %arg15[%c47, %c0_191] : memref<50x256xf32, #tpu.memory_space<vmem>>, vector<3x256xf32>
    %c15_192 = arith.constant 15 : index
    %c2048_193 = arith.constant 2048 : index
    %142 = vector.load %arg16[%c15_192, %c2048_193] : memref<18x2304xf32, #tpu.memory_space<vmem>>, vector<3x256xf32>
    tpu.vector_store %arg16[%c15_192, %c2048_193], %141 {strides = array<i32>} : memref<18x2304xf32, #tpu.memory_space<vmem>>, vector<3x256xf32>,
    %c0_194 = arith.constant 0 : index
    %c0_195 = arith.constant 0 : index
    %143 = vector.load %arg16[%c0_194, %c0_195] : memref<18x2304xf32, #tpu.memory_space<vmem>>, vector<18x2304xf32>
    %144 = arith.truncf %143 : vector<18x2304xf32> to vector<18x2304xbf16>
    %c0_196 = arith.constant 0 : index
    %c0_197 = arith.constant 0 : index
    %145 = vector.load %arg6[%c0_196, %c0_197] : memref<2304x256xbf16, #tpu.memory_space<vmem>>, vector<2304x256xbf16>
    %cst_198 = arith.constant dense<0.000000e+00> : vector<18x256xf32>
    %146 = tpu.matmul %144, %145, %cst_198 {dimension_numbers = #tpu.dot_dimension_numbers<[1], [0], [0], [1], [0, 0, 1, 1], [], []>} : vector<18x2304xbf16>, vector<2304x256xbf16>, vector<18x256xf32> -> vector<18x256xf32>
    %c0_199 = arith.constant 0 : index
    %c0_200 = arith.constant 0 : index
    %147 = vector.load %arg7[%c0_199, %c0_200] : memref<1x256xf32, #tpu.memory_space<vmem>>, vector<1x256xf32>
    %148 = vector.broadcast %147 : vector<1x256xf32> to vector<18x256xf32>
    %149 = arith.addf %146, %148 : vector<18x256xf32>
    %cst_201 = arith.constant 0.000000e+00 : f32
    %150 = vector.broadcast %cst_201 : f32 to vector<18x256xf32>
    %151 = arith.maximumf %149, %150 : vector<18x256xf32>
    %c0_202 = arith.constant 0 : index
    %c0_203 = arith.constant 0 : index
    %152 = vector.load %arg8[%c0_202, %c0_203] : memref<1x256xf32, #tpu.memory_space<vmem>>, vector<1x256xf32>
    %c0_204 = arith.constant 0 : index
    %c0_205 = arith.constant 0 : index
    %153 = vector.load %arg9[%c0_204, %c0_205] : memref<1x256xf32, #tpu.memory_space<vmem>>, vector<1x256xf32>
    %cst_206 = arith.constant dense<0.000000e+00> : vector<256xf32>
    %154 = vector.multi_reduction <add>, %151, %cst_206 [0] : vector<18x256xf32> to vector<256xf32>
    %155 = vector.shape_cast %154 : vector<256xf32> to vector<1x256xf32>
    %cst_207 = arith.constant 1.800000e+01 : f32
    %156 = vector.broadcast %cst_207 : f32 to vector<1x256xf32>
    %157 = arith.divf %155, %156 : vector<1x256xf32>
    %158 = vector.broadcast %157 : vector<1x256xf32> to vector<18x256xf32>
    %159 = arith.subf %151, %158 : vector<18x256xf32>
    %160 = vector.broadcast %157 : vector<1x256xf32> to vector<18x256xf32>
    %161 = arith.subf %151, %160 : vector<18x256xf32>
    %162 = arith.mulf %159, %161 : vector<18x256xf32>
    %cst_208 = arith.constant dense<0.000000e+00> : vector<256xf32>
    %163 = vector.multi_reduction <add>, %162, %cst_208 [0] : vector<18x256xf32> to vector<256xf32>
    %164 = vector.shape_cast %163 : vector<256xf32> to vector<1x256xf32>
    %cst_209 = arith.constant 1.800000e+01 : f32
    %165 = vector.broadcast %cst_209 : f32 to vector<1x256xf32>
    %166 = arith.divf %164, %165 : vector<1x256xf32>
    %167 = vector.broadcast %157 : vector<1x256xf32> to vector<18x256xf32>
    %168 = arith.subf %151, %167 : vector<18x256xf32>
    %cst_210 = arith.constant 9.99999974E-6 : f32
    %169 = vector.broadcast %cst_210 : f32 to vector<1x256xf32>
    %170 = arith.addf %166, %169 : vector<1x256xf32>
    %171 = math.rsqrt %170 : vector<1x256xf32>
    %172 = vector.broadcast %171 : vector<1x256xf32> to vector<18x256xf32>
    %173 = arith.mulf %168, %172 : vector<18x256xf32>
    %174 = vector.broadcast %152 : vector<1x256xf32> to vector<18x256xf32>
    %175 = arith.mulf %173, %174 : vector<18x256xf32>
    %176 = vector.broadcast %153 : vector<1x256xf32> to vector<18x256xf32>
    %177 = arith.addf %175, %176 : vector<18x256xf32>
    %c0_211 = arith.constant 0 : index
    %c0_212 = arith.constant 0 : index
    %178 = vector.load %arg17[%c0_211, %c0_212] : memref<18x256xf32, #tpu.memory_space<vmem>>, vector<18x256xf32>
    tpu.vector_store %arg17[%c0_211, %c0_212], %177 {strides = array<i32>} : memref<18x256xf32, #tpu.memory_space<vmem>>, vector<18x256xf32>,
    %c0_213 = arith.constant 0 : index
    %c0_214 = arith.constant 0 : index
    %179 = vector.load %arg17[%c0_213, %c0_214] : memref<18x256xf32, #tpu.memory_space<vmem>>, vector<1x256xf32>
    %c0_215 = arith.constant 0 : index
    %c0_216 = arith.constant 0 : index
    %180 = vector.load %arg18[%c0_215, %c0_216] : memref<2x2304xf32, #tpu.memory_space<vmem>>, vector<1x256xf32>
    tpu.vector_store %arg18[%c0_215, %c0_216], %179 {strides = array<i32>} : memref<2x2304xf32, #tpu.memory_space<vmem>>, vector<1x256xf32>,
    %c1_217 = arith.constant 1 : index
    %c0_218 = arith.constant 0 : index
    %181 = vector.load %arg17[%c1_217, %c0_218] : memref<18x256xf32, #tpu.memory_space<vmem>>, vector<1x256xf32>
    %c0_219 = arith.constant 0 : index
    %c256_220 = arith.constant 256 : index
    %182 = vector.load %arg18[%c0_219, %c256_220] : memref<2x2304xf32, #tpu.memory_space<vmem>>, vector<1x256xf32>
    tpu.vector_store %arg18[%c0_219, %c256_220], %181 {strides = array<i32>} : memref<2x2304xf32, #tpu.memory_space<vmem>>, vector<1x256xf32>,
    %c2_221 = arith.constant 2 : index
    %c0_222 = arith.constant 0 : index
    %183 = vector.load %arg17[%c2_221, %c0_222] : memref<18x256xf32, #tpu.memory_space<vmem>>, vector<1x256xf32>
    %c0_223 = arith.constant 0 : index
    %c512_224 = arith.constant 512 : index
    %184 = vector.load %arg18[%c0_223, %c512_224] : memref<2x2304xf32, #tpu.memory_space<vmem>>, vector<1x256xf32>
    tpu.vector_store %arg18[%c0_223, %c512_224], %183 {strides = array<i32>} : memref<2x2304xf32, #tpu.memory_space<vmem>>, vector<1x256xf32>,
    %c3_225 = arith.constant 3 : index
    %c0_226 = arith.constant 0 : index
    %185 = vector.load %arg17[%c3_225, %c0_226] : memref<18x256xf32, #tpu.memory_space<vmem>>, vector<1x256xf32>
    %c0_227 = arith.constant 0 : index
    %c768_228 = arith.constant 768 : index
    %186 = vector.load %arg18[%c0_227, %c768_228] : memref<2x2304xf32, #tpu.memory_space<vmem>>, vector<1x256xf32>
    tpu.vector_store %arg18[%c0_227, %c768_228], %185 {strides = array<i32>} : memref<2x2304xf32, #tpu.memory_space<vmem>>, vector<1x256xf32>,
    %c4 = arith.constant 4 : index
    %c0_229 = arith.constant 0 : index
    %187 = vector.load %arg17[%c4, %c0_229] : memref<18x256xf32, #tpu.memory_space<vmem>>, vector<1x256xf32>
    %c0_230 = arith.constant 0 : index
    %c1024_231 = arith.constant 1024 : index
    %188 = vector.load %arg18[%c0_230, %c1024_231] : memref<2x2304xf32, #tpu.memory_space<vmem>>, vector<1x256xf32>
    tpu.vector_store %arg18[%c0_230, %c1024_231], %187 {strides = array<i32>} : memref<2x2304xf32, #tpu.memory_space<vmem>>, vector<1x256xf32>,
    %c5_232 = arith.constant 5 : index
    %c0_233 = arith.constant 0 : index
    %189 = vector.load %arg17[%c5_232, %c0_233] : memref<18x256xf32, #tpu.memory_space<vmem>>, vector<1x256xf32>
    %c0_234 = arith.constant 0 : index
    %c1280_235 = arith.constant 1280 : index
    %190 = vector.load %arg18[%c0_234, %c1280_235] : memref<2x2304xf32, #tpu.memory_space<vmem>>, vector<1x256xf32>
    tpu.vector_store %arg18[%c0_234, %c1280_235], %189 {strides = array<i32>} : memref<2x2304xf32, #tpu.memory_space<vmem>>, vector<1x256xf32>,
    %c6_236 = arith.constant 6 : index
    %c0_237 = arith.constant 0 : index
    %191 = vector.load %arg17[%c6_236, %c0_237] : memref<18x256xf32, #tpu.memory_space<vmem>>, vector<1x256xf32>
    %c0_238 = arith.constant 0 : index
    %c1536_239 = arith.constant 1536 : index
    %192 = vector.load %arg18[%c0_238, %c1536_239] : memref<2x2304xf32, #tpu.memory_space<vmem>>, vector<1x256xf32>
    tpu.vector_store %arg18[%c0_238, %c1536_239], %191 {strides = array<i32>} : memref<2x2304xf32, #tpu.memory_space<vmem>>, vector<1x256xf32>,
    %c7_240 = arith.constant 7 : index
    %c0_241 = arith.constant 0 : index
    %193 = vector.load %arg17[%c7_240, %c0_241] : memref<18x256xf32, #tpu.memory_space<vmem>>, vector<1x256xf32>
    %c0_242 = arith.constant 0 : index
    %c1792_243 = arith.constant 1792 : index
    %194 = vector.load %arg18[%c0_242, %c1792_243] : memref<2x2304xf32, #tpu.memory_space<vmem>>, vector<1x256xf32>
    tpu.vector_store %arg18[%c0_242, %c1792_243], %193 {strides = array<i32>} : memref<2x2304xf32, #tpu.memory_space<vmem>>, vector<1x256xf32>,
    %c8 = arith.constant 8 : index
    %c0_244 = arith.constant 0 : index
    %195 = vector.load %arg17[%c8, %c0_244] : memref<18x256xf32, #tpu.memory_space<vmem>>, vector<1x256xf32>
    %c0_245 = arith.constant 0 : index
    %c2048_246 = arith.constant 2048 : index
    %196 = vector.load %arg18[%c0_245, %c2048_246] : memref<2x2304xf32, #tpu.memory_space<vmem>>, vector<1x256xf32>
    tpu.vector_store %arg18[%c0_245, %c2048_246], %195 {strides = array<i32>} : memref<2x2304xf32, #tpu.memory_space<vmem>>, vector<1x256xf32>,
    %c9_247 = arith.constant 9 : index
    %c0_248 = arith.constant 0 : index
    %197 = vector.load %arg17[%c9_247, %c0_248] : memref<18x256xf32, #tpu.memory_space<vmem>>, vector<1x256xf32>
    %c1_249 = arith.constant 1 : index
    %c0_250 = arith.constant 0 : index
    %198 = vector.load %arg18[%c1_249, %c0_250] : memref<2x2304xf32, #tpu.memory_space<vmem>>, vector<1x256xf32>
    tpu.vector_store %arg18[%c1_249, %c0_250], %197 {strides = array<i32>} : memref<2x2304xf32, #tpu.memory_space<vmem>>, vector<1x256xf32>,
    %c10_251 = arith.constant 10 : index
    %c0_252 = arith.constant 0 : index
    %199 = vector.load %arg17[%c10_251, %c0_252] : memref<18x256xf32, #tpu.memory_space<vmem>>, vector<1x256xf32>
    %c1_253 = arith.constant 1 : index
    %c256_254 = arith.constant 256 : index
    %200 = vector.load %arg18[%c1_253, %c256_254] : memref<2x2304xf32, #tpu.memory_space<vmem>>, vector<1x256xf32>
    tpu.vector_store %arg18[%c1_253, %c256_254], %199 {strides = array<i32>} : memref<2x2304xf32, #tpu.memory_space<vmem>>, vector<1x256xf32>,
    %c11_255 = arith.constant 11 : index
    %c0_256 = arith.constant 0 : index
    %201 = vector.load %arg17[%c11_255, %c0_256] : memref<18x256xf32, #tpu.memory_space<vmem>>, vector<1x256xf32>
    %c1_257 = arith.constant 1 : index
    %c512_258 = arith.constant 512 : index
    %202 = vector.load %arg18[%c1_257, %c512_258] : memref<2x2304xf32, #tpu.memory_space<vmem>>, vector<1x256xf32>
    tpu.vector_store %arg18[%c1_257, %c512_258], %201 {strides = array<i32>} : memref<2x2304xf32, #tpu.memory_space<vmem>>, vector<1x256xf32>,
    %c12_259 = arith.constant 12 : index
    %c0_260 = arith.constant 0 : index
    %203 = vector.load %arg17[%c12_259, %c0_260] : memref<18x256xf32, #tpu.memory_space<vmem>>, vector<1x256xf32>
    %c1_261 = arith.constant 1 : index
    %c768_262 = arith.constant 768 : index
    %204 = vector.load %arg18[%c1_261, %c768_262] : memref<2x2304xf32, #tpu.memory_space<vmem>>, vector<1x256xf32>
    tpu.vector_store %arg18[%c1_261, %c768_262], %203 {strides = array<i32>} : memref<2x2304xf32, #tpu.memory_space<vmem>>, vector<1x256xf32>,
    %c13 = arith.constant 13 : index
    %c0_263 = arith.constant 0 : index
    %205 = vector.load %arg17[%c13, %c0_263] : memref<18x256xf32, #tpu.memory_space<vmem>>, vector<1x256xf32>
    %c1_264 = arith.constant 1 : index
    %c1024_265 = arith.constant 1024 : index
    %206 = vector.load %arg18[%c1_264, %c1024_265] : memref<2x2304xf32, #tpu.memory_space<vmem>>, vector<1x256xf32>
    tpu.vector_store %arg18[%c1_264, %c1024_265], %205 {strides = array<i32>} : memref<2x2304xf32, #tpu.memory_space<vmem>>, vector<1x256xf32>,
    %c14 = arith.constant 14 : index
    %c0_266 = arith.constant 0 : index
    %207 = vector.load %arg17[%c14, %c0_266] : memref<18x256xf32, #tpu.memory_space<vmem>>, vector<1x256xf32>
    %c1_267 = arith.constant 1 : index
    %c1280_268 = arith.constant 1280 : index
    %208 = vector.load %arg18[%c1_267, %c1280_268] : memref<2x2304xf32, #tpu.memory_space<vmem>>, vector<1x256xf32>
    tpu.vector_store %arg18[%c1_267, %c1280_268], %207 {strides = array<i32>} : memref<2x2304xf32, #tpu.memory_space<vmem>>, vector<1x256xf32>,
    %c15_269 = arith.constant 15 : index
    %c0_270 = arith.constant 0 : index
    %209 = vector.load %arg17[%c15_269, %c0_270] : memref<18x256xf32, #tpu.memory_space<vmem>>, vector<1x256xf32>
    %c1_271 = arith.constant 1 : index
    %c1536_272 = arith.constant 1536 : index
    %210 = vector.load %arg18[%c1_271, %c1536_272] : memref<2x2304xf32, #tpu.memory_space<vmem>>, vector<1x256xf32>
    tpu.vector_store %arg18[%c1_271, %c1536_272], %209 {strides = array<i32>} : memref<2x2304xf32, #tpu.memory_space<vmem>>, vector<1x256xf32>,
    %c16_273 = arith.constant 16 : index
    %c0_274 = arith.constant 0 : index
    %211 = vector.load %arg17[%c16_273, %c0_274] : memref<18x256xf32, #tpu.memory_space<vmem>>, vector<1x256xf32>
    %c1_275 = arith.constant 1 : index
    %c1792_276 = arith.constant 1792 : index
    %212 = vector.load %arg18[%c1_275, %c1792_276] : memref<2x2304xf32, #tpu.memory_space<vmem>>, vector<1x256xf32>
    tpu.vector_store %arg18[%c1_275, %c1792_276], %211 {strides = array<i32>} : memref<2x2304xf32, #tpu.memory_space<vmem>>, vector<1x256xf32>,
    %c17_277 = arith.constant 17 : index
    %c0_278 = arith.constant 0 : index
    %213 = vector.load %arg17[%c17_277, %c0_278] : memref<18x256xf32, #tpu.memory_space<vmem>>, vector<1x256xf32>
    %c1_279 = arith.constant 1 : index
    %c2048_280 = arith.constant 2048 : index
    %214 = vector.load %arg18[%c1_279, %c2048_280] : memref<2x2304xf32, #tpu.memory_space<vmem>>, vector<1x256xf32>
    tpu.vector_store %arg18[%c1_279, %c2048_280], %213 {strides = array<i32>} : memref<2x2304xf32, #tpu.memory_space<vmem>>, vector<1x256xf32>,
    %c0_281 = arith.constant 0 : index
    %c0_282 = arith.constant 0 : index
    %215 = vector.load %arg18[%c0_281, %c0_282] : memref<2x2304xf32, #tpu.memory_space<vmem>>, vector<2x2304xf32>
    %216 = arith.truncf %215 : vector<2x2304xf32> to vector<2x2304xbf16>
    %c0_283 = arith.constant 0 : index
    %c0_284 = arith.constant 0 : index
    %217 = vector.load %arg10[%c0_283, %c0_284] : memref<2304x256xbf16, #tpu.memory_space<vmem>>, vector<2304x256xbf16>
    %cst_285 = arith.constant dense<0.000000e+00> : vector<2x256xf32>
    %218 = tpu.matmul %216, %217, %cst_285 {dimension_numbers = #tpu.dot_dimension_numbers<[1], [0], [0], [1], [0, 0, 1, 1], [], []>} : vector<2x2304xbf16>, vector<2304x256xbf16>, vector<2x256xf32> -> vector<2x256xf32>
    %c0_286 = arith.constant 0 : index
    %c0_287 = arith.constant 0 : index
    %219 = vector.load %arg11[%c0_286, %c0_287] : memref<1x256xf32, #tpu.memory_space<vmem>>, vector<1x256xf32>
    %220 = vector.broadcast %219 : vector<1x256xf32> to vector<2x256xf32>
    %221 = arith.addf %218, %220 : vector<2x256xf32>
    %cst_288 = arith.constant 0.000000e+00 : f32
    %222 = vector.broadcast %cst_288 : f32 to vector<2x256xf32>
    %223 = arith.maximumf %221, %222 : vector<2x256xf32>
    %224 = arith.truncf %223 : vector<2x256xf32> to vector<2x256xbf16>
    %c0_289 = arith.constant 0 : index
    %c0_290 = arith.constant 0 : index
    %225 = vector.load %arg12[%c0_289, %c0_290] : memref<256x128xbf16, #tpu.memory_space<vmem>>, vector<256x128xbf16>
    %cst_291 = arith.constant dense<0.000000e+00> : vector<2x128xf32>
    %226 = tpu.matmul %224, %225, %cst_291 {dimension_numbers = #tpu.dot_dimension_numbers<[1], [0], [0], [1], [0, 0, 1, 1], [], []>} : vector<2x256xbf16>, vector<256x128xbf16>, vector<2x128xf32> -> vector<2x128xf32>
    %c0_292 = arith.constant 0 : index
    %c0_293 = arith.constant 0 : index
    %227 = vector.load %arg13[%c0_292, %c0_293] : memref<1x128xf32, #tpu.memory_space<vmem>>, vector<1x128xf32>
    %228 = vector.broadcast %227 : vector<1x128xf32> to vector<2x128xf32>
    %229 = arith.addf %226, %228 : vector<2x128xf32>
    %230 = arith.negf %229 : vector<2x128xf32>
    %231 = math.exp %230 : vector<2x128xf32>
    %cst_294 = arith.constant 1.000000e+00 : f32
    %232 = vector.broadcast %cst_294 : f32 to vector<2x128xf32>
    %233 = arith.addf %232, %231 : vector<2x128xf32>
    %234 = arith.divf %232, %233 : vector<2x128xf32>
    %c0_295 = arith.constant 0 : index
    %c0_296 = arith.constant 0 : index
    %235 = vector.load %arg14[%c0_295, %c0_296] : memref<2x128xf32, #tpu.memory_space<vmem>>, vector<2x128xf32>
    tpu.vector_store %arg14[%c0_295, %c0_296], %234 {strides = array<i32>} : memref<2x128xf32, #tpu.memory_space<vmem>>, vector<2x128xf32>,
    return
  }
  func.func @transform_0(%arg0: i32) -> (i32, i32) {
    %c0_i32 = arith.constant 0 : i32
    %c0_i32_0 = arith.constant 0 : i32
    %c0_i32_1 = arith.constant 0 : i32
    return %c0_i32, %c0_i32_0 : i32, i32
  }
  func.func @transform_1(%arg0: i32) -> (i32, i32) {
    %c0_i32 = arith.constant 0 : i32
    %c0_i32_0 = arith.constant 0 : i32
    %c0_i32_1 = arith.constant 0 : i32
    return %c0_i32, %c0_i32_0 : i32, i32
  }
  func.func @transform_2(%arg0: i32) -> (i32, i32) {
    %c0_i32 = arith.constant 0 : i32
    %c0_i32_0 = arith.constant 0 : i32
    %c0_i32_1 = arith.constant 0 : i32
    return %c0_i32, %c0_i32_0 : i32, i32
  }
  func.func @transform_3(%arg0: i32) -> (i32, i32) {
    %c0_i32 = arith.constant 0 : i32
    %c0_i32_0 = arith.constant 0 : i32
    %c0_i32_1 = arith.constant 0 : i32
    return %c0_i32, %c0_i32_0 : i32, i32
  }
  func.func @transform_4(%arg0: i32) -> (i32, i32) {
    %c0_i32 = arith.constant 0 : i32
    %c0_i32_0 = arith.constant 0 : i32
    %c0_i32_1 = arith.constant 0 : i32
    return %c0_i32, %c0_i32_0 : i32, i32
  }
  func.func @transform_5(%arg0: i32) -> (i32, i32) {
    %c0_i32 = arith.constant 0 : i32
    %c0_i32_0 = arith.constant 0 : i32
    %c0_i32_1 = arith.constant 0 : i32
    return %c0_i32, %c0_i32_0 : i32, i32
  }
  func.func @transform_6(%arg0: i32) -> (i32, i32) {
    %c0_i32 = arith.constant 0 : i32
    %c0_i32_0 = arith.constant 0 : i32
    %c0_i32_1 = arith.constant 0 : i32
    return %c0_i32, %c0_i32_0 : i32, i32
  }
  func.func @transform_7(%arg0: i32) -> (i32, i32) {
    %c0_i32 = arith.constant 0 : i32
    %c0_i32_0 = arith.constant 0 : i32
    %c0_i32_1 = arith.constant 0 : i32
    return %c0_i32, %c0_i32_0 : i32, i32
  }
  func.func @transform_8(%arg0: i32) -> (i32, i32) {
    %c0_i32 = arith.constant 0 : i32
    %c0_i32_0 = arith.constant 0 : i32
    %c0_i32_1 = arith.constant 0 : i32
    return %c0_i32, %c0_i32_0 : i32, i32
  }
  func.func @transform_9(%arg0: i32) -> (i32, i32) {
    %c0_i32 = arith.constant 0 : i32
    %c0_i32_0 = arith.constant 0 : i32
    %c0_i32_1 = arith.constant 0 : i32
    return %c0_i32, %c0_i32_0 : i32, i32
  }
  func.func @transform_10(%arg0: i32) -> (i32, i32) {
    %c0_i32 = arith.constant 0 : i32
    %c0_i32_0 = arith.constant 0 : i32
    %c0_i32_1 = arith.constant 0 : i32
    return %c0_i32, %c0_i32_0 : i32, i32
  }
  func.func @transform_11(%arg0: i32) -> (i32, i32) {
    %c0_i32 = arith.constant 0 : i32
    %c0_i32_0 = arith.constant 0 : i32
    %c0_i32_1 = arith.constant 0 : i32
    return %c0_i32, %c0_i32_0 : i32, i32
  }
  func.func @transform_12(%arg0: i32) -> (i32, i32) {
    %c0_i32 = arith.constant 0 : i32
    %c0_i32_0 = arith.constant 0 : i32
    %c0_i32_1 = arith.constant 0 : i32
    return %c0_i32, %c0_i32_0 : i32, i32
  }
  func.func @transform_13(%arg0: i32) -> (i32, i32) {
    %c0_i32 = arith.constant 0 : i32
    %c0_i32_0 = arith.constant 0 : i32
    %c0_i32_1 = arith.constant 0 : i32
    return %c0_i32, %c0_i32_0 : i32, i32
  }
}

</mosaic_0001>

<bundles_post_ra>
// kernel: model_cnn1_forward.1
= control target key start
LH: loop header
LB: loop body
LE: loop exit
PB: predicated region body
PF: predicated region fallthrough
CT: control target
= control target key end

     0   :  { %18 = vsyncpa [#allocation7], 0  ;;  %s8458_s0 = inlined_call_operand.vmem [shape: bf16[50,128], index: 0, kind: input, shape index: {}]   ;;  %s8459_s1 = inlined_call_operand.vmem [shape: bf16[128,256], index: 1, kind: input, shape index: {}]   ;;  %s8460_s2 = inlined_call_operand.hbm [shape: f32[1,256], index: 2, kind: input, shape index: {}]   ;;  %s8461_s3 = inlined_call_operand.hbm [shape: f32[1,256], index: 3, kind: input, shape index: {}]   ;;  %s8462_s4 = inlined_call_operand.hbm [shape: f32[1,256], index: 4, kind: input, shape index: {}]   ;;  %s8463_s5 = inlined_call_operand.hbm [shape: bf16[2304,256], index: 5, kind: input, shape index: {}]   ;;  %s8464_s6 = inlined_call_operand.hbm [shape: f32[1,256], index: 6, kind: input, shape index: {}]   ;;  %s8465_s7 = inlined_call_operand.hbm [shape: f32[1,256], index: 7, kind: input, shape index: {}]   ;;  %s8466_s8 = inlined_call_operand.hbm [shape: f32[1,256], index: 8, kind: input, shape index: {}]   ;;  %s8467_s9 = inlined_call_operand.hbm [shape: bf16[2304,256], index: 9, kind: input, shape index: {}]   ;;  %s8468_s10 = inlined_call_operand.hbm [shape: f32[1,256], index: 10, kind: input, shape index: {}]   ;;  %s8469_s11 = inlined_call_operand.vmem [shape: bf16[256,128], index: 11, kind: input, shape index: {}]   ;;  %s8470_s12 = inlined_call_operand.hbm [shape: f32[1,128], index: 12, kind: input, shape index: {}]   ;;  %s8471_s13 = inlined_call_operand.hbm [shape: f32[2,128], index: 13, kind: output, shape index: {}]  }
   0x1   :  { %19 = vsyncpa [#allocation10], 0 }
   0x2   :  { %20 = vsyncpa [#allocation13], 0 }
   0x3   :  { %21 = vsyncpa [#allocation16], 0 }
   0x4   :  { %22 = vsyncpa [#allocation19], 0 }
   0x5   :  { %23 = vsyncpa [#allocation22], 0 }
   0x6   :  { %24 = vsyncpa [#allocation8], 0  ;;  %s7921_s25 = smov [#allocation9]   ;;  %s7922_s27 = smov [#allocation12]  }
   0x7   :  { %s45_s26 = sshll.u32 %s7921_s25, 4  ;;  %s64_s28 = sshll.u32 %s7922_s27, 4  ;;  %s46_s26 = int_to_ptr.vmem [resolvable:$true] %s45_s26  ;;  %s65_s28 = int_to_ptr.vmem [resolvable:$true] %s64_s28 }
   0x8   :  { %s7695_s29 = scalar_lea.vmem %s46_s26, 32  ;;  %p7700_p1 = scmp.lt.s32.totalorder %s46_s26, %s46_s26 }
   0x9   :  { %p7696_p0 = scmp.ne.s32.totalorder %s46_s26, %s7695_s29  ;;  %p7701_p2 = scmp.lt.s32.totalorder %s7695_s29, %s7695_s29 }
   0xb   :  { %p7702_p3 = por %p7701_p2, %p7700_p1 }
   0xd   :  { %p7703_p4 = pnand %p7702_p3, %p7696_p0 }
   0xf   :  { %7706 = shalt.err (!%p7703_p4)
}
  0x10   :  { %48 = dma.hbm_to_vmem [thread:$0]  %s8461_s3, 32, %s46_s26, [#allocation10]  }
  0x11   :  { %s7715_s15 = scalar_lea.vmem %s65_s28, 36864  ;;  %p7720_p6 = scmp.lt.s32.totalorder %s65_s28, %s65_s28 }
  0x12   :  { %p7716_p5 = scmp.ne.s32.totalorder %s65_s28, %s7715_s15  ;;  %p7721_p7 = scmp.lt.s32.totalorder %s7715_s15, %s7715_s15 }
  0x14   :  { %p7722_p8 = por %p7721_p7, %p7720_p6 }
  0x16   :  { %p7723_p9 = pnand %p7722_p8, %p7716_p5 }
  0x18   :  { %7726 = shalt.err (!%p7723_p9)
}
  0x19   :  { %s7923_s16 = smov 128   ;;  %s7924_s17 = smov 8  }
  0x1a   :  { %70 = dma.hbm_to_vmem [thread:$0]  %s8463_s5, 36864, %s65_s28, [#allocation13], %s7923_s16, %s7923_s16, %s7924_s17  }
  0x1b   :  { %s7925_s20 = smov [#allocation15]   ;;  %s7926_s22 = smov [#allocation18]  }
  0x1c   :  { %s87_s21 = sshll.u32 %s7925_s20, 4  ;;  %s106_s23 = sshll.u32 %s7926_s22, 4  ;;  %s88_s21 = int_to_ptr.vmem [resolvable:$true] %s87_s21  ;;  %s107_s23 = int_to_ptr.vmem [resolvable:$true] %s106_s23 }
  0x1d   :  { %s7735_s3 = scalar_lea.vmem %s88_s21, 32  ;;  %p7740_p11 = scmp.lt.s32.totalorder %s88_s21, %s88_s21 }
  0x1e   :  { %p7736_p10 = scmp.ne.s32.totalorder %s88_s21, %s7735_s3  ;;  %p7741_p12 = scmp.lt.s32.totalorder %s7735_s3, %s7735_s3 }
  0x20   :  { %p7742_p13 = por %p7741_p12, %p7740_p11 }
  0x22   :  { %p7743_p0 = pnand %p7742_p13, %p7736_p10 }
  0x24   :  { %7746 = shalt.err (!%p7743_p0)
}
  0x25   :  { %90 = dma.hbm_to_vmem [thread:$0]  %s8465_s7, 32, %s88_s21, [#allocation16]  }
  0x26   :  { %s7755_s26 = scalar_lea.vmem %s107_s23, 36864  ;;  %p7760_p2 = scmp.lt.s32.totalorder %s107_s23, %s107_s23 }
  0x27   :  { %p7756_p1 = scmp.ne.s32.totalorder %s107_s23, %s7755_s26  ;;  %p7761_p3 = scmp.lt.s32.totalorder %s7755_s26, %s7755_s26 }
  0x29   :  { %p7762_p4 = por %p7761_p3, %p7760_p2 }
  0x2b   :  { %p7763_p5 = pnand %p7762_p4, %p7756_p1 }
  0x2d   :  { %7766 = shalt.err (!%p7763_p5)
}
  0x2e   :  { %112 = dma.hbm_to_vmem [thread:$0]  %s8467_s9, 36864, %s107_s23, [#allocation19], %s7923_s16, %s7923_s16, %s7924_s17  }
  0x2f   :  { %s7927_s28 = smov [#allocation6]   ;;  %s7928_s30 = smov [#allocation11]  }
  0x30   :  { %s35_s29 = sshll.u32 %s7927_s28, 4  ;;  %s55_s14 = sshll.u32 %s7928_s30, 4  ;;  %s36_s29 = int_to_ptr.vmem [resolvable:$true] %s35_s29  ;;  %s56_s14 = int_to_ptr.vmem [resolvable:$true] %s55_s14 }
  0x31   :  { %s7775_s15 = scalar_lea.vmem %s36_s29, 32  ;;  %p7780_p7 = scmp.lt.s32.totalorder %s36_s29, %s36_s29 }
  0x32   :  { %p7776_p6 = scmp.ne.s32.totalorder %s36_s29, %s7775_s15  ;;  %p7781_p8 = scmp.lt.s32.totalorder %s7775_s15, %s7775_s15 }
  0x34   :  { %p7782_p9 = por %p7781_p8, %p7780_p7 }
  0x36   :  { %p7783_p10 = pnand %p7782_p9, %p7776_p6 }
  0x38   :  { %7786 = shalt.err (!%p7783_p10)
}
  0x39   :  { %38 = dma.hbm_to_vmem [thread:$0]  %s8460_s2, 32, %s36_s29, [#allocation7]  }
  0x3a   :  { %s7795_s19 = scalar_lea.vmem %s56_s14, 32  ;;  %p7800_p12 = scmp.lt.s32.totalorder %s56_s14, %s56_s14 }
  0x3b   :  { %p7796_p11 = scmp.ne.s32.totalorder %s56_s14, %s7795_s19  ;;  %p7801_p13 = scmp.lt.s32.totalorder %s7795_s19, %s7795_s19 }
  0x3d   :  { %p7802_p0 = por %p7801_p13, %p7800_p12 }
  0x3f   :  { %p7803_p1 = pnand %p7802_p0, %p7796_p11 }
  0x41   :  { %7806 = shalt.err (!%p7803_p1)
}
  0x42   :  { %58 = dma.hbm_to_vmem [thread:$0]  %s8462_s4, 32, %s56_s14, [#allocation10]  }
  0x43   :  { %s7929_s17 = smov [#allocation14]   ;;  %s7930_s21 = smov [#allocation17]  }
  0x44   :  { %s77_s20 = sshll.u32 %s7929_s17, 4  ;;  %s97_s22 = sshll.u32 %s7930_s21, 4  ;;  %s78_s20 = int_to_ptr.vmem [resolvable:$true] %s77_s20  ;;  %s98_s22 = int_to_ptr.vmem [resolvable:$true] %s97_s22 }
  0x45   :  { %s7815_s23 = scalar_lea.vmem %s78_s20, 32  ;;  %p7820_p3 = scmp.lt.s32.totalorder %s78_s20, %s78_s20 }
  0x46   :  { %p7816_p2 = scmp.ne.s32.totalorder %s78_s20, %s7815_s23  ;;  %p7821_p4 = scmp.lt.s32.totalorder %s7815_s23, %s7815_s23 }
  0x48   :  { %p7822_p5 = por %p7821_p4, %p7820_p3 }
  0x4a   :  { %p7823_p6 = pnand %p7822_p5, %p7816_p2 }
  0x4c   :  { %7826 = shalt.err (!%p7823_p6)
}
  0x4d   :  { %80 = dma.hbm_to_vmem [thread:$0]  %s8464_s6, 32, %s78_s20, [#allocation13]  }
  0x4e   :  { %s7835_s24 = scalar_lea.vmem %s98_s22, 32  ;;  %p7840_p8 = scmp.lt.s32.totalorder %s98_s22, %s98_s22 }
  0x4f   :  { %p7836_p7 = scmp.ne.s32.totalorder %s98_s22, %s7835_s24  ;;  %p7841_p9 = scmp.lt.s32.totalorder %s7835_s24, %s7835_s24 }
  0x51   :  { %p7842_p10 = por %p7841_p9, %p7840_p8 }
  0x53   :  { %p7843_p11 = pnand %p7842_p10, %p7836_p7 }
  0x55   :  { %7846 = shalt.err (!%p7843_p11)
}
  0x56   :  { %100 = dma.hbm_to_vmem [thread:$0]  %s8466_s8, 32, %s98_s22, [#allocation16]  }
  0x57   :  { %s7931_s26 = smov [#allocation20]   ;;  %s7932_s27 = smov [#allocation21]  }
  0x58   :  { %s119_s5 = sshll.u32 %s7931_s26, 4  ;;  %s131_s28 = sshll.u32 %s7932_s27, 4  ;;  %s120_s5 = int_to_ptr.vmem [resolvable:$true] %s119_s5  ;;  %s132_s28 = int_to_ptr.vmem [resolvable:$true] %s131_s28 }
  0x59   :  { %s7855_s29 = scalar_lea.vmem %s120_s5, 32  ;;  %p7860_p13 = scmp.lt.s32.totalorder %s120_s5, %s120_s5 }
  0x5a   :  { %p7856_p12 = scmp.ne.s32.totalorder %s120_s5, %s7855_s29  ;;  %p7861_p0 = scmp.lt.s32.totalorder %s7855_s29, %s7855_s29 }
  0x5c   :  { %p7862_p1 = por %p7861_p0, %p7860_p13 }
  0x5e   :  { %p7863_p2 = pnand %p7862_p1, %p7856_p12 }
  0x60   :  { %7866 = shalt.err (!%p7863_p2)
}
  0x61   :  { %122 = dma.hbm_to_vmem [thread:$0]  %s8468_s10, 32, %s120_s5, [#allocation19]  }
  0x62   :  { %s7875_s14 = scalar_lea.vmem %s132_s28, 16  ;;  %s7879_s8 = scalar_lea.vmem %s132_s28, 32 }
  0x63   :  { %p7876_p3 = scmp.ne.s32.totalorder %s132_s28, %s7875_s14  ;;  %p7880_p4 = scmp.lt.s32.totalorder %s132_s28, %s132_s28 }
  0x64   :  { %p7881_p5 = scmp.lt.s32.totalorder %s7879_s8, %s7875_s14 }
  0x66   :  { %p7882_p6 = por %p7881_p5, %p7880_p4 }
  0x68   :  { %p7883_p7 = pnand %p7882_p6, %p7876_p3 }
  0x6a   :  { %7886 = shalt.err (!%p7883_p7)
}
  0x6b   :  { %134 = dma.hbm_to_vmem [thread:$0]  %s8470_s12, 16, %s132_s28, [#allocation22]  }
  0x6c   :  { %7907 = dma.done.wait [#allocation7], 32  }
  0x6d   :  { %7908 = vsyncadd [#allocation7], 4294967264 }
  0x6e   :  { %7909 = dma.done.wait [#allocation10], 64  }
  0x6f   :  { %7910 = vsyncadd [#allocation10], 4294967232 }
  0x70   :  { %7911 = dma.done.wait [#allocation13], 36896  }
  0x71   :  { %7912 = vsyncadd [#allocation13], 4294930400 }
  0x72   :  { %7913 = dma.done.wait [#allocation16], 64  }
  0x73   :  { %7914 = vsyncadd [#allocation16], 4294967232 }
  0x74   :  { %7915 = dma.done.wait [#allocation19], 36896  }
  0x75   :  { %7916 = vsyncadd [#allocation19], 4294930400 }
  0x76   :  { %7917 = dma.done.wait [#allocation22], 16  }
  0x77   :  { %7918 = vsyncadd [#allocation22], 4294967280  ;;  %v7933_v0 = vmov 0   ;;  %v6763_v1 = vld [vmem:[%s8459_s1 + $0x74] ss:$8 sps:$4 sm:$0xff]   ;;  %v6787_v17 = vld [vmem:[%s8458_s0] sm:$0xff]  }
  0x78   :  { %335 = vmatprep.mubr.bf16.mxu0 %v7933_v0  ;;  %v6765_v2 = vld [vmem:[%s8459_s1 + $0x70] ss:$8 sps:$4 sm:$0xff]   ;;  %303 = vmatprep.subr.bf16.mxu0 %v6763_v1  ;;  %v6766_v3 = vld [vmem:[%s8459_s1 + $0x64] ss:$8 sps:$4 sm:$0xff]   ;;  %v6768_v4 = vld [vmem:[%s8459_s1 + $0x60] ss:$8 sps:$4 sm:$0xff]  }
  0x79   :  { %304 = vmatpush1.bf16.msra.mxu0 %v6765_v2  ;;  %v6769_v5 = vld [vmem:[%s8459_s1 + $0x54] ss:$8 sps:$4 sm:$0xff]   ;;  %v6771_v6 = vld [vmem:[%s8459_s1 + $0x50] ss:$8 sps:$4 sm:$0xff]   ;;  %v6772_v7 = vld [vmem:[%s8459_s1 + $0x44] ss:$8 sps:$4 sm:$0xff]  }
  0x7a   :  { %305 = vmatprep.subr.bf16.mxu0 %v6766_v3  ;;  %v6774_v8 = vld [vmem:[%s8459_s1 + $0x40] ss:$8 sps:$4 sm:$0xff]   ;;  %v6775_v9 = vld [vmem:[%s8459_s1 + $0x34] ss:$8 sps:$4 sm:$0xff]   ;;  %v6777_v10 = vld [vmem:[%s8459_s1 + $0x30] ss:$8 sps:$4 sm:$0xff]  }
  0x7b   :  { %v6778_v11 = vld [vmem:[%s8459_s1 + $0x24] ss:$8 sps:$4 sm:$0xff]   ;;  %v6780_v12 = vld [vmem:[%s8459_s1 + $0x20] ss:$8 sps:$4 sm:$0xff]   ;;  %v6781_v13 = vld [vmem:[%s8459_s1 + $0x14] ss:$8 sps:$4 sm:$0xff]  }
  0x7c   :  { %v6783_v14 = vld [vmem:[%s8459_s1 + $0x10] ss:$8 sps:$4 sm:$0xff]   ;;  %v6784_v15 = vld [vmem:[%s8459_s1 + $0x4] ss:$8 sps:$4 sm:$0xff]   ;;  %v6786_v16 = vld [vmem:[%s8459_s1] ss:$8 sps:$4 sm:$0xff]  }
  0x7d   :  { %306 = vmatpush1.bf16.msra.mxu0 %v6768_v4  ;;  %v6788_v18 = vld [vmem:[%s8458_s0 + $0x8] sm:$0xff]   ;;  %v6789_v19 = vld [vmem:[%s8458_s0 + $0x10] sm:$0xff]   ;;  %v6790_v20 = vld [vmem:[%s8458_s0 + $0x18] ss:$0 sps:$4 sm:$0x11]   ;;  %vm395_vm0 = vcmask 1041408  }
  0x7e   :  { %307 = vmatprep.subr.bf16.mxu0 %v6769_v5  ;;  %v6791_v21 = vld [vmem:[#allocation12 + $0x74] ss:$8 sps:$4 sm:$0xff]   ;;  %v6793_v23 = vld [vmem:[#allocation12 + $0x170] ss:$8 sps:$4 sm:$0xff]   ;;  %v6797_v25 = vld [vmem:[#allocation12 + $0x64] ss:$8 sps:$4 sm:$0xff]  }
  0x7f   :  { %v6795_v22 = vld [vmem:[#allocation12 + $0x174] ss:$8 sps:$4 sm:$0xff]   ;;  %v6796_v24 = vld [vmem:[#allocation12 + $0x70] ss:$8 sps:$4 sm:$0xff]   ;;  %3030 = vmatprep.subr.bf16.mxu1 %v6791_v21  ;;  %v6801_v26 = vld [vmem:[#allocation12 + $0x164] ss:$8 sps:$4 sm:$0xff]   ;;  %v191_v21 = vlaneseq }
  0x80   :  { %3031 = vmatpush1.bf16.msra.mxu1 %v6796_v24  ;;  %v6799_v27 = vld [vmem:[#allocation12 + $0x160] ss:$8 sps:$4 sm:$0xff]   ;;  %v6803_v29 = vld [vmem:[#allocation12 + $0x54] ss:$8 sps:$4 sm:$0xff]   ;;  %v6805_v31 = vld [vmem:[#allocation12 + $0x150] ss:$8 sps:$4 sm:$0xff]  }
  0x81   :  { %308 = vmatpush1.bf16.msra.mxu0 %v6771_v6  ;;  %v6802_v28 = vld [vmem:[#allocation12 + $0x60] ss:$8 sps:$4 sm:$0xff]   ;;  %3032 = vmatprep.subr.bf16.mxu1 %v6797_v25  ;;  %v6807_v30 = vld [vmem:[#allocation12 + $0x154] ss:$8 sps:$4 sm:$0xff]   ;;  %v6808_v32 = vld [vmem:[#allocation12 + $0x50] ss:$8 sps:$4 sm:$0xff]  }
  0x82   :  { %309 = vmatprep.subr.bf16.mxu0 %v6772_v7  ;;  %v6809_v33 = vld [vmem:[#allocation12 + $0x44] ss:$8 sps:$4 sm:$0xff]   ;;  %v6811_v35 = vld [vmem:[#allocation12 + $0x140] ss:$8 sps:$4 sm:$0xff]   ;;  %v6815_v37 = vld [vmem:[#allocation12 + $0x34] ss:$8 sps:$4 sm:$0xff]  }
  0x83   :  { %v6813_v34 = vld [vmem:[#allocation12 + $0x144] ss:$8 sps:$4 sm:$0xff]   ;;  %v6814_v36 = vld [vmem:[#allocation12 + $0x40] ss:$8 sps:$4 sm:$0xff]   ;;  %v6819_v38 = vld [vmem:[#allocation12 + $0x134] ss:$8 sps:$4 sm:$0xff]  }
  0x84   :  { %3033 = vmatpush1.bf16.msra.mxu1 %v6802_v28  ;;  %v6817_v39 = vld [vmem:[#allocation12 + $0x130] ss:$8 sps:$4 sm:$0xff]   ;;  %v6821_v41 = vld [vmem:[#allocation12 + $0x24] ss:$8 sps:$4 sm:$0xff]   ;;  %v6823_v43 = vld [vmem:[#allocation12 + $0x120] ss:$8 sps:$4 sm:$0xff]  }
  0x85   :  { %310 = vmatpush1.bf16.msra.mxu0 %v6774_v8  ;;  %3034 = vmatprep.subr.bf16.mxu1 %v6803_v29  ;;  %v6820_v40 = vld [vmem:[#allocation12 + $0x30] ss:$8 sps:$4 sm:$0xff]   ;;  %v6825_v42 = vld [vmem:[#allocation12 + $0x124] ss:$8 sps:$4 sm:$0xff]   ;;  %v6826_v44 = vld [vmem:[#allocation12 + $0x20] ss:$8 sps:$4 sm:$0xff]  }
  0x86   :  { %311 = vmatprep.subr.bf16.mxu0 %v6775_v9  ;;  %v6827_v45 = vld [vmem:[#allocation12 + $0x14] ss:$8 sps:$4 sm:$0xff]   ;;  %v6829_v47 = vld [vmem:[#allocation12 + $0x110] ss:$8 sps:$4 sm:$0xff]   ;;  %v6833_v49 = vld [vmem:[#allocation12 + $0x4] ss:$8 sps:$4 sm:$0xff]  }
  0x87   :  { %v6831_v46 = vld [vmem:[#allocation12 + $0x114] ss:$8 sps:$4 sm:$0xff]   ;;  %v6832_v48 = vld [vmem:[#allocation12 + $0x10] ss:$8 sps:$4 sm:$0xff]   ;;  %v6837_v50 = vld [vmem:[#allocation12 + $0x104] ss:$8 sps:$4 sm:$0xff]  }
  0x88   :  { %3035 = vmatpush1.bf16.msra.mxu1 %v6808_v32  ;;  %v6835_v51 = vld [vmem:[#allocation12 + $0x100] ss:$8 sps:$4 sm:$0xff]   ;;  %v6839_v53 = vld [vmem:[#allocation12 + $0xf4] ss:$8 sps:$4 sm:$0xff]   ;;  %v6841_v55 = vld [vmem:[#allocation12 + $0x1f0] ss:$8 sps:$4 sm:$0xff]  }
  0x89   :  { %312 = vmatpush1.bf16.msra.mxu0 %v6777_v10  ;;  %3036 = vmatprep.subr.bf16.mxu1 %v6809_v33  ;;  %v6838_v52 = vld [vmem:[#allocation12] ss:$8 sps:$4 sm:$0xff]   ;;  %v6843_v54 = vld [vmem:[#allocation12 + $0x1f4] ss:$8 sps:$4 sm:$0xff]   ;;  %v6844_v56 = vld [vmem:[#allocation12 + $0xf0] ss:$8 sps:$4 sm:$0xff]  }
  0x8a   :  { %313 = vmatprep.subr.bf16.mxu0 %v6778_v11  ;;  %v6845_v57 = vld [vmem:[#allocation12 + $0xe4] ss:$8 sps:$4 sm:$0xff]   ;;  %v6847_v59 = vld [vmem:[#allocation12 + $0x1e0] ss:$8 sps:$4 sm:$0xff]   ;;  %v6851_v61 = vld [vmem:[#allocation12 + $0xd4] ss:$8 sps:$4 sm:$0xff]  }
  0x8b   :  { %v6849_v58 = vld [vmem:[#allocation12 + $0x1e4] ss:$8 sps:$4 sm:$0xff]   ;;  %v6850_v60 = vld [vmem:[#allocation12 + $0xe0] ss:$8 sps:$4 sm:$0xff]   ;;  %v6855_v62 = vld [vmem:[#allocation12 + $0x1d4] ss:$8 sps:$4 sm:$0xff]  }
  0x8c   :  { %3037 = vmatpush1.bf16.msra.mxu1 %v6814_v36  ;;  %v6853_v63 = vld [vmem:[#allocation12 + $0x1d0] ss:$8 sps:$4 sm:$0xff]   ;;  %v6857_v1 = vld [vmem:[#allocation12 + $0xc4] ss:$8 sps:$4 sm:$0xff]   ;;  %v6859_v3 = vld [vmem:[#allocation12 + $0x1c0] ss:$8 sps:$4 sm:$0xff]  }
  0x8d   :  { %314 = vmatpush1.bf16.msra.mxu0 %v6780_v12  ;;  %3038 = vmatprep.subr.bf16.mxu1 %v6815_v37  ;;  %v6861_v2 = vld [vmem:[#allocation12 + $0x1c4] ss:$8 sps:$4 sm:$0xff]   ;;  %v6862_v4 = vld [vmem:[#allocation12 + $0xc0] ss:$8 sps:$4 sm:$0xff]   ;;  %v6863_v5 = vld [vmem:[#allocation12 + $0xb4] ss:$8 sps:$4 sm:$0xff]  }
  0x8e   :  { %315 = vmatprep.subr.bf16.mxu0 %v6781_v13  ;;  %v6867_v6 = vld [vmem:[#allocation12 + $0x1b4] ss:$8 sps:$4 sm:$0xff]   ;;  %v6865_v7 = vld [vmem:[#allocation12 + $0x1b0] ss:$8 sps:$4 sm:$0xff]   ;;  %v6869_v9 = vld [vmem:[#allocation12 + $0xa4] ss:$8 sps:$4 sm:$0xff]  }
  0x8f   :  { %v6868_v8 = vld [vmem:[#allocation12 + $0xb0] ss:$8 sps:$4 sm:$0xff]   ;;  %v6873_v10 = vld [vmem:[#allocation12 + $0x1a4] ss:$8 sps:$4 sm:$0xff]   ;;  %v6871_v11 = vld [vmem:[#allocation12 + $0x1a0] ss:$8 sps:$4 sm:$0xff]  }
  0x90   :  { %3039 = vmatpush1.bf16.msra.mxu1 %v6820_v40  ;;  %v6874_v12 = vld [vmem:[#allocation12 + $0xa0] ss:$8 sps:$4 sm:$0xff]   ;;  %v6875_v13 = vld [vmem:[#allocation12 + $0x94] ss:$8 sps:$4 sm:$0xff]   ;;  %v8097_v25 = vshrl.u32 %v191_v21, 7  ;;  %vm993_vm1 = vcmask 1045504  }
  0x91   :  { %316 = vmatpush1.bf16.msra.mxu0 %v6783_v14  ;;  %3040 = vmatprep.subr.bf16.mxu1 %v6821_v41  ;;  %v6879_v14 = vld [vmem:[#allocation12 + $0x194] ss:$8 sps:$4 sm:$0xff]   ;;  %v189_v29 = vld [vmem:[#allocation6] sm:$0x3]  ;;  %vm677_vm2 = vcmask 1044480   ;;  %vm696_vm3 = vcmask 1043456  }
  0x92   :  { %317 = vmatprep.subr.bf16.mxu0 %v6784_v15  ;;  %v6877_v15 = vld [vmem:[#allocation12 + $0x190] ss:$8 sps:$4 sm:$0xff]   ;;  %v6892_v24 = vld [vmem:[#allocation12 + $0x374] ss:$8 sps:$4 sm:$0xff]   ;;  %v8100_v28 = vsub.s32 0, %v8097_v25  ;;  %vm813_vm4 = vcmask 1046528  }
  0x93   :  { %vm916_vm5 = vcmask 1042432   ;;  %vm618_vm6 = vcmask 1040384   ;;  %vm8306_vm7 = vcmp.lt.s32.totalorder %v191_v21, 256 }
  0x94   :  { %3041 = vmatpush1.bf16.msra.mxu1 %v6826_v44  ;;  %v194_v33 = vrot.slane %v189_v29, %v8100_v28 }
  0x95   :  { %318 = vmatpush1.bf16.msra.mxu0 %v6786_v16  ;;  %3042 = vmatprep.subr.bf16.mxu1 %v6827_v45  ;;  %v6880_v16 = vld [vmem:[#allocation12 + $0x90] ss:$8 sps:$4 sm:$0xff]  }
  0x96   :  { %3081 = vmatprep.subr.bf16.mxu0 %v6795_v22 }
  0x98   :  { %336 = vmatmul.mubr.bf16.vlgmr.msra.gmra.mxu0 %v6787_v17  ;;  %3043 = vmatpush1.bf16.msra.mxu1 %v6832_v48  ;;  %v6881_v17 = vld [vmem:[#allocation12 + $0x84] ss:$8 sps:$4 sm:$0xff]  }
  0x99   :  { %345 = vmatprep.mubr.bf16.mxu0 %v7933_v0  ;;  %3082 = vmatpush1.bf16.msra.mxu0 %v6793_v23  ;;  %v6889_v23 = vld [vmem:[#allocation12 + $0x274] ss:$8 sps:$4 sm:$0xff]  }
  0x9a   :  { %3083 = vmatprep.subr.bf16.mxu0 %v6801_v26  ;;  %3044 = vmatprep.subr.bf16.mxu1 %v6833_v49 }
  0x9c   :  { %3045 = vmatpush1.bf16.msra.mxu1 %v6838_v52 }
  0x9d   :  { %3084 = vmatpush1.bf16.msra.mxu0 %v6799_v27  ;;  %3046 = vmatprep.subr.bf16.mxu1 %v6839_v53 }
  0x9e   :  { %3085 = vmatprep.subr.bf16.mxu0 %v6807_v30 }
  0xa0   :  { %346 = vmatmul.mubr.bf16.gmra.mxu0 %v6788_v18  ;;  %3047 = vmatpush2.bf16.msra.mxu1 %v6844_v56  ;;  %v6885_v18 = vld [vmem:[#allocation12 + $0x184] ss:$8 sps:$4 sm:$0xff]  }
  0xa1   :  { %355 = vmatprep.mubr.bf16.mxu0 %v7933_v0  ;;  %3086 = vmatpush1.bf16.msra.mxu0 %v6805_v31  ;;  %v8103_v31 = vsub.s32 1, %v8097_v25 }
  0xa2   :  { %3087 = vmatprep.subr.bf16.mxu0 %v6813_v34  ;;  %3048 = vmatprep.subr.bf16.mxu1 %v6845_v57 }
  0xa4   :  { %3049 = vmatpush2.bf16.msra.mxu1 %v6850_v60 }
  0xa5   :  { %3088 = vmatpush1.bf16.msra.mxu0 %v6811_v35  ;;  %3050 = vmatprep.subr.bf16.mxu1 %v6851_v61  ;;  %v198_v35 = vrot.slane %v189_v29, %v8103_v31 }
  0xa6   :  { %3089 = vmatprep.subr.bf16.mxu0 %v6819_v38 }
  0xa8   :  { %356 = vmatmul.mubr.bf16.gmra.mxu0 %v6789_v19  ;;  %v6883_v19 = vld [vmem:[#allocation12 + $0x180] ss:$8 sps:$4 sm:$0xff]  }
  0xa9   :  { %365 = vmatprep.mubr.bf16.mxu0 %v7933_v0  ;;  %3090 = vmatpush1.bf16.msra.mxu0 %v6817_v39  ;;  %v6856_v0 = vld [vmem:[#allocation12 + $0xd0] ss:$8 sps:$4 sm:$0xff]  }
  0xaa   :  { %3091 = vmatprep.subr.bf16.mxu0 %v6825_v42  ;;  %3051 = vmatpush2.bf16.msra.mxu1 %v6856_v0 }
  0xab   :  { %3052 = vmatprep.subr.bf16.mxu1 %v6857_v1 }
  0xad   :  { %3092 = vmatpush1.bf16.msra.mxu0 %v6823_v43 }
  0xae   :  { %3093 = vmatprep.subr.bf16.mxu0 %v6831_v46  ;;  %3053 = vmatpush2.bf16.msra.mxu1 %v6862_v4 }
  0xaf   :  { %3054 = vmatprep.subr.bf16.mxu1 %v6863_v5 }
  0xb0   :  { %366 = vmatmul.mubr.bf16.gmra.mxu0 %v6790_v20  ;;  %v6886_v20 = vld [vmem:[#allocation12 + $0x80] ss:$8 sps:$4 sm:$0xff]  }
  0xb1   :  { %3094 = vmatpush1.bf16.msra.mxu0 %v6829_v47 }
  0xb2   :  { %3095 = vmatprep.subr.bf16.mxu0 %v6837_v50  ;;  %3055 = vmatpush2.bf16.msra.mxu1 %v6868_v8 }
  0xb3   :  { %3056 = vmatprep.subr.bf16.mxu1 %v6869_v9 }
  0xb5   :  { %3096 = vmatpush1.bf16.msra.mxu0 %v6835_v51 }
  0xb6   :  { %3097 = vmatprep.subr.bf16.mxu0 %v6843_v54  ;;  %3057 = vmatpush2.bf16.msra.mxu1 %v6874_v12 }
  0xb7   :  { %3058 = vmatprep.subr.bf16.mxu1 %v6875_v13 }
  0xb9   :  { %3098 = vmatpush2.bf16.msra.mxu0 %v6841_v55 }
  0xba   :  { %3099 = vmatprep.subr.bf16.mxu0 %v6849_v58  ;;  %3059 = vmatpush2.bf16.msra.mxu1 %v6880_v16 }
  0xbb   :  { %3060 = vmatprep.subr.bf16.mxu1 %v6881_v17 }
  0xbd   :  { %3100 = vmatpush2.bf16.msra.mxu0 %v6847_v59 }
  0xbe   :  { %3101 = vmatprep.subr.bf16.mxu0 %v6855_v62  ;;  %3061 = vmatpush2.bf16.msra.mxu1 %v6886_v20 }
  0xbf   :  { %3132 = vmatprep.subr.bf16.mxu1 %v6889_v23 }
  0xc1   :  { %3102 = vmatpush2.bf16.msra.mxu0 %v6853_v63 }
  0xc2   :  { %3103 = vmatprep.subr.bf16.mxu0 %v6861_v2 }
  0xc5   :  { %3104 = vmatpush2.bf16.msra.mxu0 %v6859_v3 }
  0xc6   :  { %3105 = vmatprep.subr.bf16.mxu0 %v6867_v6 }
  0xc9   :  { %3106 = vmatpush2.bf16.msra.mxu0 %v6865_v7 }
  0xca   :  { %3107 = vmatprep.subr.bf16.mxu0 %v6873_v10 }
  0xcd   :  { %3108 = vmatpush2.bf16.msra.mxu0 %v6871_v11 }
  0xce   :  { %3109 = vmatprep.subr.bf16.mxu0 %v6879_v14 }
  0xd1   :  { %3110 = vmatpush2.bf16.msra.mxu0 %v6877_v15 }
  0xd2   :  { %3111 = vmatprep.subr.bf16.mxu0 %v6885_v18 }
  0xd5   :  { %3112 = vmatpush2.bf16.msra.mxu0 %v6883_v19 }
  0xd6   :  { %3183 = vmatprep.subr.bf16.mxu0 %v6892_v24 }
 0x158   :  { %v337_v22 = vpop.f32.mrf.mxu0 }
 0x159   :  { %v8109_v38 = vadd.f32 %v337_v22, %v194_v33 }
 0x15a   :  { %v339_v26 = vpop.f32.mrf.mxu0 }
 0x15b   :  { %v8115_v42 = vadd.f32 %v339_v26, %v198_v35  ;;  %v374_v47 = vmax.f32 %v8109_v38, 0.0 }
 0x15c   :  { %v341_v27 = vpop.f32.mrf.mxu0 }
 0x15d   :  { %v8107_v36 = vadd.f32 %v341_v27, %v194_v33  ;;  %v375_v53 = vmax.f32 %v8115_v42, 0.0 }
 0x15e   :  { %v343_v30 = vpop.f32.mrf.mxu0 }
 0x15f   :  { %v8111_v39 = vadd.f32 %v343_v30, %v198_v35  ;;  %v376_v43 = vmax.f32 %v8107_v36, 0.0 }
 0x160   :  { %v347_v32 = vpop.f32.mrf.mxu0 }
 0x161   :  { %v8113_v40 = vadd.f32 %v347_v32, %v194_v33  ;;  %v377_v48 = vmax.f32 %v8111_v39, 0.0  ;;  %v390_v55 = vadd.f32 %v376_v43, %v374_v47 }
 0x162   :  { %v349_v34 = vpop.f32.mrf.mxu0 }
 0x163   :  { %v8118_v44 = vadd.f32 %v349_v34, %v198_v35  ;;  %v378_v49 = vmax.f32 %v8113_v40, 0.0  ;;  %v404_v60 = vadd.f32 %v377_v48, %v375_v53 }
 0x164   :  { %v351_v37 = vpop.f32.mrf.mxu0 }
 0x165   :  { %v352_v45 = vadd.f32 %v351_v37, %v194_v33  ;;  %v379_v56 = vmax.f32 %v8118_v44, 0.0  ;;  %v391_v61 = vadd.f32 %v390_v55, %v378_v49 }
 0x166   :  { %v353_v41 = vpop.f32.mrf.mxu0 }
 0x167   :  { %v8123_v50 = vadd.f32 %v353_v41, %v198_v35  ;;  %v380_v57 = vmax.f32 %v352_v45, 0.0  ;;  %v405_v4 = vadd.f32 %v404_v60, %v379_v56 }
 0x168   :  { %v357_v46 = vpop.f32.mrf.mxu0 }
 0x169   :  { %v358_v51 = vadd.f32 %v357_v46, %v194_v33  ;;  %v381_v62 = vmax.f32 %v8123_v50, 0.0  ;;  %v392_v5 = vadd.f32 %v391_v61, %v380_v57 }
 0x16a   :  { %v359_v52 = vpop.f32.mrf.mxu0 }
 0x16b   :  { %v8126_v54 = vadd.f32 %v359_v52, %v198_v35  ;;  %v382_v63 = vmax.f32 %v358_v51, 0.0  ;;  %v406_v8 = vadd.f32 %v405_v4, %v381_v62 }
 0x16c   :  { %v361_v58 = vpop.f32.mrf.mxu0 }
 0x16d   :  { %v362_v59 = vadd.f32 %v361_v58, %v194_v33  ;;  %v383_v1 = vmax.f32 %v8126_v54, 0.0  ;;  %v393_v9 = vadd.f32 %v392_v5, %v382_v63 }
 0x16e   :  { %v363_v0 = vpop.f32.mrf.mxu0 }
 0x16f   :  { %v384_v2 = vmax.f32 %v362_v59, 0.0  ;;  %v8133_v3 = vadd.f32 %v363_v0, %v198_v35  ;;  %v407_v14 = vadd.f32 %v406_v8, %v383_v1 }
 0x170   :  { %v367_v6 = vpop.f32.mrf.mxu0 }
 0x171   :  { %v368_v7 = vadd.f32 %v367_v6, %v194_v33  ;;  %v385_v10 = vmax.f32 %v8133_v3, 0.0  ;;  %v394_v15 = vadd.f32 %v393_v9, %v384_v2 }
 0x172   :  { %v369_v11 = vpop.f32.mrf.mxu0 }
 0x173   :  { %v386_v12 = vmax.f32 %v368_v7, 0.0  ;;  %v370_v13 = vadd.f32 %v369_v11, %v198_v35  ;;  %v408_v19 = vadd.f32 %v407_v14, %v385_v10 }
 0x174   :  { %v371_v16 = vpop.f32.mrf.mxu0 }
 0x175   :  { %v396_v17 = vsel %vm395_vm0, %v386_v12, 0.0  ;;  %v387_v18 = vmax.f32 %v370_v13, 0.0 }
 0x176   :  { %v397_v20 = vadd.f32 %v396_v17, %v394_v15  ;;  %v372_v22 = vpop.f32.mrf.mxu0 }
 0x177   :  { %v409_v23 = vsel %vm395_vm0, %v387_v18, 0.0 }
 0x178   :  { %v398_v24 = vrot.slane %v397_v20, 4  ;;  %v410_v26 = vadd.f32 %v409_v23, %v408_v19 }
 0x17a   :  { %v399_v27 = vadd.f32 %v398_v24, %v397_v20  ;;  %v411_v29 = vrot.slane %v410_v26, 4 }
 0x17c   :  { %v400_v30 = vrot.slane %v399_v27, 2  ;;  %v412_v32 = vadd.f32 %v411_v29, %v410_v26 }
 0x17e   :  { %v401_v33 = vadd.f32 %v400_v30, %v399_v27  ;;  %v413_v34 = vrot.slane %v412_v32, 2 }
 0x180   :  { %v402_v35 = vrot.slane %v401_v33, 1  ;;  %v414_v36 = vadd.f32 %v413_v34, %v412_v32 }
 0x182   :  { %v403_v37 = vadd.f32 %v402_v35, %v401_v33  ;;  %v415_v38 = vrot.slane %v414_v36, 1 }
 0x184   :  { %v418_v40 = vmul.f32 0.02, %v403_v37  ;;  %v416_v41 = vadd.f32 %v415_v38, %v414_v36 }
 0x186   :  { %v8138_v42 = vsub.f32 %v374_v47, %v418_v40  ;;  %v8140_v44 = vsub.f32 %v376_v43, %v418_v40  ;;  %v8142_v45 = vsub.f32 %v378_v49, %v418_v40  ;;  %v8144_v46 = vsub.f32 %v380_v57, %v418_v40 }
 0x187   :  { %v419_v50 = vmul.f32 0.02, %v416_v41  ;;  %v8150_v54 = vsub.f32 %v382_v63, %v418_v40  ;;  %v430_v58 = vsub.f32 %v384_v2, %v418_v40  ;;  %v432_v59 = vsub.f32 %v386_v12, %v418_v40  ;;  %v388_v41 = vld [vmem:[#allocation9] sm:$0x3] }
 0x188   :  { %v434_v51 = vmul.f32 %v8138_v42, %v8138_v42  ;;  %v436_v52 = vmul.f32 %v8140_v44, %v8140_v44  ;;  %v438_v47 = vmul.f32 %v8142_v45, %v8142_v45  ;;  %v440_v60 = vmul.f32 %v8144_v46, %v8144_v46 }
 0x189   :  { %v8152_v55 = vsub.f32 %v375_v53, %v419_v50  ;;  %v8158_v49 = vsub.f32 %v377_v48, %v419_v50  ;;  %v8160_v57 = vsub.f32 %v379_v56, %v419_v50  ;;  %v8164_v63 = vsub.f32 %v381_v62, %v419_v50 }
 0x18a   :  { %v448_v43 = vadd.f32 %v436_v52, %v434_v51  ;;  %v442_v39 = vmul.f32 %v8150_v54, %v8150_v54  ;;  %v8172_v56 = vsub.f32 %v383_v1, %v419_v50  ;;  %v444_v4 = vmul.f32 %v430_v58, %v430_v58 }
 0x18b   :  { %v435_v53 = vmul.f32 %v8152_v55, %v8152_v55  ;;  %v437_v0 = vmul.f32 %v8158_v49, %v8158_v49  ;;  %v439_v2 = vmul.f32 %v8160_v57, %v8160_v57  ;;  %v446_v5 = vmul.f32 %v432_v59, %v432_v59 }
 0x18c   :  { %v449_v61 = vadd.f32 %v448_v43, %v438_v47  ;;  %v8176_v62 = vsub.f32 %v387_v18, %v419_v50  ;;  %v8178_v7 = vsub.f32 %v385_v10, %v419_v50  ;;  %v441_v8 = vmul.f32 %v8164_v63, %v8164_v63  ;;  %v389_v50 = vld [vmem:[#allocation11] sm:$0x3] }
 0x18d   :  { %v461_v3 = vadd.f32 %v437_v0, %v435_v53  ;;  %v443_v1 = vmul.f32 %v8172_v56, %v8172_v56  ;;  %v453_v13 = vsel %vm395_vm0, %v446_v5, 0.0  ;;  %v498_v51 = vrot.slane %v388_v41, %v8100_v28 }
 0x18e   :  { %v450_v48 = vadd.f32 %v449_v61, %v440_v60  ;;  %v447_v14 = vmul.f32 %v8176_v62, %v8176_v62  ;;  %v445_v16 = vmul.f32 %v8178_v7, %v8178_v7  ;;  %v523_v47 = vrot.slane %v389_v50, %v8100_v28 }
 0x18f   :  { %v462_v9 = vadd.f32 %v461_v3, %v439_v2  ;;  %v502_v2 = vrot.slane %v388_v41, %v8103_v31 }
 0x190   :  { %v451_v6 = vadd.f32 %v450_v48, %v442_v39  ;;  %v466_v19 = vsel %vm395_vm0, %v447_v14, 0.0 }
 0x191   :  { %v463_v12 = vadd.f32 %v462_v9, %v441_v8 }
 0x192   :  { %v452_v11 = vadd.f32 %v451_v6, %v444_v4 }
 0x193   :  { %v464_v10 = vadd.f32 %v463_v12, %v443_v1 }
 0x194   :  { %v454_v15 = vadd.f32 %v453_v13, %v452_v11 }
 0x195   :  { %v465_v18 = vadd.f32 %v464_v10, %v445_v16 }
 0x196   :  { %v455_v17 = vrot.slane %v454_v15, 4 }
 0x197   :  { %v467_v22 = vadd.f32 %v466_v19, %v465_v18 }
 0x198   :  { %v456_v20 = vadd.f32 %v455_v17, %v454_v15 }
 0x199   :  { %v468_v24 = vrot.slane %v467_v22, 4 }
 0x19a   :  { %v457_v23 = vrot.slane %v456_v20, 2 }
 0x19b   :  { %v469_v27 = vadd.f32 %v468_v24, %v467_v22 }
 0x19c   :  { %v458_v26 = vadd.f32 %v457_v23, %v456_v20 }
 0x19d   :  { %v470_v30 = vrot.slane %v469_v27, 2 }
 0x19e   :  { %v459_v29 = vrot.slane %v458_v26, 1 }
 0x19f   :  { %v471_v33 = vadd.f32 %v470_v30, %v469_v27 }
 0x1a0   :  { %v460_v32 = vadd.f32 %v459_v29, %v458_v26 }
 0x1a1   :  { %v472_v35 = vrot.slane %v471_v33, 1 }
 0x1a2   :  { %v474_v34 = vmul.f32 0.02, %v460_v32 }
 0x1a3   :  { %v473_v37 = vadd.f32 %v472_v35, %v471_v33 }
 0x1a4   :  { %v476_v36 = vadd.f32 1e-05, %v474_v34 }
 0x1a5   :  { %v475_v38 = vmul.f32 0.02, %v473_v37 }
 0x1a6   :  { %7675 = vrsqrt.f32 %v476_v36 }
 0x1a7   :  { %v477_v40 = vadd.f32 1e-05, %v475_v38 }
 0x1a9   :  { %7677 = vrsqrt.f32 %v477_v40 }
 0x1b3   :  { %v7676_v52 = vpop.eup %7675 }
 0x1b4   :  { %v480_v43 = vmul.f32 %v7676_v52, %v8138_v42  ;;  %v482_v60 = vmul.f32 %v7676_v52, %v8140_v44  ;;  %v484_v61 = vmul.f32 %v7676_v52, %v8142_v45  ;;  %v486_v53 = vmul.f32 %v7676_v52, %v8144_v46 }
 0x1b5   :  { %v488_v0 = vmul.f32 %v7676_v52, %v8150_v54  ;;  %v490_v39 = vmul.f32 %v7676_v52, %v430_v58  ;;  %v492_v48 = vmul.f32 %v7676_v52, %v432_v59  ;;  %v527_v44 = vrot.slane %v389_v50, %v8103_v31 }
 0x1b6   :  { %v505_v3 = vmul.f32 %v498_v51, %v480_v43  ;;  %v507_v4 = vmul.f32 %v498_v51, %v482_v60  ;;  %v509_v5 = vmul.f32 %v498_v51, %v484_v61  ;;  %v511_v6 = vmul.f32 %v498_v51, %v486_v53  ;;  %v7678_v8 = vpop.eup %7677 }
 0x1b7   :  { %v513_v9 = vmul.f32 %v498_v51, %v488_v0  ;;  %v515_v11 = vmul.f32 %v498_v51, %v490_v39  ;;  %v517_v42 = vmul.f32 %v498_v51, %v492_v48  ;;  %v481_v59 = vmul.f32 %v7678_v8, %v8152_v55 }
 0x1b8   :  { %v530_v1 = vadd.f32 %v523_v47, %v505_v3  ;;  %v532_v45 = vadd.f32 %v523_v47, %v507_v4  ;;  %v534_v12 = vadd.f32 %v523_v47, %v509_v5  ;;  %v536_v46 = vadd.f32 %v523_v47, %v511_v6 }
 0x1b9   :  { %v538_v13 = vadd.f32 %v523_v47, %v513_v9  ;;  %v540_v54 = vadd.f32 %v523_v47, %v515_v11  ;;  %v542_v58 = vadd.f32 %v523_v47, %v517_v42  ;;  %v483_v14 = vmul.f32 %v7678_v8, %v8158_v49 }
 0x1ba   :  { %544 = vst [vmem:[#allocation2 + $0x30] sm:$0xff] %v530_v1  ;;  %546 = vst [vmem:[#allocation2 + $0x58] sm:$0xff] %v532_v45  ;;  %v485_v15 = vmul.f32 %v7678_v8, %v8160_v57  ;;  %v487_v16 = vmul.f32 %v7678_v8, %v8164_v63  ;;  %v489_v10 = vmul.f32 %v7678_v8, %v8172_v56 }
 0x1bb   :  { %548 = vst [vmem:[#allocation2 + $0x50] sm:$0xff] %v534_v12  ;;  %550 = vst [vmem:[#allocation2 + $0x8] sm:$0xff] %v536_v46  ;;  %v491_v17 = vmul.f32 %v7678_v8, %v8178_v7  ;;  %v493_v18 = vmul.f32 %v7678_v8, %v8176_v62  ;;  %v506_v55 = vmul.f32 %v502_v2, %v481_v59 }
 0x1bc   :  { %552 = vst [vmem:[#allocation2 + $0x40] sm:$0xff] %v538_v13  ;;  %554 = vst [vmem:[#allocation2 + $0x10] sm:$0xff] %v540_v54  ;;  %v508_v19 = vmul.f32 %v502_v2, %v483_v14  ;;  %v510_v20 = vmul.f32 %v502_v2, %v485_v15  ;;  %v512_v22 = vmul.f32 %v502_v2, %v487_v16 }
 0x1bd   :  { %556 = vst [vmem:[#allocation2 + $0x60] sm:$0x3] %v542_v58  ;;  %v514_v23 = vmul.f32 %v502_v2, %v489_v10  ;;  %v516_v24 = vmul.f32 %v502_v2, %v491_v17  ;;  %v518_v49 = vmul.f32 %v502_v2, %v493_v18  ;;  %v531_v26 = vadd.f32 %v527_v44, %v506_v55 }
 0x1be   :  { %v533_v57 = vadd.f32 %v527_v44, %v508_v19  ;;  %v535_v27 = vadd.f32 %v527_v44, %v510_v20  ;;  %v537_v63 = vadd.f32 %v527_v44, %v512_v22 }
 0x1bf   :  { %v539_v29 = vadd.f32 %v527_v44, %v514_v23  ;;  %v541_v56 = vadd.f32 %v527_v44, %v516_v24  ;;  %v543_v30 = vadd.f32 %v527_v44, %v518_v49  ;;  %545 = vst [vmem:[#allocation2] sm:$0xff] %v531_v26 }
 0x1c0   :  { %547 = vst [vmem:[#allocation2 + $0x18] sm:$0xff] %v533_v57  ;;  %549 = vst [vmem:[#allocation2 + $0x68] sm:$0xff] %v535_v27 }
 0x1c1   :  { %551 = vst [vmem:[#allocation2 + $0x48] sm:$0xff] %v537_v63  ;;  %553 = vst [vmem:[#allocation2 + $0x20] sm:$0xff] %v539_v29  ;;  %v558_v62 = vld [vmem:[#allocation2 + $0x30] sm:$0x7]  ;;  %v659_v7 = vld [vmem:[#allocation2 + $0x30] sm:$0xe0] }
 0x1c2   :  { %555 = vst [vmem:[#allocation2 + $0x38] sm:$0xff] %v541_v56  ;;  %557 = vst [vmem:[#allocation2 + $0x28] sm:$0x3] %v543_v30  ;;  %v769_v32 = vld [vmem:[#allocation2 + $0x58] sm:$0x1c]  ;;  %v663_v33 = vrot.slane %v659_v7, 2 }
 0x1c3   :  { %560 = vst [vmem:[#allocation3 + $0xe8] sm:$0x7] %v558_v62  ;;  %v773_v34 = vrot.slane %v769_v32, 4  ;;  %v884_v35 = vld [vmem:[#allocation2 + $0x8] sm:$0xe] }
 0x1c4   :  { %v985_v36 = vld [vmem:[#allocation2 + $0x8] sm:$0xc0]  ;;  %886 = vst [vmem:[#allocation3 + $0x148] sm:$0xe] %v884_v35  ;;  %v987_v37 = vld [vmem:[#allocation2 + $0x40] sm:$0x1] }
 0x1c5   :  { %v994_v38 = vrot.slane %v985_v36, 2  ;;  %v1086_v40 = vld [vmem:[#allocation2 + $0x40] sm:$0x38]  ;;  %667 = vst [vmem:[#allocation3 + $0xe8] sm:$0x38] %v663_v33  ;;  %v995_v41 = vrot.slane %v987_v37, 2 }
 0x1c6   :  { %777 = vst [vmem:[#allocation3 + $0x148] ss:$-92 sps:$4 sm:$0xc1] %v773_v34   ;;  %v1090_v50 = vrot.slane %v1086_v40, 4  ;;  %v562_v51 = vld [vmem:[#allocation2 + $0x30] sm:$0xe] }
 0x1c7   :  { %v669_v52 = vld [vmem:[#allocation2 + $0x30] sm:$0xc0]  ;;  %v566_v47 = vrot.slane %v562_v51, 1  ;;  %v671_v43 = vld [vmem:[#allocation2 + $0x58] sm:$0x1]  ;;  %v996_v39 = vsel %vm993_vm1, %v994_v38, %v995_v41 }
 0x1c8   :  { %v678_v60 = vrot.slane %v669_v52, 3  ;;  %v559_v61 = vld [vmem:[#allocation2] sm:$0x7]  ;;  %v660_v53 = vld [vmem:[#allocation2] sm:$0xe0]  ;;  %v679_v9 = vrot.slane %v671_v43, 3 }
 0x1c9   :  { %v563_v0 = vld [vmem:[#allocation2] sm:$0xe]  ;;  %1094 = vst [vmem:[#allocation3 + $0x108] ss:$68 sps:$4 sm:$0x83] %v1090_v50   ;;  %v664_v48 = vrot.slane %v660_v53, 2 }
 0x1ca   :  { %561 = vst [vmem:[#allocation3 + $0xa0] sm:$0x7] %v559_v61  ;;  %v770_v2 = vld [vmem:[#allocation2 + $0x18] sm:$0x1c]  ;;  %v885_v3 = vld [vmem:[#allocation2 + $0x48] sm:$0xe]  ;;  %v680_v58 = vsel %vm677_vm2, %v678_v60, %v679_v9 }
 0x1cb   :  { %v567_v4 = vrot.slane %v563_v0, 1  ;;  %1002 = vst [vmem:[#allocation3 + $0x148] sm:$0x70] %v996_v39  ;;  %570 = vst [vmem:[#allocation3 + $0xb8] sm:$0x7] %v566_v47  ;;  %v774_v5 = vrot.slane %v770_v2, 4 }
 0x1cc   :  { %887 = vst [vmem:[#allocation3 + $0xe0] sm:$0xe] %v885_v3  ;;  %v986_v6 = vld [vmem:[#allocation2 + $0x48] sm:$0xc0]  ;;  %v988_v8 = vld [vmem:[#allocation2 + $0x20] sm:$0x1] }
 0x1cd   :  { %v781_v11 = vld [vmem:[#allocation2 + $0x58] sm:$0x38]  ;;  %668 = vst [vmem:[#allocation3 + $0xa0] sm:$0x38] %v664_v48  ;;  %v997_v42 = vrot.slane %v986_v6, 2  ;;  %v998_v44 = vrot.slane %v988_v8, 2 }
 0x1ce   :  { %v1087_v1 = vld [vmem:[#allocation2 + $0x20] sm:$0x38]  ;;  %571 = vst [vmem:[#allocation3 + $0x78] sm:$0x7] %v567_v4  ;;  %v670_v45 = vld [vmem:[#allocation2] sm:$0xc0] }
 0x1cf   :  { %778 = vst [vmem:[#allocation3 + $0xe0] ss:$-60 sps:$4 sm:$0xc1] %v774_v5   ;;  %v1091_v12 = vrot.slane %v1087_v1, 4  ;;  %v672_v46 = vld [vmem:[#allocation2 + $0x18] sm:$0x1]  ;;  %v999_v59 = vsel %vm993_vm1, %v997_v42, %v998_v44 }
 0x1d0   :  { %v681_v13 = vrot.slane %v670_v45, 3  ;;  %v782_v54 = vld [vmem:[#allocation2 + $0x18] sm:$0x38]  ;;  %v682_v14 = vrot.slane %v672_v46, 3  ;;  %v889_v16 = vld [vmem:[#allocation2 + $0x48] sm:$0x1c] }
 0x1d1   :  { %v786_v15 = vrot.slane %v782_v54, 5  ;;  %v1005_v10 = vld [vmem:[#allocation2 + $0x48] sm:$0x80]  ;;  %686 = vst [vmem:[#allocation3 + $0xb8] sm:$0x38] %v680_v58  ;;  %v893_v17 = vrot.slane %v889_v16, 1 }
 0x1d2   :  { %1003 = vst [vmem:[#allocation3 + $0xe0] sm:$0x70] %v999_v59  ;;  %1095 = vst [vmem:[#allocation3 + $0x1a8] ss:$-196 sps:$4 sm:$0x83] %v1091_v12   ;;  %v1015_v55 = vrot.slane %v1005_v10, 3  ;;  %v683_v20 = vsel %vm677_vm2, %v681_v13, %v682_v14 }
 0x1d3   :  { %v1007_v18 = vld [vmem:[#allocation2 + $0x20] sm:$0x3]  ;;  %v1099_v19 = vld [vmem:[#allocation2 + $0x20] sm:$0x70]  ;;  %v785_v24 = vrot.slane %v781_v11, 5  ;;  %v1200_v34 = vld [vmem:[#allocation3 + $0xe8] sm:$0xff] }
 0x1d4   :  { %790 = vst [vmem:[#allocation3 + $0x1a0] ss:$-292 sps:$4 sm:$0xc1] %v786_v15   ;;  %v1016_v22 = vrot.slane %v1007_v18, 3  ;;  %v1103_v23 = vrot.slane %v1099_v19, 5  ;;  %v1218_v41 = vld [vmem:[#allocation3 + $0x148] sm:$0xff] }
 0x1d5   :  { %v888_v49 = vld [vmem:[#allocation2 + $0x8] sm:$0x1c]  ;;  %687 = vst [vmem:[#allocation3 + $0x78] sm:$0x38] %v683_v20  ;;  %897 = vst [vmem:[#allocation3 + $0x1a0] sm:$0xe] %v893_v17  ;;  %v1254_v5 = vpack.c.bf16 %v1218_v41, %v1200_v34 }
 0x1d6   :  { %v892_v26 = vrot.slane %v888_v49, 1  ;;  %v1004_v57 = vld [vmem:[#allocation2 + $0x8] sm:$0x80]  ;;  %v1006_v27 = vld [vmem:[#allocation2 + $0x40] sm:$0x3]  ;;  %v1017_v63 = vsel %vm677_vm2, %v1015_v55, %v1016_v22  ;;  %v1201_v33 = vld [vmem:[#allocation3 + $0xa0] sm:$0xff] }
 0x1d7   :  { %1107 = vst [vmem:[#allocation3 + $0x28] ss:$380 sps:$4 sm:$0x83] %v1103_v23   ;;  %789 = vst [vmem:[#allocation3 + $0x168] ss:$-172 sps:$4 sm:$0xc1] %v785_v24  }
 0x1d8   :  { %v1012_v29 = vrot.slane %v1004_v57, 3  ;;  %v1013_v56 = vrot.slane %v1006_v27, 3  ;;  %v1098_v30 = vld [vmem:[#allocation2 + $0x40] sm:$0x70]  ;;  %1021 = vst [vmem:[#allocation3 + $0x1a0] sm:$0x70] %v1017_v63 }
 0x1d9   :  { %896 = vst [vmem:[#allocation3 + $0x168] sm:$0xe] %v892_v26  ;;  %v1102_v62 = vrot.slane %v1098_v30, 5  ;;  %v573_v7 = vld [vmem:[#allocation2] sm:$0x1c]  ;;  %v1219_v47 = vld [vmem:[#allocation3 + $0xe0] sm:$0xff] }
 0x1da   :  { %v689_v32 = vld [vmem:[#allocation2] sm:$0x80]  ;;  %v1014_v35 = vsel %vm677_vm2, %v1012_v29, %v1013_v56  ;;  %v577_v36 = vrot.slane %v573_v7, 2  ;;  %v691_v37 = vld [vmem:[#allocation2 + $0x18] sm:$0x3]  ;;  %v1255_v0 = vpack.c.bf16 %v1219_v47, %v1201_v33 }
 0x1db   :  { %v700_v38 = vrot.slane %v689_v32, 4  ;;  %v6887_v40 = vld [vmem:[#allocation12 + $0x270] ss:$8 sps:$4 sm:$0xff]   ;;  %1020 = vst [vmem:[#allocation3 + $0x168] sm:$0x70] %v1014_v35  ;;  %v701_v50 = vrot.slane %v691_v37, 4 }
 0x1dc   :  { %1106 = vst [vmem:[#allocation3 + $0x70] ss:$252 sps:$4 sm:$0x83] %v1102_v62   ;;  %v794_v51 = vld [vmem:[#allocation2 + $0x18] sm:$0x70]  ;;  %v1203_v4 = vld [vmem:[#allocation3 + $0x78] sm:$0xff]  ;;  %3062 = vmatprep.mubr.bf16.mxu1 %v1255_v0 }
 0x1dd   :  { %v899_v52 = vld [vmem:[#allocation2 + $0x48] sm:$0x38]  ;;  %v1237_v43 = vld [vmem:[#allocation3 + $0x1a8] sm:$0x3]  ;;  %v6895_v60 = vld [vmem:[#allocation12 + $0x264] ss:$8 sps:$4 sm:$0xff]   ;;  %v702_v39 = vsel %vm696_vm3, %v700_v38, %v701_v50  ;;  %3063 = vmatmul.mubr.bf16.vlgmr.msra.gmra.mxu1 %v1254_v5 }
 0x1de   :  { %581 = vst [vmem:[#allocation3 + $0xd0] sm:$0x7] %v577_v36  ;;  %v798_v61 = vrot.slane %v794_v51, 6  ;;  %v903_v53 = vrot.slane %v899_v52, 2  ;;  %v1023_v48 = vld [vmem:[#allocation2 + $0x20] sm:$0x7]  ;;  %v1273_v44 = vpack.c.bf16 %v1237_v43, %v1237_v43  ;;  %3133 = vmatpush1.bf16.msra.mxu1 %v6887_v40 }
 0x1df   :  { %v1111_v2 = vld [vmem:[#allocation2 + $0x20] sm:$0xe0]  ;;  %706 = vst [vmem:[#allocation3 + $0xd0] sm:$0x38] %v702_v39  ;;  %v1027_v6 = vrot.slane %v1023_v48, 4  ;;  %v1202_v42 = vld [vmem:[#allocation3 + $0xb8] sm:$0xff]  ;;  %3134 = vmatprep.subr.bf16.mxu1 %v6895_v60 }
 0x1e0   :  { %v583_v3 = vld [vmem:[#allocation2] sm:$0xe0]  ;;  %802 = vst [vmem:[#allocation3 + $0x118] ss:$-68 sps:$4 sm:$0xc1] %v798_v61   ;;  %v1115_v8 = vrot.slane %v1111_v2, 6  ;;  %3072 = vmatprep.mubr.bf16.mxu1 %v1273_v44 }
 0x1e1   :  { %907 = vst [vmem:[#allocation3 + $0x118] sm:$0xe] %v903_v53  ;;  %v587_v9 = vrot.slane %v583_v3, 5  ;;  %v708_v11 = vld [vmem:[#allocation2 + $0x18] sm:$0x1c]  ;;  %v1221_v13 = vld [vmem:[#allocation3 + $0x1a0] sm:$0xff] }
 0x1e2   :  { %v1239_v1 = vld [vmem:[#allocation3 + $0x28] sm:$0x3]  ;;  %v6893_v45 = vld [vmem:[#allocation12 + $0x260] ss:$8 sps:$4 sm:$0xff]   ;;  %v712_v12 = vrot.slane %v708_v11, 7  ;;  %v1257_v15 = vpack.c.bf16 %v1221_v13, %v1203_v4 }
 0x1e3   :  { %v805_v46 = vld [vmem:[#allocation2 + $0x58] sm:$0x80]  ;;  %v6890_v54 = vld [vmem:[#allocation12 + $0x370] ss:$8 sps:$4 sm:$0xff]   ;;  %1031 = vst [vmem:[#allocation3 + $0x118] sm:$0x70] %v1027_v6  ;;  %v1275_v26 = vpack.c.bf16 %v1239_v1, %v1239_v1  ;;  %3135 = vmatpush1.bf16.msra.mxu1 %v6893_v45 }
 0x1e4   :  { %1119 = vst [vmem:[#allocation3 + $0x58] ss:$196 sps:$4 sm:$0x83] %v1115_v8   ;;  %591 = vst [vmem:[#allocation3 + $0x18] sm:$0x7] %v587_v9  ;;  %v814_v14 = vrot.slane %v805_v46, 1  ;;  %3113 = vmatprep.mubr.bf16.mxu0 %v1257_v15 }
 0x1e5   :  { %v806_v58 = vld [vmem:[#allocation2 + $0x18] sm:$0x80]  ;;  %v807_v59 = vld [vmem:[#allocation2 + $0x50] sm:$0x3]  ;;  %716 = vst [vmem:[#allocation3 + $0x18] sm:$0x38] %v712_v12 }
 0x1e6   :  { %v6898_v16 = vld [vmem:[#allocation12 + $0x364] ss:$8 sps:$4 sm:$0xff]   ;;  %v6901_v10 = vld [vmem:[#allocation12 + $0x254] ss:$8 sps:$4 sm:$0xff]   ;;  %v815_v18 = vrot.slane %v807_v59, 1  ;;  %v817_v55 = vrot.slane %v806_v58, 1 }
 0x1e7   :  { %v808_v17 = vld [vmem:[#allocation2 + $0x68] sm:$0x3]  ;;  %v908_v19 = vld [vmem:[#allocation2 + $0x8] sm:$0xc0]  ;;  %v1220_v20 = vld [vmem:[#allocation3 + $0x168] sm:$0xff]  ;;  %3136 = vmatprep.subr.bf16.mxu1 %v6901_v10 }
 0x1e8   :  { %v1236_v22 = vld [vmem:[#allocation3 + $0x108] sm:$0x3]  ;;  %v818_v23 = vrot.slane %v808_v17, 1  ;;  %v909_v24 = vld [vmem:[#allocation2 + $0x48] sm:$0xc0]  ;;  %v1256_v49 = vpack.c.bf16 %v1220_v20, %v1202_v42  ;;  %v816_v27 = vsel %vm813_vm4, %v814_v14, %v815_v18  ;;  %v917_v56 = vrot.slane %v908_v19, 5 }
 0x1e9   :  { %v6899_v57 = vld [vmem:[#allocation12 + $0x250] ss:$8 sps:$4 sm:$0xff]   ;;  %v910_v63 = vld [vmem:[#allocation2 + $0x40] sm:$0x1]  ;;  %826 = vst [vmem:[#allocation3 + $0x190] sm:$0x1] %v815_v18  ;;  %v1272_v36 = vpack.c.bf16 %v1236_v22, %v1236_v22 }
 0x1ea   :  { %v911_v29 = vld [vmem:[#allocation2 + $0x20] sm:$0x1]  ;;  %v6896_v30 = vld [vmem:[#allocation12 + $0x360] ss:$8 sps:$4 sm:$0xff]   ;;  %v819_v62 = vsel %vm813_vm4, %v817_v55, %v818_v23  ;;  %824 = vst [vmem:[#allocation3 + $0xd8] sm:$0xc0] %v816_v27  ;;  %3114 = vmatmul.mubr.bf16.vlgmr.msra.gmra.mxu0 %v1256_v49  ;;  %3137 = vmatpush1.bf16.msra.mxu1 %v6899_v57 }
 0x1eb   :  { %827 = vst [vmem:[#allocation3 + $0xa8] sm:$0x1] %v818_v23  ;;  %v918_v7 = vrot.slane %v910_v63, 5  ;;  %v920_v32 = vrot.slane %v909_v24, 5  ;;  %v921_v33 = vrot.slane %v911_v29, 5  ;;  %v1205_v37 = vld [vmem:[#allocation3 + $0xd0] sm:$0xff]  ;;  %3184 = vmatpush1.bf16.msra.mxu0 %v6890_v54  ;;  %3123 = vmatprep.mubr.bf16.mxu0 %v1275_v26 }
 0x1ec   :  { %v1033_v34 = vld [vmem:[#allocation2 + $0x20] sm:$0x38]  ;;  %v6904_v35 = vld [vmem:[#allocation12 + $0x354] ss:$8 sps:$4 sm:$0xff]   ;;  %825 = vst [vmem:[#allocation3 + $0x18] sm:$0xc0] %v819_v62  ;;  %3185 = vmatprep.subr.bf16.mxu0 %v6898_v16  ;;  %3073 = vmatmul.mubr.bf16.gmra.mxu1 %v1272_v36 }
 0x1ed   :  { %v1037_v38 = vrot.slane %v1033_v34, 7  ;;  %v1123_v40 = vld [vmem:[#allocation2 + $0x38] sm:$0x7]  ;;  %v6907_v41 = vld [vmem:[#allocation12 + $0x244] ss:$8 sps:$4 sm:$0xff]   ;;  %v919_v52 = vsel %vm916_vm5, %v917_v56, %v918_v7  ;;  %v922_v47 = vsel %vm916_vm5, %v920_v32, %v921_v33 }
 0x1ee   :  { %v572_v50 = vld [vmem:[#allocation2 + $0x30] sm:$0x1c]  ;;  %v1238_v51 = vld [vmem:[#allocation3 + $0x70] sm:$0x3]  ;;  %v1127_v43 = vrot.slane %v1123_v40, 1  ;;  %v1223_v0 = vld [vmem:[#allocation3 + $0x118] sm:$0xff]  ;;  %3138 = vmatprep.subr.bf16.mxu1 %v6907_v41 }
 0x1ef   :  { %v576_v60 = vrot.slane %v572_v50, 2  ;;  %v688_v61 = vld [vmem:[#allocation2 + $0x30] sm:$0x80]  ;;  %v690_v53 = vld [vmem:[#allocation2 + $0x58] sm:$0x3]  ;;  %v1259_v5 = vpack.c.bf16 %v1223_v0, %v1205_v37  ;;  %3186 = vmatpush1.bf16.msra.mxu0 %v6896_v30  ;;  %v1274_v14 = vpack.c.bf16 %v1238_v51, %v1238_v51 }
 0x1f0   :  { %925 = vst [vmem:[#allocation3 + $0x190] sm:$0xe] %v919_v52  ;;  %926 = vst [vmem:[#allocation3 + $0xa8] sm:$0xe] %v922_v47  ;;  %v6905_v39 = vld [vmem:[#allocation12 + $0x240] ss:$8 sps:$4 sm:$0xff]   ;;  %3187 = vmatprep.subr.bf16.mxu0 %v6904_v35 }
 0x1f1   :  { %1041 = vst [vmem:[#allocation3 + $0xa8] sm:$0x70] %v1037_v38  ;;  %v697_v48 = vrot.slane %v688_v61, 4  ;;  %v698_v2 = vrot.slane %v690_v53, 4  ;;  %v793_v3 = vld [vmem:[#allocation2 + $0x58] sm:$0x70]  ;;  %3164 = vmatprep.mubr.bf16.mxu1 %v1259_v5  ;;  %3139 = vmatpush1.bf16.msra.mxu1 %v6905_v39 }
 0x1f2   :  { %v6902_v4 = vld [vmem:[#allocation12 + $0x350] ss:$8 sps:$4 sm:$0xff]   ;;  %1131 = vst [vmem:[#allocation3 + $0x160] ss:$-180 sps:$4 sm:$0x83] %v1127_v43   ;;  %v797_v8 = vrot.slane %v793_v3, 6  ;;  %3124 = vmatmul.mubr.bf16.gmra.mxu0 %v1274_v14 }
 0x1f3   :  { %v6913_v6 = vld [vmem:[#allocation12 + $0x234] ss:$8 sps:$4 sm:$0xff]   ;;  %580 = vst [vmem:[#allocation3 + $0x120] sm:$0x7] %v576_v60  ;;  %v898_v9 = vld [vmem:[#allocation2 + $0x8] sm:$0x38]  ;;  %v699_v44 = vsel %vm696_vm3, %v697_v48, %v698_v2  ;;  %3188 = vmatpush1.bf16.msra.mxu0 %v6902_v4 }
 0x1f4   :  { %v1022_v11 = vld [vmem:[#allocation2 + $0x40] sm:$0x7]  ;;  %v902_v1 = vrot.slane %v898_v9, 2  ;;  %v1110_v12 = vld [vmem:[#allocation2 + $0x40] sm:$0xe0]  ;;  %v1207_v18 = vld [vmem:[#allocation3 + $0x18] sm:$0xff]  ;;  %3140 = vmatprep.subr.bf16.mxu1 %v6913_v6 }
 0x1f5   :  { %v6910_v42 = vld [vmem:[#allocation12 + $0x344] ss:$8 sps:$4 sm:$0xff]   ;;  %v1026_v45 = vrot.slane %v1022_v11, 4  ;;  %v582_v46 = vld [vmem:[#allocation2 + $0x30] sm:$0xe0]  ;;  %v1114_v13 = vrot.slane %v1110_v12, 6 }
 0x1f6   :  { %705 = vst [vmem:[#allocation3 + $0x120] sm:$0x38] %v699_v44  ;;  %801 = vst [vmem:[#allocation3 + $0x60] ss:$196 sps:$4 sm:$0xc1] %v797_v8   ;;  %v586_v54 = vrot.slane %v582_v46, 5  ;;  %3189 = vmatprep.subr.bf16.mxu0 %v6910_v42 }
 0x1f7   :  { %v707_v58 = vld [vmem:[#allocation2 + $0x58] sm:$0x1c]  ;;  %v1032_v59 = vld [vmem:[#allocation2 + $0x40] sm:$0x38]  ;;  %v6911_v15 = vld [vmem:[#allocation12 + $0x230] ss:$8 sps:$4 sm:$0xff]  }
 0x1f8   :  { %906 = vst [vmem:[#allocation3 + $0x60] sm:$0xe] %v902_v1  ;;  %1030 = vst [vmem:[#allocation3 + $0x60] sm:$0x70] %v1026_v45  ;;  %v711_v16 = vrot.slane %v707_v58, 7  ;;  %v1036_v10 = vrot.slane %v1032_v59, 7  ;;  %3141 = vmatpush1.bf16.msra.mxu1 %v6911_v15 }
 0x1f9   :  { %v1122_v17 = vld [vmem:[#allocation2 + $0x10] sm:$0x7]  ;;  %v6908_v55 = vld [vmem:[#allocation12 + $0x340] ss:$8 sps:$4 sm:$0xff]   ;;  %590 = vst [vmem:[#allocation3 + $0xd8] sm:$0x7] %v586_v54 }
 0x1fa   :  { %1118 = vst [vmem:[#allocation3 + $0x10] ss:$84 sps:$4 sm:$0x83] %v1114_v13   ;;  %v1126_v19 = vrot.slane %v1122_v17, 1  ;;  %v593_v20 = vld [vmem:[#allocation2] sm:$0xc0]  ;;  %3190 = vmatpush1.bf16.msra.mxu0 %v6908_v55 }
 0x1fb   :  { %v595_v22 = vld [vmem:[#allocation2 + $0x18] sm:$0x1]  ;;  %715 = vst [vmem:[#allocation3 + $0xd8] sm:$0x38] %v711_v16  ;;  %1040 = vst [vmem:[#allocation3 + $0x190] sm:$0x70] %v1036_v10 }
 0x1fc   :  { %v6916_v23 = vld [vmem:[#allocation12 + $0x334] ss:$8 sps:$4 sm:$0xff]   ;;  %v603_v24 = vrot.slane %v593_v20, 6  ;;  %v604_v49 = vrot.slane %v595_v22, 6  ;;  %v718_v26 = vld [vmem:[#allocation2 + $0x18] sm:$0x38] }
 0x1fd   :  { %v829_v57 = vld [vmem:[#allocation2 + $0x68] sm:$0x7]  ;;  %1130 = vst [vmem:[#allocation3 + $0x110] ss:$132 sps:$4 sm:$0x83] %v1126_v19   ;;  %v1225_v56 = vld [vmem:[#allocation3 + $0xa8] sm:$0xff]  ;;  %3191 = vmatprep.subr.bf16.mxu0 %v6916_v23 }
 0x1fe   :  { %720 = vst [vmem:[#allocation3 + $0x150] sm:$0x38] %v718_v26  ;;  %v833_v27 = vrot.slane %v829_v57, 2  ;;  %v928_v63 = vld [vmem:[#allocation2 + $0x48] sm:$0x80]  ;;  %v605_v7 = vsel %vm395_vm0, %v603_v24, %v604_v49  ;;  %v1261_v34 = vpack.c.bf16 %v1225_v56, %v1207_v18 }
 0x1ff   :  { %v930_v29 = vld [vmem:[#allocation2 + $0x20] sm:$0x3]  ;;  %v6917_v30 = vld [vmem:[#allocation12 + $0x220] ss:$8 sps:$4 sm:$0xff]   ;;  %v938_v32 = vrot.slane %v928_v63, 6 }
 0x200   :  { %v6919_v62 = vld [vmem:[#allocation12 + $0x224] ss:$8 sps:$4 sm:$0xff]   ;;  %v939_v33 = vrot.slane %v930_v29, 6  ;;  %v6914_v35 = vld [vmem:[#allocation12 + $0x330] ss:$8 sps:$4 sm:$0xff]   ;;  %3215 = vmatprep.mubr.bf16.mxu0 %v1261_v34 }
 0x201   :  { %609 = vst [vmem:[#allocation3 + $0x150] sm:$0x7] %v605_v7  ;;  %837 = vst [vmem:[#allocation3 + $0x198] ss:$-68 sps:$4 sm:$0xc1] %v833_v27   ;;  %3142 = vmatprep.subr.bf16.mxu1 %v6919_v62  ;;  %3192 = vmatpush1.bf16.msra.mxu0 %v6914_v35 }
 0x202   :  { %v1043_v36 = vld [vmem:[#allocation2 + $0x20] sm:$0x70]  ;;  %v1135_v37 = vld [vmem:[#allocation2 + $0x38] sm:$0xe]  ;;  %v611_v38 = vld [vmem:[#allocation2] sm:$0x80]  ;;  %v940_v41 = vsel %vm395_vm0, %v938_v32, %v939_v33  ;;  %3143 = vmatpush1.bf16.msra.mxu1 %v6917_v30 }
 0x203   :  { %v6925_v40 = vld [vmem:[#allocation12 + $0x214] ss:$8 sps:$4 sm:$0xff]   ;;  %1045 = vst [vmem:[#allocation3 + $0x198] sm:$0x70] %v1043_v36  ;;  %v1139_v50 = vrot.slane %v1135_v37, 2  ;;  %v622_v52 = vrot.slane %v611_v38, 7 }
 0x204   :  { %v613_v51 = vld [vmem:[#allocation2 + $0x18] sm:$0x3]  ;;  %944 = vst [vmem:[#allocation3 + $0x198] sm:$0xe] %v940_v41  ;;  %v722_v43 = vld [vmem:[#allocation2 + $0x18] sm:$0x70]  ;;  %3144 = vmatprep.subr.bf16.mxu1 %v6925_v40 }
 0x205   :  { %v623_v47 = vrot.slane %v613_v51, 7  ;;  %v841_v60 = vld [vmem:[#allocation2 + $0x68] sm:$0xe]  ;;  %1143 = vst [vmem:[#allocation3 + $0x98] ss:$260 sps:$4 sm:$0x83] %v1139_v50  }
 0x206   :  { %v6922_v61 = vld [vmem:[#allocation12 + $0x324] ss:$8 sps:$4 sm:$0xff]   ;;  %v726_v53 = vrot.slane %v722_v43, 1  ;;  %v845_v0 = vrot.slane %v841_v60, 3  ;;  %v6923_v3 = vld [vmem:[#allocation12 + $0x210] ss:$8 sps:$4 sm:$0xff]  }
 0x207   :  { %v624_v39 = vsel %vm618_vm6, %v622_v52, %v623_v47  ;;  %v946_v48 = vld [vmem:[#allocation2 + $0x20] sm:$0x7]  ;;  %v1047_v2 = vld [vmem:[#allocation2 + $0x20] sm:$0xe0]  ;;  %v1147_v9 = vld [vmem:[#allocation2 + $0x38] sm:$0x1c]  ;;  %3193 = vmatprep.subr.bf16.mxu0 %v6922_v61  ;;  %3145 = vmatpush1.bf16.msra.mxu1 %v6923_v3 }
 0x208   :  { %628 = vst [vmem:[#allocation3 + $0x180] sm:$0x7] %v624_v39  ;;  %730 = vst [vmem:[#allocation3 + $0x180] sm:$0x38] %v726_v53  ;;  %v950_v4 = vrot.slane %v946_v48, 7  ;;  %v1051_v5 = vrot.slane %v1047_v2, 1 }
 0x209   :  { %849 = vst [vmem:[#allocation3 + $0xc0] ss:$196 sps:$4 sm:$0xc1] %v845_v0   ;;  %v6920_v6 = vld [vmem:[#allocation12 + $0x320] ss:$8 sps:$4 sm:$0xff]   ;;  %v1151_v42 = vrot.slane %v1147_v9, 3 }
 0x20a   :  { %v6931_v8 = vld [vmem:[#allocation12 + $0x204] ss:$8 sps:$4 sm:$0xff]   ;;  %v6928_v11 = vld [vmem:[#allocation12 + $0x314] ss:$8 sps:$4 sm:$0xff]   ;;  %954 = vst [vmem:[#allocation3 + $0xc0] sm:$0xe] %v950_v4  ;;  %3194 = vmatpush1.bf16.msra.mxu0 %v6920_v6 }
 0x20b   :  { %1055 = vst [vmem:[#allocation3 + $0xc0] sm:$0x70] %v1051_v5  ;;  %v6929_v44 = vld [vmem:[#allocation12 + $0x200] ss:$8 sps:$4 sm:$0xff]   ;;  %v6926_v1 = vld [vmem:[#allocation12 + $0x310] ss:$8 sps:$4 sm:$0xff]   ;;  %3146 = vmatprep.subr.bf16.mxu1 %v6931_v8  ;;  %3195 = vmatprep.subr.bf16.mxu0 %v6928_v11 }
 0x20c   :  { %1155 = vst [vmem:[#allocation3 + $0x130] ss:$-108 sps:$4 sm:$0x83] %v1151_v42   ;;  %v6937_v45 = vld [vmem:[#allocation12 + $0x2f4] ss:$8 sps:$4 sm:$0xff]   ;;  %3147 = vmatpush1.bf16.msra.mxu1 %v6929_v44 }
 0x20d   :  { %v6934_v12 = vld [vmem:[#allocation12 + $0x304] ss:$8 sps:$4 sm:$0xff]   ;;  %v6935_v46 = vld [vmem:[#allocation12 + $0x2f0] ss:$8 sps:$4 sm:$0xff]   ;;  %v6932_v13 = vld [vmem:[#allocation12 + $0x300] ss:$8 sps:$4 sm:$0xff]   ;;  %3148 = vmatprep.subr.bf16.mxu1 %v6937_v45 }
 0x20e   :  { %3196 = vmatpush1.bf16.msra.mxu0 %v6926_v1  ;;  %v6940_v54 = vld [vmem:[#allocation12 + $0x3f4] ss:$8 sps:$4 sm:$0xff]   ;;  %v6943_v58 = vld [vmem:[#allocation12 + $0x2e4] ss:$8 sps:$4 sm:$0xff]   ;;  %v6941_v59 = vld [vmem:[#allocation12 + $0x2e0] ss:$8 sps:$4 sm:$0xff]  }
 0x20f   :  { %3197 = vmatprep.subr.bf16.mxu0 %v6934_v12  ;;  %v592_v14 = vld [vmem:[#allocation2 + $0x30] sm:$0xc0]  ;;  %v594_v15 = vld [vmem:[#allocation2 + $0x58] sm:$0x1]  ;;  %v6938_v16 = vld [vmem:[#allocation12 + $0x3f0] ss:$8 sps:$4 sm:$0xff]  }
 0x210   :  { %v6949_v10 = vld [vmem:[#allocation12 + $0x2d4] ss:$8 sps:$4 sm:$0xff]   ;;  %v600_v17 = vrot.slane %v592_v14, 6  ;;  %v601_v18 = vrot.slane %v594_v15, 6  ;;  %v717_v55 = vld [vmem:[#allocation2 + $0x58] sm:$0x38]  ;;  %3149 = vmatpush2.bf16.msra.mxu1 %v6935_v46 }
 0x211   :  { %v6946_v19 = vld [vmem:[#allocation12 + $0x3e4] ss:$8 sps:$4 sm:$0xff]   ;;  %719 = vst [vmem:[#allocation3 + $0x140] sm:$0x38] %v717_v55  ;;  %v828_v20 = vld [vmem:[#allocation2 + $0x50] sm:$0x7]  ;;  %3150 = vmatprep.subr.bf16.mxu1 %v6943_v58 }
 0x212   :  { %v927_v22 = vld [vmem:[#allocation2 + $0x8] sm:$0x80]  ;;  %v929_v23 = vld [vmem:[#allocation2 + $0x40] sm:$0x3]  ;;  %3198 = vmatpush1.bf16.msra.mxu0 %v6932_v13  ;;  %v602_v24 = vsel %vm395_vm0, %v600_v17, %v601_v18  ;;  %v832_v49 = vrot.slane %v828_v20, 2 }
 0x213   :  { %v935_v26 = vrot.slane %v927_v22, 6  ;;  %v936_v57 = vrot.slane %v929_v23, 6  ;;  %v1042_v27 = vld [vmem:[#allocation2 + $0x40] sm:$0x70]  ;;  %3199 = vmatprep.subr.bf16.mxu0 %v6940_v54  ;;  %v6947_v63 = vld [vmem:[#allocation12 + $0x2d0] ss:$8 sps:$4 sm:$0xff]  }
 0x214   :  { %608 = vst [vmem:[#allocation3 + $0x140] sm:$0x7] %v602_v24  ;;  %1044 = vst [vmem:[#allocation3 + $0x80] sm:$0x70] %v1042_v27  ;;  %v1134_v29 = vld [vmem:[#allocation2 + $0x10] sm:$0xe]  ;;  %3151 = vmatpush2.bf16.msra.mxu1 %v6941_v59 }
 0x215   :  { %v610_v56 = vld [vmem:[#allocation2 + $0x30] sm:$0x80]  ;;  %v612_v30 = vld [vmem:[#allocation2 + $0x58] sm:$0x3]  ;;  %v6944_v62 = vld [vmem:[#allocation12 + $0x3e0] ss:$8 sps:$4 sm:$0xff]   ;;  %v937_v32 = vsel %vm395_vm0, %v935_v26, %v936_v57  ;;  %3152 = vmatprep.subr.bf16.mxu1 %v6949_v10 }
 0x216   :  { %v6955_v7 = vld [vmem:[#allocation12 + $0x2c4] ss:$8 sps:$4 sm:$0xff]   ;;  %836 = vst [vmem:[#allocation3 + $0x80] ss:$196 sps:$4 sm:$0xc1] %v832_v49   ;;  %v1138_v33 = vrot.slane %v1134_v29, 2  ;;  %3200 = vmatpush2.bf16.msra.mxu0 %v6938_v16 }
 0x217   :  { %v619_v34 = vrot.slane %v610_v56, 7  ;;  %v620_v35 = vrot.slane %v612_v30, 7  ;;  %v721_v36 = vld [vmem:[#allocation2 + $0x58] sm:$0x70]  ;;  %943 = vst [vmem:[#allocation3 + $0x80] sm:$0xe] %v937_v32  ;;  %3201 = vmatprep.subr.bf16.mxu0 %v6946_v19 }
 0x218   :  { %v725_v37 = vrot.slane %v721_v36, 1  ;;  %v840_v38 = vld [vmem:[#allocation2 + $0x50] sm:$0xe]  ;;  %v945_v40 = vld [vmem:[#allocation2 + $0x40] sm:$0x7]  ;;  %3153 = vmatpush2.bf16.msra.mxu1 %v6947_v63 }
 0x219   :  { %1142 = vst [vmem:[#allocation3 + $0x138] ss:$-180 sps:$4 sm:$0x83] %v1138_v33   ;;  %v621_v41 = vsel %vm618_vm6, %v619_v34, %v620_v35  ;;  %v844_v50 = vrot.slane %v840_v38, 3  ;;  %v949_v51 = vrot.slane %v945_v40, 7  ;;  %3154 = vmatprep.subr.bf16.mxu1 %v6955_v7  ;;  %v1204_v35 = vld [vmem:[#allocation3 + $0x120] sm:$0xff] }
 0x21a   :  { %v1046_v52 = vld [vmem:[#allocation2 + $0x40] sm:$0xe0]  ;;  %v1146_v47 = vld [vmem:[#allocation2 + $0x10] sm:$0x1c]  ;;  %v6952_v43 = vld [vmem:[#allocation12 + $0x3d4] ss:$8 sps:$4 sm:$0xff]   ;;  %3202 = vmatpush2.bf16.msra.mxu0 %v6944_v62 }
 0x21b   :  { %627 = vst [vmem:[#allocation3 + $0x100] sm:$0x7] %v621_v41  ;;  %729 = vst [vmem:[#allocation3 + $0x100] sm:$0x38] %v725_v37  ;;  %v1050_v60 = vrot.slane %v1046_v52, 1  ;;  %v1150_v61 = vrot.slane %v1146_v47, 3  ;;  %3203 = vmatprep.subr.bf16.mxu0 %v6952_v43 }
 0x21c   :  { %848 = vst [vmem:[#allocation3 + $0x40] ss:$196 sps:$4 sm:$0xc1] %v844_v50   ;;  %953 = vst [vmem:[#allocation3 + $0x40] sm:$0xe] %v949_v51  ;;  %v1222_v36 = vld [vmem:[#allocation3 + $0x60] sm:$0xff] }
 0x21d   :  { %v6953_v53 = vld [vmem:[#allocation12 + $0x2c0] ss:$8 sps:$4 sm:$0xff]   ;;  %1054 = vst [vmem:[#allocation3 + $0x40] sm:$0x70] %v1050_v60  ;;  %v6950_v0 = vld [vmem:[#allocation12 + $0x3d0] ss:$8 sps:$4 sm:$0xff]   ;;  %v1258_v41 = vpack.c.bf16 %v1222_v36, %v1204_v35 }
 0x21e   :  { %1154 = vst [vmem:[#allocation3 + $0x128] ss:$-228 sps:$4 sm:$0x83] %v1150_v61   ;;  %v6961_v39 = vld [vmem:[#allocation12 + $0x2b4] ss:$8 sps:$4 sm:$0xff]   ;;  %3155 = vmatpush2.bf16.msra.mxu1 %v6953_v53  ;;  %3204 = vmatpush2.bf16.msra.mxu0 %v6950_v0  ;;  %v1224_v43 = vld [vmem:[#allocation3 + $0x190] sm:$0xff] }
 0x21f   :  { %v6958_v48 = vld [vmem:[#allocation12 + $0x3c4] ss:$8 sps:$4 sm:$0xff]   ;;  %v6956_v2 = vld [vmem:[#allocation12 + $0x3c0] ss:$8 sps:$4 sm:$0xff]   ;;  %v6959_v3 = vld [vmem:[#allocation12 + $0x2b0] ss:$8 sps:$4 sm:$0xff]   ;;  %3156 = vmatprep.subr.bf16.mxu1 %v6961_v39 }
 0x220   :  { %v630_v4 = vld [vmem:[#allocation2 + $0x18] sm:$0x1c]  ;;  %v732_v5 = vld [vmem:[#allocation2 + $0x18] sm:$0x80]  ;;  %v6964_v6 = vld [vmem:[#allocation12 + $0x3b4] ss:$8 sps:$4 sm:$0xff]   ;;  %3205 = vmatprep.subr.bf16.mxu0 %v6958_v48 }
 0x221   :  { %v6967_v8 = vld [vmem:[#allocation12 + $0x2a4] ss:$8 sps:$4 sm:$0xff]   ;;  %v634_v9 = vrot.slane %v630_v4, 2  ;;  %v742_v42 = vrot.slane %v732_v5, 4  ;;  %v853_v1 = vld [vmem:[#allocation2 + $0x68] sm:$0x70] }
 0x222   :  { %v734_v11 = vld [vmem:[#allocation2 + $0x68] sm:$0x3]  ;;  %v956_v45 = vld [vmem:[#allocation2 + $0x20] sm:$0x38]  ;;  %v857_v46 = vrot.slane %v853_v1, 6  ;;  %3157 = vmatpush2.bf16.msra.mxu1 %v6959_v3  ;;  %3206 = vmatpush2.bf16.msra.mxu0 %v6956_v2 }
 0x223   :  { %v743_v44 = vrot.slane %v734_v11, 4  ;;  %v6965_v12 = vld [vmem:[#allocation12 + $0x2a0] ss:$8 sps:$4 sm:$0xff]   ;;  %638 = vst [vmem:[#allocation3 + $0xf8] sm:$0x7] %v634_v9  ;;  %v960_v13 = vrot.slane %v956_v45, 2  ;;  %3158 = vmatprep.subr.bf16.mxu1 %v6967_v8  ;;  %3207 = vmatprep.subr.bf16.mxu0 %v6964_v6 }
 0x224   :  { %v1057_v54 = vld [vmem:[#allocation2 + $0x38] sm:$0x7]  ;;  %v6962_v58 = vld [vmem:[#allocation12 + $0x3b0] ss:$8 sps:$4 sm:$0xff]   ;;  %v1159_v16 = vld [vmem:[#allocation2 + $0x38] sm:$0xe0] }
 0x225   :  { %v6973_v59 = vld [vmem:[#allocation12 + $0x294] ss:$8 sps:$4 sm:$0xff]   ;;  %v744_v14 = vsel %vm696_vm3, %v742_v42, %v743_v44  ;;  %v1061_v15 = vrot.slane %v1057_v54, 4  ;;  %v6970_v10 = vld [vmem:[#allocation12 + $0x3a4] ss:$8 sps:$4 sm:$0xff]   ;;  %v1163_v17 = vrot.slane %v1159_v16, 6 }
 0x226   :  { %748 = vst [vmem:[#allocation3 + $0xf8] sm:$0x38] %v744_v14  ;;  %861 = vst [vmem:[#allocation3 + $0x20] ss:$220 sps:$4 sm:$0xc1] %v857_v46   ;;  %3159 = vmatpush2.bf16.msra.mxu1 %v6965_v12  ;;  %3208 = vmatpush2.bf16.msra.mxu0 %v6962_v58  ;;  %v1206_v47 = vld [vmem:[#allocation3 + $0xd8] sm:$0xff] }
 0x227   :  { %964 = vst [vmem:[#allocation3 + $0x20] sm:$0xe] %v960_v13  ;;  %v640_v18 = vld [vmem:[#allocation2 + $0x18] sm:$0x38]  ;;  %v750_v55 = vld [vmem:[#allocation2 + $0x68] sm:$0x7]  ;;  %3160 = vmatprep.subr.bf16.mxu1 %v6973_v59  ;;  %3209 = vmatprep.subr.bf16.mxu0 %v6970_v10  ;;  %v1260_v0 = vpack.c.bf16 %v1224_v43, %v1206_v47 }
 0x228   :  { %1065 = vst [vmem:[#allocation3 + $0x20] sm:$0x70] %v1061_v15  ;;  %v644_v19 = vrot.slane %v640_v18, 3  ;;  %v754_v20 = vrot.slane %v750_v55, 5  ;;  %v865_v22 = vld [vmem:[#allocation2 + $0x68] sm:$0xe0] }
 0x229   :  { %v966_v23 = vld [vmem:[#allocation2 + $0x20] sm:$0x70]  ;;  %1167 = vst [vmem:[#allocation3 + $0xf0] ss:$-204 sps:$4 sm:$0x83] %v1163_v17   ;;  %v869_v24 = vrot.slane %v865_v22, 7 }
 0x22a   :  { %v970_v49 = vrot.slane %v966_v23, 3  ;;  %v1067_v26 = vld [vmem:[#allocation2 + $0x38] sm:$0xe]  ;;  %v8225_v57 = vld [vmem:[#allocation2 + $0x38] sm:$0xc0]  ;;  %v1209_v4 = vld [vmem:[#allocation3 + $0x150] sm:$0xff] }
 0x22b   :  { %648 = vst [vmem:[#allocation3 + $0x178] sm:$0x7] %v644_v19  ;;  %758 = vst [vmem:[#allocation3 + $0x178] sm:$0x38] %v754_v20  ;;  %v1071_v27 = vrot.slane %v1067_v26, 5  ;;  %v1179_v63 = vrot.slane %v8225_v57, 7 }
 0x22c   :  { %v6971_v29 = vld [vmem:[#allocation12 + $0x290] ss:$8 sps:$4 sm:$0xff]   ;;  %873 = vst [vmem:[#allocation3 + $0x30] ss:$332 sps:$4 sm:$0xc1] %v869_v24  }
 0x22d   :  { %974 = vst [vmem:[#allocation3 + $0x30] sm:$0xe] %v970_v49  ;;  %v6968_v56 = vld [vmem:[#allocation12 + $0x3a0] ss:$8 sps:$4 sm:$0xff]   ;;  %v6979_v30 = vld [vmem:[#allocation12 + $0x284] ss:$8 sps:$4 sm:$0xff]   ;;  %3161 = vmatpush2.bf16.msra.mxu1 %v6971_v29 }
 0x22e   :  { %1075 = vst [vmem:[#allocation3 + $0x30] sm:$0x70] %v1071_v27  ;;  %1189 = vst [vmem:[#allocation3 + $0x30] sm:$0x80] %v1179_v63  ;;  %v6976_v62 = vld [vmem:[#allocation12 + $0x394] ss:$8 sps:$4 sm:$0xff]   ;;  %3210 = vmatpush2.bf16.msra.mxu0 %v6968_v56  ;;  %3162 = vmatprep.subr.bf16.mxu1 %v6979_v30 }
 0x22f   :  { %v6977_v7 = vld [vmem:[#allocation12 + $0x280] ss:$8 sps:$4 sm:$0xff]   ;;  %v6974_v32 = vld [vmem:[#allocation12 + $0x390] ss:$8 sps:$4 sm:$0xff]   ;;  %v6985_v33 = vld [vmem:[#allocation12 + $0x474] ss:$8 sps:$4 sm:$0xff]   ;;  %3211 = vmatprep.subr.bf16.mxu0 %v6976_v62 }
 0x230   :  { %v6982_v34 = vld [vmem:[#allocation12 + $0x384] ss:$8 sps:$4 sm:$0xff]   ;;  %v6983_v38 = vld [vmem:[#allocation12 + $0x470] ss:$8 sps:$4 sm:$0xff]   ;;  %v6980_v40 = vld [vmem:[#allocation12 + $0x380] ss:$8 sps:$4 sm:$0xff]  }
 0x231   :  { %v1241_v37 = vld [vmem:[#allocation3 + $0x58] sm:$0x3]  ;;  %3163 = vmatpush2.bf16.msra.mxu1 %v6977_v7  ;;  %v6988_v51 = vld [vmem:[#allocation12 + $0x574] ss:$8 sps:$4 sm:$0xff]   ;;  %v6989_v61 = vld [vmem:[#allocation12 + $0x460] ss:$8 sps:$4 sm:$0xff]  }
 0x232   :  { %3212 = vmatpush2.bf16.msra.mxu0 %v6974_v32  ;;  %3234 = vmatprep.subr.bf16.mxu1 %v6985_v33  ;;  %v6991_v50 = vld [vmem:[#allocation12 + $0x464] ss:$8 sps:$4 sm:$0xff]   ;;  %v1277_v52 = vpack.c.bf16 %v1241_v37, %v1241_v37  ;;  %v1243_v60 = vld [vmem:[#allocation3 + $0x160] sm:$0x3]  ;;  %v6986_v53 = vld [vmem:[#allocation12 + $0x570] ss:$8 sps:$4 sm:$0xff]  }
 0x233   :  { %3213 = vmatprep.subr.bf16.mxu0 %v6982_v34  ;;  %v6994_v39 = vld [vmem:[#allocation12 + $0x564] ss:$8 sps:$4 sm:$0xff]   ;;  %v6997_v2 = vld [vmem:[#allocation12 + $0x454] ss:$8 sps:$4 sm:$0xff]   ;;  %v1279_v3 = vpack.c.bf16 %v1243_v60, %v1243_v60  ;;  %v6992_v6 = vld [vmem:[#allocation12 + $0x560] ss:$8 sps:$4 sm:$0xff]  }
 0x234   :  { %3165 = vmatmul.mubr.bf16.vlgmr.msra.gmra.mxu1 %v1258_v41  ;;  %v1240_v48 = vld [vmem:[#allocation3 + $0x10] sm:$0x3]  ;;  %v1227_v5 = vld [vmem:[#allocation3 + $0x198] sm:$0xff]  ;;  %v7001_v45 = vld [vmem:[#allocation12 + $0x440] ss:$8 sps:$4 sm:$0xff]  }
 0x235   :  { %3174 = vmatprep.mubr.bf16.mxu1 %v1277_v52  ;;  %3235 = vmatpush1.bf16.msra.mxu1 %v6983_v38  ;;  %v6995_v8 = vld [vmem:[#allocation12 + $0x450] ss:$8 sps:$4 sm:$0xff]   ;;  %v1276_v9 = vpack.c.bf16 %v1240_v48, %v1240_v48  ;;  %v1242_v11 = vld [vmem:[#allocation3 + $0x110] sm:$0x3]  ;;  %v7000_v42 = vld [vmem:[#allocation12 + $0x554] ss:$8 sps:$4 sm:$0xff]   ;;  %v1263_v1 = vpack.c.bf16 %v1227_v5, %v1209_v4 }
 0x236   :  { %3214 = vmatpush2.bf16.msra.mxu0 %v6980_v40  ;;  %3236 = vmatprep.subr.bf16.mxu1 %v6991_v50  ;;  %v7003_v44 = vld [vmem:[#allocation12 + $0x444] ss:$8 sps:$4 sm:$0xff]   ;;  %v629_v12 = vld [vmem:[#allocation2 + $0x58] sm:$0x1c]  ;;  %v733_v13 = vld [vmem:[#allocation2 + $0x50] sm:$0x3]  ;;  %v1278_v27 = vpack.c.bf16 %v1242_v11, %v1242_v11 }
 0x237   :  { %3285 = vmatprep.subr.bf16.mxu0 %v6988_v51  ;;  %v731_v46 = vld [vmem:[#allocation2 + $0x58] sm:$0x80]  ;;  %v6998_v54 = vld [vmem:[#allocation12 + $0x550] ss:$8 sps:$4 sm:$0xff]   ;;  %v633_v59 = vrot.slane %v629_v12, 2  ;;  %v740_v15 = vrot.slane %v733_v13, 4 }
 0x238   :  { %v1211_v58 = vld [vmem:[#allocation3 + $0x180] sm:$0xff]  ;;  %v739_v14 = vrot.slane %v731_v46, 4  ;;  %v7006_v17 = vld [vmem:[#allocation12 + $0x544] ss:$8 sps:$4 sm:$0xff]   ;;  %v955_v19 = vld [vmem:[#allocation2 + $0x40] sm:$0x38] }
 0x239   :  { %3216 = vmatmul.mubr.bf16.vlgmr.msra.gmra.mxu0 %v1260_v0  ;;  %3237 = vmatpush1.bf16.msra.mxu1 %v6989_v61  ;;  %v852_v16 = vld [vmem:[#allocation2 + $0x50] sm:$0x70]  ;;  %v1056_v20 = vld [vmem:[#allocation2 + $0x10] sm:$0x7]  ;;  %637 = vst [vmem:[#allocation3 + $0x90] sm:$0x7] %v633_v59 }
 0x23a   :  { %3225 = vmatprep.mubr.bf16.mxu0 %v1279_v3  ;;  %3286 = vmatpush1.bf16.msra.mxu0 %v6986_v53  ;;  %v1229_v10 = vld [vmem:[#allocation3 + $0xc0] sm:$0xff]  ;;  %v856_v55 = vrot.slane %v852_v16, 6  ;;  %v741_v22 = vsel %vm696_vm3, %v739_v14, %v740_v15  ;;  %v959_v23 = vrot.slane %v955_v19, 2  ;;  %v1060_v24 = vrot.slane %v1056_v20, 4  ;;  %v639_v26 = vld [vmem:[#allocation2 + $0x58] sm:$0x38] }
 0x23b   :  { %3287 = vmatprep.subr.bf16.mxu0 %v6994_v39  ;;  %3238 = vmatprep.subr.bf16.mxu1 %v6997_v2  ;;  %v7009_v18 = vld [vmem:[#allocation12 + $0x434] ss:$8 sps:$4 sm:$0xff]   ;;  %747 = vst [vmem:[#allocation3 + $0x90] sm:$0x38] %v741_v22  ;;  %v643_v56 = vrot.slane %v639_v26, 3  ;;  %v1265_v7 = vpack.c.bf16 %v1229_v10, %v1211_v58 }
 0x23c   :  { %3175 = vmatmul.mubr.bf16.gmra.mxu1 %v1276_v9  ;;  %v1158_v49 = vld [vmem:[#allocation2 + $0x10] sm:$0xe0]  ;;  %860 = vst [vmem:[#allocation3 + $0x158] ss:$-196 sps:$4 sm:$0xc1] %v856_v55  }
 0x23d   :  { %3239 = vmatpush1.bf16.msra.mxu1 %v6995_v8  ;;  %3266 = vmatprep.mubr.bf16.mxu1 %v1263_v1  ;;  %v1162_v29 = vrot.slane %v1158_v49, 6  ;;  %v749_v30 = vld [vmem:[#allocation2 + $0x50] sm:$0x7]  ;;  %v864_v62 = vld [vmem:[#allocation2 + $0x50] sm:$0xe0] }
 0x23e   :  { %3288 = vmatpush1.bf16.msra.mxu0 %v6992_v6  ;;  %3240 = vmatprep.subr.bf16.mxu1 %v7003_v44  ;;  %963 = vst [vmem:[#allocation3 + $0x158] sm:$0xe] %v959_v23  ;;  %1064 = vst [vmem:[#allocation3 + $0x158] sm:$0x70] %v1060_v24  ;;  %v753_v32 = vrot.slane %v749_v30, 5  ;;  %v868_v33 = vrot.slane %v864_v62, 7 }
 0x23f   :  { %3289 = vmatprep.subr.bf16.mxu0 %v7000_v42  ;;  %v965_v34 = vld [vmem:[#allocation2 + $0x40] sm:$0x70]  ;;  %v1066_v35 = vld [vmem:[#allocation2 + $0x10] sm:$0xe]  ;;  %647 = vst [vmem:[#allocation3 + $0xc8] sm:$0x7] %v643_v56 }
 0x240   :  { %v7007_v36 = vld [vmem:[#allocation12 + $0x430] ss:$8 sps:$4 sm:$0xff]   ;;  %1166 = vst [vmem:[#allocation3 + $0x68] ss:$244 sps:$4 sm:$0x83] %v1162_v29   ;;  %v969_v37 = vrot.slane %v965_v34, 3 }
 0x241   :  { %3226 = vmatmul.mubr.bf16.gmra.mxu0 %v1278_v27  ;;  %3241 = vmatpush1.bf16.msra.mxu1 %v7001_v45  ;;  %v1070_v38 = vrot.slane %v1066_v35, 5  ;;  %v1170_v40 = vld [vmem:[#allocation2 + $0x10] sm:$0xc0]  ;;  %v7004_v41 = vld [vmem:[#allocation12 + $0x540] ss:$8 sps:$4 sm:$0xff]  }
 0x242   :  { %3290 = vmatpush1.bf16.msra.mxu0 %v6998_v54  ;;  %3317 = vmatprep.mubr.bf16.mxu0 %v1265_v7  ;;  %v7015_v50 = vld [vmem:[#allocation12 + $0x424] ss:$8 sps:$4 sm:$0xff]   ;;  %757 = vst [vmem:[#allocation3 + $0xc8] sm:$0x38] %v753_v32  ;;  %v1178_v51 = vrot.slane %v1170_v40, 7 }
 0x243   :  { %872 = vst [vmem:[#allocation3 + $0x170] ss:$-164 sps:$4 sm:$0xc1] %v868_v33   ;;  %3291 = vmatprep.subr.bf16.mxu0 %v7006_v17  ;;  %3242 = vmatprep.subr.bf16.mxu1 %v7009_v18  ;;  %v7012_v52 = vld [vmem:[#allocation12 + $0x534] ss:$8 sps:$4 sm:$0xff]  }
 0x244   :  { %973 = vst [vmem:[#allocation3 + $0x170] sm:$0xe] %v969_v37  ;;  %1074 = vst [vmem:[#allocation3 + $0x170] sm:$0x70] %v1070_v38  ;;  %v1173_v47 = vld [vmem:[#allocation2 + $0x28] sm:$0x1] }
 0x245   :  { %v7010_v43 = vld [vmem:[#allocation12 + $0x530] ss:$8 sps:$4 sm:$0xff]   ;;  %1188 = vst [vmem:[#allocation3 + $0x170] sm:$0x80] %v1178_v51  ;;  %v1182_v60 = vrot.slane %v1173_v47, 7  ;;  %3243 = vmatpush1.bf16.msra.mxu1 %v7007_v36 }
 0x246   :  { %v1172_v61 = vld [vmem:[#allocation2 + $0x60] sm:$0x1]  ;;  %v7013_v53 = vld [vmem:[#allocation12 + $0x420] ss:$8 sps:$4 sm:$0xff]   ;;  %3292 = vmatpush1.bf16.msra.mxu0 %v7004_v41  ;;  %3244 = vmatprep.subr.bf16.mxu1 %v7015_v50  ;;  %v7021_v48 = vld [vmem:[#allocation12 + $0x414] ss:$8 sps:$4 sm:$0xff]  }
 0x247   :  { %v7018_v0 = vld [vmem:[#allocation12 + $0x524] ss:$8 sps:$4 sm:$0xff]   ;;  %v1180_v39 = vrot.slane %v1172_v61, 7  ;;  %v1183_v2 = vsel %vm618_vm6, %v1179_v63, %v1182_v60  ;;  %3293 = vmatprep.subr.bf16.mxu0 %v7012_v52  ;;  %v877_v9 = vld [vmem:[#allocation2 + $0x68] sm:$0xc0] }
 0x248   :  { %v650_v3 = vld [vmem:[#allocation2 + $0x18] sm:$0x70]  ;;  %v760_v4 = vld [vmem:[#allocation2 + $0x68] sm:$0xe]  ;;  %1191 = vst [vmem:[#allocation3 + $0xb0] sm:$0x3] %v1183_v2 }
 0x249   :  { %v1181_v5 = vsel %vm618_vm6, %v1178_v51, %v1180_v39  ;;  %v654_v6 = vrot.slane %v650_v3, 4  ;;  %v764_v8 = vrot.slane %v760_v4, 6  ;;  %v879_v11 = vld [vmem:[#allocation2 + $0x48] sm:$0x1]  ;;  %v7019_v42 = vld [vmem:[#allocation12 + $0x410] ss:$8 sps:$4 sm:$0xff]   ;;  %3245 = vmatpush1.bf16.msra.mxu1 %v7013_v53 }
 0x24a   :  { %1190 = vst [vmem:[#allocation3 + $0x8] sm:$0x3] %v1181_v5  ;;  %881 = vst [vmem:[#allocation3 + $0x88] sm:$0xc0] %v877_v9  ;;  %v976_v44 = vld [vmem:[#allocation2 + $0x20] sm:$0xe0]  ;;  %3294 = vmatpush1.bf16.msra.mxu0 %v7010_v43  ;;  %3246 = vmatprep.subr.bf16.mxu1 %v7021_v48 }
 0x24b   :  { %883 = vst [vmem:[#allocation3 + $0x50] sm:$0x1] %v879_v11  ;;  %658 = vst [vmem:[#allocation3 + $0x88] sm:$0x7] %v654_v6  ;;  %v980_v57 = vrot.slane %v976_v44, 4  ;;  %3295 = vmatprep.subr.bf16.mxu0 %v7018_v0  ;;  %v1208_v9 = vld [vmem:[#allocation3 + $0x140] sm:$0xff] }
 0x24c   :  { %768 = vst [vmem:[#allocation3 + $0x88] sm:$0x38] %v764_v8  ;;  %v1077_v63 = vld [vmem:[#allocation2 + $0x38] sm:$0x1c]  ;;  %v1193_v1 = vld [vmem:[#allocation2 + $0x38] sm:$0x80] }
 0x24d   :  { %v7016_v45 = vld [vmem:[#allocation12 + $0x520] ss:$8 sps:$4 sm:$0xff]   ;;  %v7027_v12 = vld [vmem:[#allocation12 + $0x404] ss:$8 sps:$4 sm:$0xff]   ;;  %v1081_v46 = vrot.slane %v1077_v63, 6  ;;  %3247 = vmatpush1.bf16.msra.mxu1 %v7019_v42  ;;  %v1226_v11 = vld [vmem:[#allocation3 + $0x80] sm:$0xff] }
 0x24e   :  { %1197 = vst [vmem:[#allocation3 + $0x50] sm:$0x80] %v1193_v1  ;;  %v7024_v13 = vld [vmem:[#allocation12 + $0x514] ss:$8 sps:$4 sm:$0xff]   ;;  %984 = vst [vmem:[#allocation3 + $0x50] sm:$0xe] %v980_v57  ;;  %3296 = vmatpush1.bf16.msra.mxu0 %v7016_v45  ;;  %3248 = vmatprep.subr.bf16.mxu1 %v7027_v12  ;;  %v1262_v63 = vpack.c.bf16 %v1226_v11, %v1208_v9 }
 0x24f   :  { %1085 = vst [vmem:[#allocation3 + $0x50] sm:$0x70] %v1081_v46  ;;  %v7022_v54 = vld [vmem:[#allocation12 + $0x510] ss:$8 sps:$4 sm:$0xff]   ;;  %v7025_v58 = vld [vmem:[#allocation12 + $0x400] ss:$8 sps:$4 sm:$0xff]   ;;  %3297 = vmatprep.subr.bf16.mxu0 %v7024_v13 }
 0x250   :  { %v7033_v59 = vld [vmem:[#allocation12 + $0x4f4] ss:$8 sps:$4 sm:$0xff]   ;;  %v649_v14 = vld [vmem:[#allocation2 + $0x58] sm:$0x70]  ;;  %v878_v19 = vld [vmem:[#allocation2 + $0x8] sm:$0x1] }
 0x251   :  { %v759_v15 = vld [vmem:[#allocation2 + $0x50] sm:$0xe]  ;;  %v7030_v16 = vld [vmem:[#allocation12 + $0x504] ss:$8 sps:$4 sm:$0xff]   ;;  %v653_v10 = vrot.slane %v649_v14, 4  ;;  %3249 = vmatpush1.bf16.msra.mxu1 %v7025_v58 }
 0x252   :  { %v763_v17 = vrot.slane %v759_v15, 6  ;;  %v876_v18 = vld [vmem:[#allocation2 + $0x50] sm:$0xc0]  ;;  %v7028_v55 = vld [vmem:[#allocation12 + $0x500] ss:$8 sps:$4 sm:$0xff]   ;;  %3298 = vmatpush1.bf16.msra.mxu0 %v7022_v54  ;;  %3250 = vmatprep.subr.bf16.mxu1 %v7033_v59 }
 0x253   :  { %880 = vst [vmem:[#allocation3 + $0x48] sm:$0xc0] %v876_v18  ;;  %v975_v20 = vld [vmem:[#allocation2 + $0x40] sm:$0xe0]  ;;  %v7031_v22 = vld [vmem:[#allocation12 + $0x4f0] ss:$8 sps:$4 sm:$0xff]   ;;  %3299 = vmatprep.subr.bf16.mxu0 %v7030_v16 }
 0x254   :  { %v7039_v23 = vld [vmem:[#allocation12 + $0x4e4] ss:$8 sps:$4 sm:$0xff]   ;;  %657 = vst [vmem:[#allocation3 + $0x48] sm:$0x7] %v653_v10  ;;  %767 = vst [vmem:[#allocation3 + $0x48] sm:$0x38] %v763_v17 }
 0x255   :  { %882 = vst [vmem:[#allocation3 + $0x38] sm:$0x1] %v878_v19  ;;  %v979_v24 = vrot.slane %v975_v20, 4  ;;  %v1076_v49 = vld [vmem:[#allocation2 + $0x10] sm:$0x1c]  ;;  %3251 = vmatpush2.bf16.msra.mxu1 %v7031_v22  ;;  %v1213_v18 = vld [vmem:[#allocation3 + $0xf8] sm:$0xff] }
 0x256   :  { %v1192_v26 = vld [vmem:[#allocation2 + $0x10] sm:$0x80]  ;;  %v1195_v27 = vld [vmem:[#allocation2 + $0x28] sm:$0x3]  ;;  %v1080_v56 = vrot.slane %v1076_v49, 6  ;;  %3300 = vmatpush1.bf16.msra.mxu0 %v7028_v55  ;;  %3252 = vmatprep.subr.bf16.mxu1 %v7039_v23 }
 0x257   :  { %v7036_v29 = vld [vmem:[#allocation12 + $0x5f4] ss:$8 sps:$4 sm:$0xff]   ;;  %983 = vst [vmem:[#allocation3 + $0x38] sm:$0xe] %v979_v24  ;;  %1196 = vst [vmem:[#allocation3 + $0x38] sm:$0x80] %v1192_v26 }
 0x258   :  { %1199 = vst [vmem:[#allocation3] sm:$0x3] %v1195_v27  ;;  %v1194_v30 = vld [vmem:[#allocation2 + $0x60] sm:$0x3]  ;;  %v7037_v62 = vld [vmem:[#allocation12 + $0x4e0] ss:$8 sps:$4 sm:$0xff]   ;;  %3301 = vmatprep.subr.bf16.mxu0 %v7036_v29 }
 0x259   :  { %1198 = vst [vmem:[#allocation3 + $0x188] sm:$0x3] %v1194_v30  ;;  %1084 = vst [vmem:[#allocation3 + $0x38] sm:$0x70] %v1080_v56  ;;  %v7034_v7 = vld [vmem:[#allocation12 + $0x5f0] ss:$8 sps:$4 sm:$0xff]   ;;  %3253 = vmatpush2.bf16.msra.mxu1 %v7037_v62 }
 0x25a   :  { %v7045_v32 = vld [vmem:[#allocation12 + $0x4d4] ss:$8 sps:$4 sm:$0xff]   ;;  %v7042_v33 = vld [vmem:[#allocation12 + $0x5e4] ss:$8 sps:$4 sm:$0xff]   ;;  %v7043_v34 = vld [vmem:[#allocation12 + $0x4d0] ss:$8 sps:$4 sm:$0xff]   ;;  %3302 = vmatpush2.bf16.msra.mxu0 %v7034_v7 }
 0x25b   :  { %v7040_v35 = vld [vmem:[#allocation12 + $0x5e0] ss:$8 sps:$4 sm:$0xff]   ;;  %3254 = vmatprep.subr.bf16.mxu1 %v7045_v32  ;;  %v7051_v36 = vld [vmem:[#allocation12 + $0x4c4] ss:$8 sps:$4 sm:$0xff]   ;;  %3303 = vmatprep.subr.bf16.mxu0 %v7042_v33  ;;  %v7048_v37 = vld [vmem:[#allocation12 + $0x5d4] ss:$8 sps:$4 sm:$0xff]  }
 0x25c   :  { %v7049_v38 = vld [vmem:[#allocation12 + $0x4c0] ss:$8 sps:$4 sm:$0xff]   ;;  %v7046_v40 = vld [vmem:[#allocation12 + $0x5d0] ss:$8 sps:$4 sm:$0xff]   ;;  %v7057_v41 = vld [vmem:[#allocation12 + $0x4b4] ss:$8 sps:$4 sm:$0xff]  }
 0x25d   :  { %3255 = vmatpush2.bf16.msra.mxu1 %v7043_v34  ;;  %v7054_v50 = vld [vmem:[#allocation12 + $0x5c4] ss:$8 sps:$4 sm:$0xff]   ;;  %v7055_v51 = vld [vmem:[#allocation12 + $0x4b0] ss:$8 sps:$4 sm:$0xff]   ;;  %v7052_v52 = vld [vmem:[#allocation12 + $0x5c0] ss:$8 sps:$4 sm:$0xff]  }
 0x25e   :  { %3304 = vmatpush2.bf16.msra.mxu0 %v7040_v35  ;;  %3256 = vmatprep.subr.bf16.mxu1 %v7051_v36  ;;  %v7063_v47 = vld [vmem:[#allocation12 + $0x4a4] ss:$8 sps:$4 sm:$0xff]   ;;  %v7060_v43 = vld [vmem:[#allocation12 + $0x5b4] ss:$8 sps:$4 sm:$0xff]   ;;  %v7061_v60 = vld [vmem:[#allocation12 + $0x4a0] ss:$8 sps:$4 sm:$0xff]  }
 0x25f   :  { %3305 = vmatprep.subr.bf16.mxu0 %v7048_v37  ;;  %v7058_v61 = vld [vmem:[#allocation12 + $0x5b0] ss:$8 sps:$4 sm:$0xff]   ;;  %v7069_v53 = vld [vmem:[#allocation12 + $0x494] ss:$8 sps:$4 sm:$0xff]   ;;  %v7066_v0 = vld [vmem:[#allocation12 + $0x5a4] ss:$8 sps:$4 sm:$0xff]  }
 0x260   :  { %v7067_v39 = vld [vmem:[#allocation12 + $0x490] ss:$8 sps:$4 sm:$0xff]   ;;  %v7064_v48 = vld [vmem:[#allocation12 + $0x5a0] ss:$8 sps:$4 sm:$0xff]   ;;  %v7075_v2 = vld [vmem:[#allocation12 + $0x484] ss:$8 sps:$4 sm:$0xff]  }
 0x261   :  { %3257 = vmatpush2.bf16.msra.mxu1 %v7049_v38  ;;  %v7072_v3 = vld [vmem:[#allocation12 + $0x594] ss:$8 sps:$4 sm:$0xff]   ;;  %v7073_v4 = vld [vmem:[#allocation12 + $0x480] ss:$8 sps:$4 sm:$0xff]   ;;  %v7070_v5 = vld [vmem:[#allocation12 + $0x590] ss:$8 sps:$4 sm:$0xff]  }
 0x262   :  { %3306 = vmatpush2.bf16.msra.mxu0 %v7046_v40  ;;  %3258 = vmatprep.subr.bf16.mxu1 %v7057_v41  ;;  %v7081_v6 = vld [vmem:[#allocation12 + $0x674] ss:$8 sps:$4 sm:$0xff]   ;;  %v7078_v8 = vld [vmem:[#allocation12 + $0x584] ss:$8 sps:$4 sm:$0xff]   ;;  %v7079_v44 = vld [vmem:[#allocation12 + $0x670] ss:$8 sps:$4 sm:$0xff]  }
 0x263   :  { %3307 = vmatprep.subr.bf16.mxu0 %v7054_v50  ;;  %v1245_v42 = vld [vmem:[#allocation3 + $0x98] sm:$0x3]  ;;  %v7076_v57 = vld [vmem:[#allocation12 + $0x580] ss:$8 sps:$4 sm:$0xff]   ;;  %v7084_v45 = vld [vmem:[#allocation12 + $0x774] ss:$8 sps:$4 sm:$0xff]  }
 0x264   :  { %v7087_v1 = vld [vmem:[#allocation12 + $0x664] ss:$8 sps:$4 sm:$0xff]   ;;  %v1281_v12 = vpack.c.bf16 %v1245_v42, %v1245_v42  ;;  %v1210_v46 = vld [vmem:[#allocation3 + $0x100] sm:$0xff]  ;;  %v7085_v58 = vld [vmem:[#allocation12 + $0x660] ss:$8 sps:$4 sm:$0xff]  }
 0x265   :  { %3259 = vmatpush2.bf16.msra.mxu1 %v7055_v51  ;;  %v1228_v13 = vld [vmem:[#allocation3 + $0x40] sm:$0xff]  ;;  %v1247_v54 = vld [vmem:[#allocation3 + $0x130] sm:$0x3]  ;;  %v1244_v16 = vld [vmem:[#allocation3 + $0x138] sm:$0x3] }
 0x266   :  { %3308 = vmatpush2.bf16.msra.mxu0 %v7052_v52  ;;  %3260 = vmatprep.subr.bf16.mxu1 %v7063_v47  ;;  %v7082_v59 = vld [vmem:[#allocation12 + $0x770] ss:$8 sps:$4 sm:$0xff]   ;;  %v1264_v14 = vpack.c.bf16 %v1228_v13, %v1210_v46  ;;  %v7090_v15 = vld [vmem:[#allocation12 + $0x764] ss:$8 sps:$4 sm:$0xff]   ;;  %v7093_v10 = vld [vmem:[#allocation12 + $0x654] ss:$8 sps:$4 sm:$0xff]   ;;  %v1283_v17 = vpack.c.bf16 %v1247_v54, %v1247_v54  ;;  %v1280_v22 = vpack.c.bf16 %v1244_v16, %v1244_v16 }
 0x267   :  { %3309 = vmatprep.subr.bf16.mxu0 %v7060_v43  ;;  %v1231_v55 = vld [vmem:[#allocation3 + $0x20] sm:$0xff]  ;;  %v7088_v20 = vld [vmem:[#allocation12 + $0x760] ss:$8 sps:$4 sm:$0xff]   ;;  %v7099_v23 = vld [vmem:[#allocation12 + $0x644] ss:$8 sps:$4 sm:$0xff]  }
 0x268   :  { %v7091_v19 = vld [vmem:[#allocation12 + $0x650] ss:$8 sps:$4 sm:$0xff]   ;;  %v7096_v24 = vld [vmem:[#allocation12 + $0x754] ss:$8 sps:$4 sm:$0xff]   ;;  %v1267_v49 = vpack.c.bf16 %v1231_v55, %v1213_v18  ;;  %v1233_v29 = vld [vmem:[#allocation3 + $0x30] sm:$0xff] }
 0x269   :  { %3261 = vmatpush2.bf16.msra.mxu1 %v7061_v60  ;;  %v1246_v26 = vld [vmem:[#allocation3 + $0x128] sm:$0x3]  ;;  %v1215_v27 = vld [vmem:[#allocation3 + $0x178] sm:$0xff]  ;;  %v7097_v56 = vld [vmem:[#allocation12 + $0x640] ss:$8 sps:$4 sm:$0xff]  }
 0x26a   :  { %3310 = vmatpush2.bf16.msra.mxu0 %v7058_v61  ;;  %3262 = vmatprep.subr.bf16.mxu1 %v7069_v53  ;;  %v7094_v30 = vld [vmem:[#allocation12 + $0x750] ss:$8 sps:$4 sm:$0xff]   ;;  %v1282_v62 = vpack.c.bf16 %v1246_v26, %v1246_v26  ;;  %v7102_v7 = vld [vmem:[#allocation12 + $0x744] ss:$8 sps:$4 sm:$0xff]   ;;  %v7105_v32 = vld [vmem:[#allocation12 + $0x634] ss:$8 sps:$4 sm:$0xff]   ;;  %v1269_v33 = vpack.c.bf16 %v1233_v29, %v1215_v27 }
 0x26b   :  { %3311 = vmatprep.subr.bf16.mxu0 %v7066_v0  ;;  %v7103_v34 = vld [vmem:[#allocation12 + $0x630] ss:$8 sps:$4 sm:$0xff]   ;;  %v7100_v35 = vld [vmem:[#allocation12 + $0x740] ss:$8 sps:$4 sm:$0xff]   ;;  %v7111_v36 = vld [vmem:[#allocation12 + $0x624] ss:$8 sps:$4 sm:$0xff]  }
 0x26c   :  { %v7108_v37 = vld [vmem:[#allocation12 + $0x734] ss:$8 sps:$4 sm:$0xff]   ;;  %v7109_v38 = vld [vmem:[#allocation12 + $0x620] ss:$8 sps:$4 sm:$0xff]   ;;  %v7106_v40 = vld [vmem:[#allocation12 + $0x730] ss:$8 sps:$4 sm:$0xff]  }
 0x26d   :  { %3263 = vmatpush2.bf16.msra.mxu1 %v7067_v39  ;;  %v7117_v41 = vld [vmem:[#allocation12 + $0x614] ss:$8 sps:$4 sm:$0xff]   ;;  %v7114_v50 = vld [vmem:[#allocation12 + $0x724] ss:$8 sps:$4 sm:$0xff]   ;;  %v7115_v51 = vld [vmem:[#allocation12 + $0x610] ss:$8 sps:$4 sm:$0xff]  }
 0x26e   :  { %3312 = vmatpush2.bf16.msra.mxu0 %v7064_v48  ;;  %3264 = vmatprep.subr.bf16.mxu1 %v7075_v2  ;;  %v7112_v52 = vld [vmem:[#allocation12 + $0x720] ss:$8 sps:$4 sm:$0xff]   ;;  %v7123_v47 = vld [vmem:[#allocation12 + $0x604] ss:$8 sps:$4 sm:$0xff]   ;;  %v7120_v43 = vld [vmem:[#allocation12 + $0x714] ss:$8 sps:$4 sm:$0xff]  }
 0x26f   :  { %3313 = vmatprep.subr.bf16.mxu0 %v7072_v3  ;;  %v7121_v60 = vld [vmem:[#allocation12 + $0x600] ss:$8 sps:$4 sm:$0xff]   ;;  %v7118_v61 = vld [vmem:[#allocation12 + $0x710] ss:$8 sps:$4 sm:$0xff]   ;;  %v7129_v53 = vld [vmem:[#allocation12 + $0x6f4] ss:$8 sps:$4 sm:$0xff]  }
 0x270   :  { %v7126_v0 = vld [vmem:[#allocation12 + $0x704] ss:$8 sps:$4 sm:$0xff]   ;;  %v7127_v39 = vld [vmem:[#allocation12 + $0x6f0] ss:$8 sps:$4 sm:$0xff]   ;;  %v7124_v48 = vld [vmem:[#allocation12 + $0x700] ss:$8 sps:$4 sm:$0xff]  }
 0x271   :  { %3265 = vmatpush2.bf16.msra.mxu1 %v7073_v4  ;;  %v7135_v2 = vld [vmem:[#allocation12 + $0x6e4] ss:$8 sps:$4 sm:$0xff]   ;;  %v7132_v3 = vld [vmem:[#allocation12 + $0x7f4] ss:$8 sps:$4 sm:$0xff]   ;;  %v7133_v4 = vld [vmem:[#allocation12 + $0x6e0] ss:$8 sps:$4 sm:$0xff]  }
 0x272   :  { %3314 = vmatpush2.bf16.msra.mxu0 %v7070_v5  ;;  %3336 = vmatprep.subr.bf16.mxu1 %v7081_v6  ;;  %v7130_v5 = vld [vmem:[#allocation12 + $0x7f0] ss:$8 sps:$4 sm:$0xff]   ;;  %v7141_v6 = vld [vmem:[#allocation12 + $0x6d4] ss:$8 sps:$4 sm:$0xff]   ;;  %v7136_v11 = vld [vmem:[#allocation12 + $0x7e0] ss:$8 sps:$4 sm:$0xff]  }
 0x273   :  { %3315 = vmatprep.subr.bf16.mxu0 %v7078_v8  ;;  %v7138_v8 = vld [vmem:[#allocation12 + $0x7e4] ss:$8 sps:$4 sm:$0xff]   ;;  %v7139_v9 = vld [vmem:[#allocation12 + $0x6d0] ss:$8 sps:$4 sm:$0xff]   ;;  %v7148_v46 = vld [vmem:[#allocation12 + $0x7c0] ss:$8 sps:$4 sm:$0xff]  }
 0x274   :  { %3267 = vmatmul.mubr.bf16.vlgmr.msra.gmra.mxu1 %v1262_v63  ;;  %v7147_v42 = vld [vmem:[#allocation12 + $0x6c4] ss:$8 sps:$4 sm:$0xff]   ;;  %v7142_v63 = vld [vmem:[#allocation12 + $0x7d0] ss:$8 sps:$4 sm:$0xff]   ;;  %v7156_v54 = vld [vmem:[#allocation12 + $0x7b4] ss:$8 sps:$4 sm:$0xff]  }
 0x275   :  { %3276 = vmatprep.mubr.bf16.mxu1 %v1281_v12  ;;  %3337 = vmatpush1.bf16.msra.mxu1 %v7079_v44  ;;  %v7144_v44 = vld [vmem:[#allocation12 + $0x7d4] ss:$8 sps:$4 sm:$0xff]   ;;  %v7151_v12 = vld [vmem:[#allocation12 + $0x6b0] ss:$8 sps:$4 sm:$0xff]   ;;  %v7159_v13 = vld [vmem:[#allocation12 + $0x6a4] ss:$8 sps:$4 sm:$0xff]  }
 0x276   :  { %3316 = vmatpush2.bf16.msra.mxu0 %v7076_v57  ;;  %3338 = vmatprep.subr.bf16.mxu1 %v7087_v1  ;;  %v7145_v57 = vld [vmem:[#allocation12 + $0x6c0] ss:$8 sps:$4 sm:$0xff]   ;;  %v7153_v1 = vld [vmem:[#allocation12 + $0x6b4] ss:$8 sps:$4 sm:$0xff]   ;;  %v7163_v16 = vld [vmem:[#allocation12 + $0x690] ss:$8 sps:$4 sm:$0xff]  }
 0x277   :  { %3387 = vmatprep.subr.bf16.mxu0 %v7084_v45  ;;  %v7150_v45 = vld [vmem:[#allocation12 + $0x7c4] ss:$8 sps:$4 sm:$0xff]   ;;  %v7168_v18 = vld [vmem:[#allocation12 + $0x794] ss:$8 sps:$4 sm:$0xff]   ;;  %v7169_v55 = vld [vmem:[#allocation12 + $0x680] ss:$8 sps:$4 sm:$0xff]  }
 0x278   :  { %v1249_v26 = vld [vmem:[#allocation3 + $0xf0] sm:$0x3]  ;;  %v7175_v27 = vld [vmem:[#allocation12 + $0x870] ss:$8 sps:$4 sm:$0xff]   ;;  %v7172_v29 = vld [vmem:[#allocation12 + $0x780] ss:$8 sps:$4 sm:$0xff]  }
 0x279   :  { %3318 = vmatmul.mubr.bf16.vlgmr.msra.gmra.mxu0 %v1264_v14  ;;  %3339 = vmatpush1.bf16.msra.mxu1 %v7085_v58  ;;  %v7157_v58 = vld [vmem:[#allocation12 + $0x6a0] ss:$8 sps:$4 sm:$0xff]   ;;  %v7165_v14 = vld [vmem:[#allocation12 + $0x694] ss:$8 sps:$4 sm:$0xff]  }
 0x27a   :  { %3327 = vmatprep.mubr.bf16.mxu0 %v1283_v17  ;;  %3388 = vmatpush1.bf16.msra.mxu0 %v7082_v59  ;;  %v7154_v59 = vld [vmem:[#allocation12 + $0x7b0] ss:$8 sps:$4 sm:$0xff]   ;;  %v7171_v17 = vld [vmem:[#allocation12 + $0x684] ss:$8 sps:$4 sm:$0xff]  }
 0x27b   :  { %3389 = vmatprep.subr.bf16.mxu0 %v7090_v15  ;;  %3340 = vmatprep.subr.bf16.mxu1 %v7093_v10  ;;  %v7162_v15 = vld [vmem:[#allocation12 + $0x7a4] ss:$8 sps:$4 sm:$0xff]   ;;  %v7160_v10 = vld [vmem:[#allocation12 + $0x7a0] ss:$8 sps:$4 sm:$0xff]  }
 0x27c   :  { %3277 = vmatmul.mubr.bf16.gmra.mxu1 %v1280_v22  ;;  %v7177_v22 = vld [vmem:[#allocation12 + $0x874] ss:$8 sps:$4 sm:$0xff]  }
 0x27d   :  { %3341 = vmatpush1.bf16.msra.mxu1 %v7091_v19  ;;  %3368 = vmatprep.mubr.bf16.mxu1 %v1267_v49  ;;  %v7166_v19 = vld [vmem:[#allocation12 + $0x790] ss:$8 sps:$4 sm:$0xff]   ;;  %v1578_v49 = vld [vmem:[#allocation14] sm:$0x3] }
 0x27e   :  { %3390 = vmatpush1.bf16.msra.mxu0 %v7088_v20  ;;  %3342 = vmatprep.subr.bf16.mxu1 %v7099_v23  ;;  %v7174_v20 = vld [vmem:[#allocation12 + $0x784] ss:$8 sps:$4 sm:$0xff]  }
 0x27f   :  { %3391 = vmatprep.subr.bf16.mxu0 %v7096_v24  ;;  %v1212_v23 = vld [vmem:[#allocation3 + $0x90] sm:$0xff]  ;;  %v1230_v24 = vld [vmem:[#allocation3 + $0x158] sm:$0xff] }
 0x281   :  { %3328 = vmatmul.mubr.bf16.gmra.mxu0 %v1282_v62  ;;  %3343 = vmatpush1.bf16.msra.mxu1 %v7097_v56  ;;  %v1266_v56 = vpack.c.bf16 %v1230_v24, %v1212_v23  ;;  %v7180_v62 = vld [vmem:[#allocation12 + $0x864] ss:$8 sps:$4 sm:$0xff]   ;;  %v7193_v24 = vld [vmem:[#allocation12 + $0x810] ss:$8 sps:$4 sm:$0xff]  }
 0x282   :  { %3392 = vmatpush1.bf16.msra.mxu0 %v7094_v30  ;;  %3419 = vmatprep.mubr.bf16.mxu0 %v1269_v33  ;;  %v1583_v30 = vrot.slane %v1578_v49, %v8100_v28  ;;  %v1232_v33 = vld [vmem:[#allocation3 + $0x170] sm:$0xff] }
 0x283   :  { %3393 = vmatprep.subr.bf16.mxu0 %v7102_v7  ;;  %3344 = vmatprep.subr.bf16.mxu1 %v7105_v32  ;;  %v1285_v7 = vpack.c.bf16 %v1249_v26, %v1249_v26  ;;  %v1214_v32 = vld [vmem:[#allocation3 + $0xc8] sm:$0xff] }
 0x284   :  { %v7196_v26 = vld [vmem:[#allocation12 + $0x800] ss:$8 sps:$4 sm:$0xff]  }
 0x285   :  { %3345 = vmatpush1.bf16.msra.mxu1 %v7103_v34 }
 0x286   :  { %3394 = vmatpush1.bf16.msra.mxu0 %v7100_v35  ;;  %3346 = vmatprep.subr.bf16.mxu1 %v7111_v36  ;;  %v1587_v35 = vrot.slane %v1578_v49, %v8103_v31  ;;  %v1251_v36 = vld [vmem:[#allocation3 + $0xb0] sm:$0x3] }
 0x287   :  { %3395 = vmatprep.subr.bf16.mxu0 %v7108_v37  ;;  %v7178_v37 = vld [vmem:[#allocation12 + $0x860] ss:$8 sps:$4 sm:$0xff]   ;;  %v7198_v49 = vld [vmem:[#allocation12 + $0x804] ss:$8 sps:$4 sm:$0xff]  }
 0x289   :  { %3347 = vmatpush1.bf16.msra.mxu1 %v7109_v38 }
 0x28a   :  { %3396 = vmatpush1.bf16.msra.mxu0 %v7106_v40  ;;  %3348 = vmatprep.subr.bf16.mxu1 %v7117_v41  ;;  %v7183_v41 = vld [vmem:[#allocation12 + $0x854] ss:$8 sps:$4 sm:$0xff]  }
 0x28b   :  { %3397 = vmatprep.subr.bf16.mxu0 %v7114_v50  ;;  %v1268_v50 = vpack.c.bf16 %v1232_v33, %v1214_v32  ;;  %v7210_v32 = vld [vmem:[#allocation12 + $0x8c4] ss:$8 sps:$4 sm:$0xff]   ;;  %v7208_v33 = vld [vmem:[#allocation12 + $0x8c0] ss:$8 sps:$4 sm:$0xff]  }
 0x28d   :  { %3349 = vmatpush1.bf16.msra.mxu1 %v7115_v51  ;;  %v1248_v51 = vld [vmem:[#allocation3 + $0x68] sm:$0x3] }
 0x28e   :  { %3398 = vmatpush1.bf16.msra.mxu0 %v7112_v52  ;;  %3350 = vmatprep.subr.bf16.mxu1 %v7123_v47  ;;  %v1287_v52 = vpack.c.bf16 %v1251_v36, %v1251_v36  ;;  %v7216_v36 = vld [vmem:[#allocation12 + $0x8a4] ss:$8 sps:$4 sm:$0xff]  }
 0x28f   :  { %3399 = vmatprep.subr.bf16.mxu0 %v7120_v43 }
 0x291   :  { %3351 = vmatpush1.bf16.msra.mxu1 %v7121_v60  ;;  %v1217_v60 = vld [vmem:[#allocation3 + $0x88] sm:$0xff] }
 0x292   :  { %3400 = vmatpush1.bf16.msra.mxu0 %v7118_v61  ;;  %3352 = vmatprep.subr.bf16.mxu1 %v7129_v53  ;;  %v1235_v61 = vld [vmem:[#allocation3 + $0x50] sm:$0xff] }
 0x293   :  { %3401 = vmatprep.subr.bf16.mxu0 %v7126_v0  ;;  %v7181_v0 = vld [vmem:[#allocation12 + $0x850] ss:$8 sps:$4 sm:$0xff]  }
 0x295   :  { %3353 = vmatpush2.bf16.msra.mxu1 %v7127_v39 }
 0x296   :  { %3402 = vmatpush1.bf16.msra.mxu0 %v7124_v48  ;;  %3354 = vmatprep.subr.bf16.mxu1 %v7135_v2 }
 0x297   :  { %3403 = vmatprep.subr.bf16.mxu0 %v7132_v3  ;;  %v1284_v3 = vpack.c.bf16 %v1248_v51, %v1248_v51  ;;  %v1216_v51 = vld [vmem:[#allocation3 + $0x48] sm:$0xff] }
 0x299   :  { %3355 = vmatpush2.bf16.msra.mxu1 %v7133_v4  ;;  %v7186_v4 = vld [vmem:[#allocation12 + $0x844] ss:$8 sps:$4 sm:$0xff]  }
 0x29a   :  { %3404 = vmatpush2.bf16.msra.mxu0 %v7130_v5  ;;  %3356 = vmatprep.subr.bf16.mxu1 %v7141_v6  ;;  %v1271_v6 = vpack.c.bf16 %v1235_v61, %v1217_v60 }
 0x29b   :  { %3405 = vmatprep.subr.bf16.mxu0 %v7138_v8 }
 0x29d   :  { %3357 = vmatpush2.bf16.msra.mxu1 %v7139_v9  ;;  %v3064_v34 = vpop.f32.mrf.mxu1 }
 0x29e   :  { %3406 = vmatpush2.bf16.msra.mxu0 %v7136_v11  ;;  %3358 = vmatprep.subr.bf16.mxu1 %v7147_v42  ;;  %v3065_v38 = vadd.f32 %v3064_v34, %v1583_v30  ;;  %v1250_v11 = vld [vmem:[#allocation3 + $0x8] sm:$0x3] }
 0x29f   :  { %3407 = vmatprep.subr.bf16.mxu0 %v7144_v44  ;;  %v3066_v40 = vpop.f32.mrf.mxu1  ;;  %v7213_v34 = vld [vmem:[#allocation12 + $0x8b4] ss:$8 sps:$4 sm:$0xff]  }
 0x2a0   :  { %v3067_v47 = vadd.f32 %v3066_v40, %v1587_v35  ;;  %v7217_v40 = vld [vmem:[#allocation12 + $0x890] ss:$8 sps:$4 sm:$0xff]  }
 0x2a1   :  { %3359 = vmatpush2.bf16.msra.mxu1 %v7145_v57  ;;  %v3068_v43 = vpop.f32.mrf.mxu1  ;;  %v7184_v57 = vld [vmem:[#allocation12 + $0x840] ss:$8 sps:$4 sm:$0xff]  }
 0x2a2   :  { %3408 = vmatpush2.bf16.msra.mxu0 %v7142_v63  ;;  %3360 = vmatprep.subr.bf16.mxu1 %v7153_v1  ;;  %v3069_v48 = vadd.f32 %v3068_v43, %v1583_v30 }
 0x2a3   :  { %3409 = vmatprep.subr.bf16.mxu0 %v7150_v45  ;;  %v3070_v2 = vpop.f32.mrf.mxu1 }
 0x2a4   :  { %v3071_v9 = vadd.f32 %v3070_v2, %v1587_v35  ;;  %v1252_v2 = vld [vmem:[#allocation3 + $0x188] sm:$0x3] }
 0x2a5   :  { %3361 = vmatpush2.bf16.msra.mxu1 %v7151_v12  ;;  %v7189_v12 = vld [vmem:[#allocation12 + $0x834] ss:$8 sps:$4 sm:$0xff]  }
 0x2a6   :  { %3410 = vmatpush2.bf16.msra.mxu0 %v7148_v46  ;;  %3362 = vmatprep.subr.bf16.mxu1 %v7159_v13  ;;  %v1286_v13 = vpack.c.bf16 %v1250_v11, %v1250_v11  ;;  %v1288_v11 = vpack.c.bf16 %v1252_v2, %v1252_v2 }
 0x2a7   :  { %3411 = vmatprep.subr.bf16.mxu0 %v7156_v54 }
 0x2a9   :  { %3363 = vmatpush2.bf16.msra.mxu1 %v7157_v58 }
 0x2aa   :  { %3412 = vmatpush2.bf16.msra.mxu0 %v7154_v59  ;;  %3364 = vmatprep.subr.bf16.mxu1 %v7165_v14  ;;  %v3115_v53 = vpop.f32.mrf.mxu0 }
 0x2ab   :  { %3413 = vmatprep.subr.bf16.mxu0 %v7162_v15  ;;  %v8237_v39 = vadd.f32 %v3115_v53, %v3065_v38  ;;  %v7187_v15 = vld [vmem:[#allocation12 + $0x830] ss:$8 sps:$4 sm:$0xff]   ;;  %v7219_v38 = vld [vmem:[#allocation12 + $0x894] ss:$8 sps:$4 sm:$0xff]  }
 0x2ac   :  { %v3117_v5 = vpop.f32.mrf.mxu0  ;;  %v3074_v42 = vpop.f32.mrf.mxu1 }
 0x2ad   :  { %3365 = vmatpush2.bf16.msra.mxu1 %v7163_v16  ;;  %v8239_v8 = vadd.f32 %v3117_v5, %v3067_v47  ;;  %v3075_v1 = vadd.f32 %v3074_v42, %v1583_v30  ;;  %v7202_v30 = vld [vmem:[#allocation12 + $0x8e0] ss:$8 sps:$4 sm:$0xff]   ;;  %v1253_v47 = vld [vmem:[#allocation3] sm:$0x3] }
 0x2ae   :  { %3414 = vmatpush2.bf16.msra.mxu0 %v7160_v10  ;;  %3366 = vmatprep.subr.bf16.mxu1 %v7171_v17  ;;  %v3119_v44 = vpop.f32.mrf.mxu0  ;;  %v3076_v45 = vpop.f32.mrf.mxu1  ;;  %v7192_v17 = vld [vmem:[#allocation12 + $0x824] ss:$8 sps:$4 sm:$0xff]   ;;  %v1289_v60 = vpack.c.bf16 %v1253_v47, %v1253_v47 }
 0x2af   :  { %3415 = vmatprep.subr.bf16.mxu0 %v7168_v18  ;;  %v8241_v63 = vadd.f32 %v3119_v44, %v3069_v48  ;;  %v3077_v58 = vadd.f32 %v3076_v45, %v1587_v35  ;;  %v7211_v35 = vld [vmem:[#allocation12 + $0x8b0] ss:$8 sps:$4 sm:$0xff]  }
 0x2b0   :  { %v3121_v46 = vpop.f32.mrf.mxu0  ;;  %v3078_v59 = vpop.f32.mrf.mxu1 }
 0x2b1   :  { %3367 = vmatpush2.bf16.msra.mxu1 %v7169_v55  ;;  %v8243_v54 = vadd.f32 %v3121_v46, %v3071_v9 }
 0x2b2   :  { %3416 = vmatpush2.bf16.msra.mxu0 %v7166_v19  ;;  %3438 = vmatprep.subr.bf16.mxu1 %v7177_v22  ;;  %v3125_v14 = vpop.f32.mrf.mxu0  ;;  %v3079_v10 = vpop.f32.mrf.mxu1  ;;  %v7195_v22 = vld [vmem:[#allocation12 + $0x814] ss:$8 sps:$4 sm:$0xff]  }
 0x2b3   :  { %3417 = vmatprep.subr.bf16.mxu0 %v7174_v20  ;;  %v8245_v16 = vadd.f32 %v3125_v14, %v3075_v1  ;;  %v7190_v20 = vld [vmem:[#allocation12 + $0x820] ss:$8 sps:$4 sm:$0xff]  }
 0x2b4   :  { %3369 = vmatmul.mubr.bf16.vlgmr.msra.gmra.mxu1 %v1266_v56  ;;  %v3127_v18 = vpop.f32.mrf.mxu0  ;;  %v7204_v56 = vld [vmem:[#allocation12 + $0x8e4] ss:$8 sps:$4 sm:$0xff]  }
 0x2b5   :  { %3378 = vmatprep.mubr.bf16.mxu1 %v1285_v7  ;;  %3439 = vmatpush1.bf16.msra.mxu1 %v7175_v27  ;;  %v8247_v55 = vadd.f32 %v3127_v18, %v3077_v58  ;;  %v7201_v27 = vld [vmem:[#allocation12 + $0x8f4] ss:$8 sps:$4 sm:$0xff]   ;;  %v7205_v7 = vld [vmem:[#allocation12 + $0x8d0] ss:$8 sps:$4 sm:$0xff]  }
 0x2b6   :  { %3418 = vmatpush2.bf16.msra.mxu0 %v7172_v29  ;;  %3440 = vmatprep.subr.bf16.mxu1 %v7180_v62  ;;  %v3129_v19 = vpop.f32.mrf.mxu0  ;;  %v7199_v29 = vld [vmem:[#allocation12 + $0x8f0] ss:$8 sps:$4 sm:$0xff]   ;;  %v7207_v62 = vld [vmem:[#allocation12 + $0x8d4] ss:$8 sps:$4 sm:$0xff]  }
 0x2b8   :  { %v3130_v23 = vpop.f32.mrf.mxu0 }
 0x2b9   :  { %3420 = vmatmul.mubr.bf16.vlgmr.msra.gmra.mxu0 %v1268_v50  ;;  %3441 = vmatpush1.bf16.msra.mxu1 %v7178_v37  ;;  %v7214_v37 = vld [vmem:[#allocation12 + $0x8a0] ss:$8 sps:$4 sm:$0xff]  }
 0x2ba   :  { %3429 = vmatprep.mubr.bf16.mxu0 %v1287_v52  ;;  %3442 = vmatprep.subr.bf16.mxu1 %v7183_v41  ;;  %v7222_v41 = vld [vmem:[#allocation12 + $0x884] ss:$8 sps:$4 sm:$0xff]   ;;  %v7220_v50 = vld [vmem:[#allocation12 + $0x880] ss:$8 sps:$4 sm:$0xff]  }
 0x2bb   :  { %v1234_v52 = vld [vmem:[#allocation3 + $0x38] sm:$0xff] }
 0x2bc   :  { %3379 = vmatmul.mubr.bf16.gmra.mxu1 %v1284_v3  ;;  %v1270_v43 = vpack.c.bf16 %v1234_v52, %v1216_v51 }
 0x2bd   :  { %3443 = vmatpush1.bf16.msra.mxu1 %v7181_v0  ;;  %3470 = vmatprep.mubr.bf16.mxu1 %v1271_v6 }
 0x2be   :  { %3444 = vmatprep.subr.bf16.mxu1 %v7186_v4 }
 0x2c1   :  { %3430 = vmatmul.mubr.bf16.gmra.mxu0 %v1286_v13  ;;  %3445 = vmatpush1.bf16.msra.mxu1 %v7184_v57 }
 0x2c2   :  { %3446 = vmatprep.subr.bf16.mxu1 %v7189_v12 }
 0x2c5   :  { %3447 = vmatpush1.bf16.msra.mxu1 %v7187_v15 }
 0x2c6   :  { %3448 = vmatprep.subr.bf16.mxu1 %v7192_v17 }
 0x2c9   :  { %3449 = vmatpush1.bf16.msra.mxu1 %v7190_v20 }
 0x2ca   :  { %3450 = vmatprep.subr.bf16.mxu1 %v7195_v22 }
 0x2cd   :  { %3451 = vmatpush1.bf16.msra.mxu1 %v7193_v24 }
 0x2ce   :  { %3452 = vmatprep.subr.bf16.mxu1 %v7198_v49 }
 0x2d1   :  { %3453 = vmatpush1.bf16.msra.mxu1 %v7196_v26 }
 0x2d2   :  { %3454 = vmatprep.subr.bf16.mxu1 %v7201_v27 }
 0x2d5   :  { %3455 = vmatpush2.bf16.msra.mxu1 %v7199_v29 }
 0x2d6   :  { %3456 = vmatprep.subr.bf16.mxu1 %v7204_v56 }
 0x2d9   :  { %3457 = vmatpush2.bf16.msra.mxu1 %v7202_v30 }
 0x2da   :  { %3458 = vmatprep.subr.bf16.mxu1 %v7207_v62 }
 0x2dd   :  { %3459 = vmatpush2.bf16.msra.mxu1 %v7205_v7 }
 0x2de   :  { %3460 = vmatprep.subr.bf16.mxu1 %v7210_v32 }
 0x2e1   :  { %3461 = vmatpush2.bf16.msra.mxu1 %v7208_v33 }
 0x2e2   :  { %3462 = vmatprep.subr.bf16.mxu1 %v7213_v34 }
 0x2e5   :  { %3463 = vmatpush2.bf16.msra.mxu1 %v7211_v35 }
 0x2e6   :  { %3464 = vmatprep.subr.bf16.mxu1 %v7216_v36 }
 0x2e9   :  { %3465 = vmatpush2.bf16.msra.mxu1 %v7214_v37 }
 0x2ea   :  { %3466 = vmatprep.subr.bf16.mxu1 %v7219_v38 }
 0x2ed   :  { %3467 = vmatpush2.bf16.msra.mxu1 %v7217_v40 }
 0x2ee   :  { %3468 = vmatprep.subr.bf16.mxu1 %v7222_v41 }
 0x2f1   :  { %3469 = vmatpush2.bf16.msra.mxu1 %v7220_v50 }
 0x2f4   :  { %v3166_v61 = vpop.f32.mrf.mxu1  ;;  %3471 = vmatmul.mubr.bf16.vlgmr.msra.gmra.mxu1 %v1270_v43 }
 0x2f5   :  { %v3167_v53 = vadd.f32 %v3166_v61, %v8237_v39  ;;  %3480 = vmatprep.mubr.bf16.mxu1 %v1289_v60 }
 0x2f6   :  { %v3168_v0 = vpop.f32.mrf.mxu1 }
 0x2f7   :  { %v3169_v48 = vadd.f32 %v3168_v0, %v8239_v8 }
 0x2f8   :  { %v3170_v3 = vpop.f32.mrf.mxu1 }
 0x2f9   :  { %v3217_v4 = vpop.f32.mrf.mxu0  ;;  %v3171_v5 = vadd.f32 %v3170_v3, %v8241_v63 }
 0x2fa   :  { %v3218_v6 = vadd.f32 %v3217_v4, %v3167_v53  ;;  %v3172_v9 = vpop.f32.mrf.mxu1 }
 0x2fb   :  { %v3219_v42 = vpop.f32.mrf.mxu0  ;;  %v3173_v44 = vadd.f32 %v3172_v9, %v8243_v54 }
 0x2fc   :  { %v3220_v57 = vadd.f32 %v3219_v42, %v3169_v48  ;;  %v3176_v1 = vpop.f32.mrf.mxu1  ;;  %3481 = vmatmul.mubr.bf16.gmra.mxu1 %v1288_v11 }
 0x2fd   :  { %v3221_v45 = vpop.f32.mrf.mxu0  ;;  %v3177_v39 = vadd.f32 %v3176_v1, %v8245_v16 }
 0x2fe   :  { %v3222_v12 = vadd.f32 %v3221_v45, %v3171_v5  ;;  %v3178_v46 = vpop.f32.mrf.mxu1  ;;  %v7223_v45 = vld [vmem:[#allocation18 + $0x70] ss:$8 sps:$4 sm:$0xff]  }
 0x2ff   :  { %v3223_v8 = vpop.f32.mrf.mxu0  ;;  %v3179_v13 = vadd.f32 %v3178_v46, %v8247_v55 }
 0x300   :  { %v3224_v58 = vadd.f32 %v3223_v8, %v3173_v44  ;;  %v3180_v59 = vpop.f32.mrf.mxu1  ;;  %v7228_v8 = vld [vmem:[#allocation18 + $0x174] ss:$8 sps:$4 sm:$0xff]  }
 0x301   :  { %v3227_v63 = vpop.f32.mrf.mxu0  ;;  %v7234_v59 = vld [vmem:[#allocation18 + $0x164] ss:$8 sps:$4 sm:$0xff]   ;;  %5577 = vmatprep.subr.bf16.mxu1 %v7228_v8  ;;  %v7297_v8 = vld [vmem:[#allocation18 + $0xb4] ss:$8 sps:$4 sm:$0xff]  }
 0x302   :  { %v3228_v14 = vadd.f32 %v3227_v63, %v3177_v39  ;;  %v3181_v15 = vpop.f32.mrf.mxu1  ;;  %v7225_v39 = vld [vmem:[#allocation18 + $0x74] ss:$8 sps:$4 sm:$0xff]   ;;  %v7229_v63 = vld [vmem:[#allocation18 + $0x60] ss:$8 sps:$4 sm:$0xff]  }
 0x303   :  { %v3229_v10 = vpop.f32.mrf.mxu0  ;;  %5536 = vmatprep.subr.bf16.mxu0 %v7225_v39  ;;  %v7232_v15 = vld [vmem:[#allocation18 + $0x160] ss:$8 sps:$4 sm:$0xff]   ;;  %v7294_v39 = vld [vmem:[#allocation18 + $0x1c4] ss:$8 sps:$4 sm:$0xff]  }
 0x304   :  { %v3230_v17 = vadd.f32 %v3229_v10, %v3179_v13  ;;  %v7231_v13 = vld [vmem:[#allocation18 + $0x64] ss:$8 sps:$4 sm:$0xff]   ;;  %5537 = vmatpush1.bf16.msra.mxu0 %v7223_v45  ;;  %v7237_v10 = vld [vmem:[#allocation18 + $0x54] ss:$8 sps:$4 sm:$0xff]  }
 0x305   :  { %v3231_v18 = vpop.f32.mrf.mxu0  ;;  %5538 = vmatprep.subr.bf16.mxu0 %v7231_v13  ;;  %v7291_v45 = vld [vmem:[#allocation18 + $0xc4] ss:$8 sps:$4 sm:$0xff]   ;;  %v7300_v13 = vld [vmem:[#allocation18 + $0x1b4] ss:$8 sps:$4 sm:$0xff]  }
 0x307   :  { %v3232_v54 = vpop.f32.mrf.mxu0 }
 0x308   :  { %5539 = vmatpush1.bf16.msra.mxu0 %v7229_v63  ;;  %v7235_v54 = vld [vmem:[#allocation18 + $0x50] ss:$8 sps:$4 sm:$0xff]  }
 0x309   :  { %5540 = vmatprep.subr.bf16.mxu0 %v7237_v10  ;;  %v7298_v63 = vld [vmem:[#allocation18 + $0x1b0] ss:$8 sps:$4 sm:$0xff]  }
 0x30c   :  { %5541 = vmatpush1.bf16.msra.mxu0 %v7235_v54  ;;  %v7304_v54 = vld [vmem:[#allocation18 + $0x1a0] ss:$8 sps:$4 sm:$0xff]  }
 0x334   :  { %v3268_v19 = vpop.f32.mrf.mxu1 }
 0x335   :  { %v3269_v20 = vadd.f32 %v3268_v19, %v3218_v6  ;;  %v7238_v19 = vld [vmem:[#allocation18 + $0x150] ss:$8 sps:$4 sm:$0xff]  }
 0x336   :  { %v3270_v22 = vpop.f32.mrf.mxu1 }
 0x337   :  { %v3271_v23 = vadd.f32 %v3270_v22, %v3220_v57  ;;  %v7246_v22 = vld [vmem:[#allocation18 + $0x144] ss:$8 sps:$4 sm:$0xff]  }
 0x338   :  { %v3272_v24 = vpop.f32.mrf.mxu1 }
 0x339   :  { %v3319_v16 = vpop.f32.mrf.mxu0  ;;  %v3273_v49 = vadd.f32 %v3272_v24, %v3222_v12  ;;  %v7226_v12 = vld [vmem:[#allocation18 + $0x170] ss:$8 sps:$4 sm:$0xff]   ;;  %v7244_v24 = vld [vmem:[#allocation18 + $0x140] ss:$8 sps:$4 sm:$0xff]  }
 0x33a   :  { %v3320_v26 = vadd.f32 %v3319_v16, %v3269_v20  ;;  %v3274_v27 = vpop.f32.mrf.mxu1  ;;  %5578 = vmatpush1.bf16.msra.mxu1 %v7226_v12  ;;  %v7243_v20 = vld [vmem:[#allocation18 + $0x44] ss:$8 sps:$4 sm:$0xff]   ;;  %v7249_v16 = vld [vmem:[#allocation18 + $0x34] ss:$8 sps:$4 sm:$0xff]   ;;  %v7289_v12 = vld [vmem:[#allocation18 + $0xc0] ss:$8 sps:$4 sm:$0xff]  }
 0x33b   :  { %v3321_v29 = vpop.f32.mrf.mxu0  ;;  %v3275_v55 = vadd.f32 %v3274_v27, %v3224_v58  ;;  %5579 = vmatprep.subr.bf16.mxu1 %v7234_v59  ;;  %5542 = vmatprep.subr.bf16.mxu0 %v7243_v20  ;;  %v7250_v27 = vld [vmem:[#allocation18 + $0x130] ss:$8 sps:$4 sm:$0xff]  }
 0x33c   :  { %v3322_v56 = vadd.f32 %v3321_v29, %v3271_v23  ;;  %v3278_v30 = vpop.f32.mrf.mxu1  ;;  %v7241_v23 = vld [vmem:[#allocation18 + $0x40] ss:$8 sps:$4 sm:$0xff]   ;;  %v7255_v29 = vld [vmem:[#allocation18 + $0x24] ss:$8 sps:$4 sm:$0xff]   ;;  %v7295_v59 = vld [vmem:[#allocation18 + $0xb0] ss:$8 sps:$4 sm:$0xff]  }
 0x33d   :  { %v3323_v62 = vpop.f32.mrf.mxu0  ;;  %v3279_v7 = vadd.f32 %v3278_v30, %v3228_v14  ;;  %5543 = vmatpush1.bf16.msra.mxu0 %v7241_v23  ;;  %v7256_v30 = vld [vmem:[#allocation18 + $0x120] ss:$8 sps:$4 sm:$0xff]  }
 0x33e   :  { %v8255_v32 = vadd.f32 %v3323_v62, %v3273_v49  ;;  %v3280_v33 = vpop.f32.mrf.mxu1  ;;  %5580 = vmatpush1.bf16.msra.mxu1 %v7232_v15  ;;  %v7252_v49 = vld [vmem:[#allocation18 + $0x134] ss:$8 sps:$4 sm:$0xff]   ;;  %5544 = vmatprep.subr.bf16.mxu0 %v7249_v16  ;;  %v7306_v15 = vld [vmem:[#allocation18 + $0x1a4] ss:$8 sps:$4 sm:$0xff]  }
 0x33f   :  { %v3325_v34 = vpop.f32.mrf.mxu0  ;;  %v3281_v35 = vadd.f32 %v3280_v33, %v3230_v17  ;;  %v7240_v17 = vld [vmem:[#allocation18 + $0x154] ss:$8 sps:$4 sm:$0xff]   ;;  %v7259_v33 = vld [vmem:[#allocation18 + $0x10] ss:$8 sps:$4 sm:$0xff]  }
 0x340   :  { %v3326_v36 = vadd.f32 %v3325_v34, %v3275_v55  ;;  %v3282_v37 = vpop.f32.mrf.mxu1  ;;  %5581 = vmatprep.subr.bf16.mxu1 %v7240_v17  ;;  %v7258_v55 = vld [vmem:[#allocation18 + $0x124] ss:$8 sps:$4 sm:$0xff]   ;;  %v7261_v62 = vld [vmem:[#allocation18 + $0x14] ss:$8 sps:$4 sm:$0xff]   ;;  %v7262_v34 = vld [vmem:[#allocation18 + $0x110] ss:$8 sps:$4 sm:$0xff]  }
 0x341   :  { %v3329_v38 = vpop.f32.mrf.mxu0  ;;  %v7265_v37 = vld [vmem:[#allocation18] ss:$8 sps:$4 sm:$0xff]  }
 0x342   :  { %v8257_v40 = vadd.f32 %v3329_v38, %v3279_v7  ;;  %v3283_v41 = vpop.f32.mrf.mxu1  ;;  %5582 = vmatpush1.bf16.msra.mxu1 %v7238_v19  ;;  %v7264_v7 = vld [vmem:[#allocation18 + $0x114] ss:$8 sps:$4 sm:$0xff]   ;;  %v7268_v38 = vld [vmem:[#allocation18 + $0x100] ss:$8 sps:$4 sm:$0xff]  }
 0x343   :  { %v3331_v50 = vpop.f32.mrf.mxu0  ;;  %5583 = vmatprep.subr.bf16.mxu1 %v7246_v22  ;;  %v7273_v41 = vld [vmem:[#allocation18 + $0xf4] ss:$8 sps:$4 sm:$0xff]  }
 0x344   :  { %v8259_v51 = vadd.f32 %v3331_v50, %v3281_v35  ;;  %v7267_v35 = vld [vmem:[#allocation18 + $0x4] ss:$8 sps:$4 sm:$0xff]   ;;  %v7276_v50 = vld [vmem:[#allocation18 + $0x1f4] ss:$8 sps:$4 sm:$0xff]  }
 0x345   :  { %v3333_v52 = vpop.f32.mrf.mxu0  ;;  %v7309_v19 = vld [vmem:[#allocation18 + $0x94] ss:$8 sps:$4 sm:$0xff]  }
 0x346   :  { %5584 = vmatpush1.bf16.msra.mxu1 %v7244_v24  ;;  %v7271_v52 = vld [vmem:[#allocation18 + $0xf0] ss:$8 sps:$4 sm:$0xff]   ;;  %v7312_v22 = vld [vmem:[#allocation18 + $0x194] ss:$8 sps:$4 sm:$0xff]  }
 0x347   :  { %v3334_v47 = vpop.f32.mrf.mxu0  ;;  %5585 = vmatprep.subr.bf16.mxu1 %v7252_v49  ;;  %v7307_v49 = vld [vmem:[#allocation18 + $0x90] ss:$8 sps:$4 sm:$0xff]  }
 0x348   :  { %v7274_v47 = vld [vmem:[#allocation18 + $0x1f0] ss:$8 sps:$4 sm:$0xff]  }
 0x34a   :  { %5586 = vmatpush1.bf16.msra.mxu1 %v7250_v27 }
 0x34b   :  { %5587 = vmatprep.subr.bf16.mxu1 %v7258_v55  ;;  %v7315_v55 = vld [vmem:[#allocation18 + $0x84] ss:$8 sps:$4 sm:$0xff]  }
 0x34e   :  { %5588 = vmatpush1.bf16.msra.mxu1 %v7256_v30 }
 0x34f   :  { %5589 = vmatprep.subr.bf16.mxu1 %v7264_v7 }
 0x352   :  { %5590 = vmatpush1.bf16.msra.mxu1 %v7262_v34  ;;  %v7316_v34 = vld [vmem:[#allocation18 + $0x180] ss:$8 sps:$4 sm:$0xff]  }
 0x374   :  { %v3370_v43 = vpop.f32.mrf.mxu1 }
 0x375   :  { %v3371_v60 = vadd.f32 %v3370_v43, %v3320_v26  ;;  %v7247_v26 = vld [vmem:[#allocation18 + $0x30] ss:$8 sps:$4 sm:$0xff]   ;;  %v7279_v43 = vld [vmem:[#allocation18 + $0xe4] ss:$8 sps:$4 sm:$0xff]  }
 0x376   :  { %v3372_v61 = vpop.f32.mrf.mxu1  ;;  %5545 = vmatpush1.bf16.msra.mxu0 %v7247_v26 }
 0x377   :  { %v3373_v53 = vadd.f32 %v3372_v61, %v3322_v56  ;;  %v7253_v56 = vld [vmem:[#allocation18 + $0x20] ss:$8 sps:$4 sm:$0xff]   ;;  %5546 = vmatprep.subr.bf16.mxu0 %v7255_v29 }
 0x378   :  { %v8261_v0 = vpop.f32.mrf.mxu1  ;;  %v7277_v61 = vld [vmem:[#allocation18 + $0xe0] ss:$8 sps:$4 sm:$0xff]  }
 0x379   :  { %v3421_v48 = vpop.f32.mrf.mxu0  ;;  %v3375_v10 = vadd.f32 %v8261_v0, %v8255_v32 }
 0x37a   :  { %v8263_v2 = vadd.f32 %v3421_v48, %v3371_v60  ;;  %v3376_v3 = vpop.f32.mrf.mxu1  ;;  %5547 = vmatpush1.bf16.msra.mxu0 %v7253_v56  ;;  %v7282_v60 = vld [vmem:[#allocation18 + $0x1e4] ss:$8 sps:$4 sm:$0xff]   ;;  %v7285_v48 = vld [vmem:[#allocation18 + $0xd4] ss:$8 sps:$4 sm:$0xff]  }
 0x37b   :  { %v3423_v4 = vpop.f32.mrf.mxu0  ;;  %v8265_v5 = vadd.f32 %v3376_v3, %v3326_v36  ;;  %5548 = vmatprep.subr.bf16.mxu0 %v7261_v62  ;;  %v7270_v36 = vld [vmem:[#allocation18 + $0x104] ss:$8 sps:$4 sm:$0xff]   ;;  %v7288_v3 = vld [vmem:[#allocation18 + $0x1d4] ss:$8 sps:$4 sm:$0xff]  }
 0x37c   :  { %v8267_v6 = vadd.f32 %v3423_v4, %v3373_v53  ;;  %v8269_v9 = vpop.f32.mrf.mxu1  ;;  %5591 = vmatprep.subr.bf16.mxu1 %v7270_v36  ;;  %v7280_v53 = vld [vmem:[#allocation18 + $0x1e0] ss:$8 sps:$4 sm:$0xff]   ;;  %v7283_v4 = vld [vmem:[#allocation18 + $0xd0] ss:$8 sps:$4 sm:$0xff]  }
 0x37d   :  { %v8271_v11 = vpop.f32.mrf.mxu0  ;;  %5592 = vmatpush1.bf16.msra.mxu1 %v7268_v38  ;;  %v3381_v24 = vadd.f32 %v8269_v9, %v8257_v40 }
 0x37e   :  { %v8273_v42 = vpop.f32.mrf.mxu1  ;;  %5549 = vmatpush1.bf16.msra.mxu0 %v7259_v33  ;;  %5593 = vmatprep.subr.bf16.mxu1 %v7276_v50  ;;  %v3426_v23 = vadd.f32 %v8271_v11, %v3375_v10  ;;  %v7310_v11 = vld [vmem:[#allocation18 + $0x190] ss:$8 sps:$4 sm:$0xff]  }
 0x37f   :  { %v8275_v44 = vpop.f32.mrf.mxu0  ;;  %5550 = vmatprep.subr.bf16.mxu0 %v7267_v35  ;;  %v3383_v32 = vadd.f32 %v8273_v42, %v8259_v51  ;;  %v7321_v35 = vld [vmem:[#allocation18 + $0x274] ss:$8 sps:$4 sm:$0xff]  }
 0x380   :  { %v3384_v57 = vpop.f32.mrf.mxu1  ;;  %v3428_v26 = vadd.f32 %v8275_v44, %v8265_v5  ;;  %v7313_v5 = vld [vmem:[#allocation18 + $0x80] ss:$8 sps:$4 sm:$0xff]  }
 0x381   :  { %v8277_v1 = vpop.f32.mrf.mxu0  ;;  %5594 = vmatpush2.bf16.msra.mxu1 %v7274_v47  ;;  %v7286_v57 = vld [vmem:[#allocation18 + $0x1d0] ss:$8 sps:$4 sm:$0xff]  }
 0x382   :  { %v3385_v46 = vpop.f32.mrf.mxu1  ;;  %5551 = vmatpush1.bf16.msra.mxu0 %v7265_v37  ;;  %5595 = vmatprep.subr.bf16.mxu1 %v7282_v60  ;;  %v3432_v9 = vadd.f32 %v8277_v1, %v3381_v24  ;;  %v7325_v1 = vld [vmem:[#allocation18 + $0x374] ss:$8 sps:$4 sm:$0xff]  }
 0x383   :  { %v8279_v58 = vpop.f32.mrf.mxu0  ;;  %5552 = vmatprep.subr.bf16.mxu0 %v7273_v41  ;;  %v7292_v46 = vld [vmem:[#allocation18 + $0x1c0] ss:$8 sps:$4 sm:$0xff]  }
 0x384   :  { %v3434_v30 = vadd.f32 %v8279_v58, %v3383_v32 }
 0x385   :  { %v3435_v14 = vpop.f32.mrf.mxu0  ;;  %5596 = vmatpush2.bf16.msra.mxu1 %v7280_v53 }
 0x386   :  { %5553 = vmatpush2.bf16.msra.mxu0 %v7271_v52  ;;  %5597 = vmatprep.subr.bf16.mxu1 %v7288_v3  ;;  %v7303_v14 = vld [vmem:[#allocation18 + $0xa4] ss:$8 sps:$4 sm:$0xff]  }
 0x387   :  { %v3436_v18 = vpop.f32.mrf.mxu0  ;;  %5554 = vmatprep.subr.bf16.mxu0 %v7279_v43 }
 0x388   :  { %v7301_v18 = vld [vmem:[#allocation18 + $0xa0] ss:$8 sps:$4 sm:$0xff]  }
 0x389   :  { %5598 = vmatpush2.bf16.msra.mxu1 %v7286_v57 }
 0x38a   :  { %5555 = vmatpush2.bf16.msra.mxu0 %v7277_v61  ;;  %5599 = vmatprep.subr.bf16.mxu1 %v7294_v39 }
 0x38b   :  { %5556 = vmatprep.subr.bf16.mxu0 %v7285_v48 }
 0x38d   :  { %5600 = vmatpush2.bf16.msra.mxu1 %v7292_v46 }
 0x38e   :  { %5557 = vmatpush2.bf16.msra.mxu0 %v7283_v4  ;;  %5601 = vmatprep.subr.bf16.mxu1 %v7300_v13 }
 0x38f   :  { %5558 = vmatprep.subr.bf16.mxu0 %v7291_v45 }
 0x391   :  { %5602 = vmatpush2.bf16.msra.mxu1 %v7298_v63 }
 0x392   :  { %5559 = vmatpush2.bf16.msra.mxu0 %v7289_v12  ;;  %5603 = vmatprep.subr.bf16.mxu1 %v7306_v15 }
 0x393   :  { %5560 = vmatprep.subr.bf16.mxu0 %v7297_v8 }
 0x395   :  { %5604 = vmatpush2.bf16.msra.mxu1 %v7304_v54 }
 0x396   :  { %5561 = vmatpush2.bf16.msra.mxu0 %v7295_v59  ;;  %5605 = vmatprep.subr.bf16.mxu1 %v7312_v22 }
 0x397   :  { %5562 = vmatprep.subr.bf16.mxu0 %v7303_v14 }
 0x399   :  { %5606 = vmatpush2.bf16.msra.mxu1 %v7310_v11 }
 0x39a   :  { %5563 = vmatpush2.bf16.msra.mxu0 %v7301_v18 }
 0x39b   :  { %5564 = vmatprep.subr.bf16.mxu0 %v7309_v19 }
 0x39e   :  { %5565 = vmatpush2.bf16.msra.mxu0 %v7307_v49 }
 0x39f   :  { %5566 = vmatprep.subr.bf16.mxu0 %v7315_v55 }
 0x3a2   :  { %5567 = vmatpush2.bf16.msra.mxu0 %v7313_v5 }
 0x3a3   :  { %5618 = vmatprep.subr.bf16.mxu0 %v7321_v35 }
 0x3b4   :  { %v3472_v17 = vpop.f32.mrf.mxu1 }
 0x3b5   :  { %v3473_v16 = vadd.f32 %v3472_v17, %v8263_v2  ;;  %v7318_v2 = vld [vmem:[#allocation18 + $0x184] ss:$8 sps:$4 sm:$0xff]  }
 0x3b6   :  { %v3474_v20 = vpop.f32.mrf.mxu1  ;;  %5607 = vmatprep.subr.bf16.mxu1 %v7318_v2 }
 0x3b7   :  { %v8292_v27 = vadd.f32 %v3474_v20, %v8267_v6  ;;  %v3489_v51 = vmax.f32 %v3473_v16, 0.0  ;;  %5608 = vmatpush2.bf16.msra.mxu1 %v7316_v34 }
 0x3b8   :  { %v3476_v0 = vpop.f32.mrf.mxu1  ;;  %5659 = vmatprep.subr.bf16.mxu1 %v7325_v1  ;;  %v3496_v1 = vld [vmem:[#allocation17] sm:$0x3] }
 0x3b9   :  { %v3477_v29 = vadd.f32 %v3476_v0, %v3426_v23  ;;  %v3490_v6 = vmax.f32 %v8292_v27, 0.0 }
 0x3ba   :  { %v3478_v40 = vpop.f32.mrf.mxu1 }
 0x3bb   :  { %v3491_v42 = vmax.f32 %v3477_v29, 0.0  ;;  %v3479_v56 = vadd.f32 %v3478_v40, %v3428_v26 }
 0x3bc   :  { %v3482_v62 = vpop.f32.mrf.mxu1 }
 0x3bd   :  { %v3497_v44 = vadd.f32 %v3491_v42, %v3489_v51  ;;  %v3492_v7 = vmax.f32 %v3479_v56, 0.0  ;;  %v3483_v33 = vadd.f32 %v3482_v62, %v3432_v9 }
 0x3be   :  { %v3484_v36 = vpop.f32.mrf.mxu1 }
 0x3bf   :  { %v3506_v37 = vadd.f32 %v3492_v7, %v3490_v6  ;;  %v3493_v38 = vmax.f32 %v3483_v33, 0.0  ;;  %v3485_v41 = vadd.f32 %v3484_v36, %v3434_v30  ;;  %v3495_v36 = vld [vmem:[#allocation15] sm:$0x3] }
 0x3c0   :  { %v3486_v50 = vpop.f32.mrf.mxu1 }
 0x3c1   :  { %v3498_v58 = vsel %vm395_vm0, %v3493_v38, 0.0  ;;  %v3494_v52 = vmax.f32 %v3485_v41, 0.0 }
 0x3c2   :  { %v3499_v47 = vadd.f32 %v3498_v58, %v3497_v44  ;;  %v3487_v43 = vpop.f32.mrf.mxu1 }
 0x3c3   :  { %v3507_v60 = vsel %vm395_vm0, %v3494_v52, 0.0 }
 0x3c4   :  { %v3500_v61 = vrot.slane %v3499_v47, 4  ;;  %v3508_v53 = vadd.f32 %v3507_v60, %v3506_v37  ;;  %v3564_v37 = vrot.slane %v3495_v36, %v8100_v28 }
 0x3c6   :  { %v3501_v48 = vadd.f32 %v3500_v61, %v3499_v47  ;;  %v3509_v3 = vrot.slane %v3508_v53, 4  ;;  %v3568_v47 = vrot.slane %v3495_v36, %v8103_v31 }
 0x3c8   :  { %v3502_v4 = vrot.slane %v3501_v48, 2  ;;  %v3510_v57 = vadd.f32 %v3509_v3, %v3508_v53 }
 0x3ca   :  { %v3503_v45 = vadd.f32 %v3502_v4, %v3501_v48  ;;  %v3511_v39 = vrot.slane %v3510_v57, 2 }
 0x3cc   :  { %v3504_v12 = vrot.slane %v3503_v45, 1  ;;  %v3512_v46 = vadd.f32 %v3511_v39, %v3510_v57  ;;  %v3585_v57 = vrot.slane %v3496_v1, %v8103_v31 }
 0x3ce   :  { %v3505_v8 = vadd.f32 %v3504_v12, %v3503_v45  ;;  %v3513_v13 = vrot.slane %v3512_v46, 1 }
 0x3d0   :  { %v3516_v59 = vmul.f32 0.055555556, %v3505_v8  ;;  %v3514_v63 = vadd.f32 %v3513_v13, %v3512_v46 }
 0x3d2   :  { %v3518_v14 = vsub.f32 %v3489_v51, %v3516_v59  ;;  %v3520_v15 = vsub.f32 %v3491_v42, %v3516_v59  ;;  %v3522_v10 = vsub.f32 %v3493_v38, %v3516_v59  ;;  %v3517_v17 = vmul.f32 0.055555556, %v3514_v63 }
 0x3d4   :  { %v3524_v18 = vmul.f32 %v3518_v14, %v3518_v14  ;;  %v3526_v54 = vmul.f32 %v3520_v15, %v3520_v15  ;;  %v3528_v19 = vmul.f32 %v3522_v10, %v3522_v10  ;;  %v3519_v20 = vsub.f32 %v3490_v6, %v3517_v17 }
 0x3d5   :  { %v3521_v22 = vsub.f32 %v3492_v7, %v3517_v17  ;;  %v3523_v23 = vsub.f32 %v3494_v52, %v3517_v17  ;;  %v3581_v52 = vrot.slane %v3496_v1, %v8100_v28 }
 0x3d6   :  { %v3530_v24 = vadd.f32 %v3526_v54, %v3524_v18  ;;  %v3531_v16 = vsel %vm395_vm0, %v3528_v19, 0.0  ;;  %v3525_v32 = vmul.f32 %v3519_v20, %v3519_v20 }
 0x3d7   :  { %v3527_v0 = vmul.f32 %v3521_v22, %v3521_v22  ;;  %v3529_v49 = vmul.f32 %v3523_v23, %v3523_v23 }
 0x3d8   :  { %v3532_v26 = vadd.f32 %v3531_v16, %v3530_v24 }
 0x3d9   :  { %v3539_v27 = vadd.f32 %v3527_v0, %v3525_v32  ;;  %v3540_v29 = vsel %vm395_vm0, %v3529_v49, 0.0 }
 0x3da   :  { %v3533_v11 = vrot.slane %v3532_v26, 4 }
 0x3db   :  { %v3541_v55 = vadd.f32 %v3540_v29, %v3539_v27 }
 0x3dc   :  { %v3534_v40 = vadd.f32 %v3533_v11, %v3532_v26 }
 0x3dd   :  { %v3542_v2 = vrot.slane %v3541_v55, 4 }
 0x3de   :  { %v3535_v9 = vrot.slane %v3534_v40, 2 }
 0x3df   :  { %v3543_v51 = vadd.f32 %v3542_v2, %v3541_v55 }
 0x3e0   :  { %v3536_v42 = vadd.f32 %v3535_v9, %v3534_v40 }
 0x3e1   :  { %v3544_v56 = vrot.slane %v3543_v51, 2 }
 0x3e2   :  { %v3537_v30 = vrot.slane %v3536_v42, 1 }
 0x3e3   :  { %v3545_v62 = vadd.f32 %v3544_v56, %v3543_v51 }
 0x3e4   :  { %v3538_v5 = vadd.f32 %v3537_v30, %v3536_v42 }
 0x3e5   :  { %v3546_v6 = vrot.slane %v3545_v62, 1 }
 0x3e6   :  { %v3548_v44 = vmul.f32 0.055555556, %v3538_v5  ;;  %v7319_v5 = vld [vmem:[#allocation18 + $0x270] ss:$8 sps:$4 sm:$0xff]  }
 0x3e7   :  { %v3547_v7 = vadd.f32 %v3546_v6, %v3545_v62 }
 0x3e8   :  { %v3550_v33 = vadd.f32 1e-05, %v3548_v44 }
 0x3e9   :  { %v3549_v34 = vmul.f32 0.055555556, %v3547_v7  ;;  %v7323_v7 = vld [vmem:[#allocation18 + $0x370] ss:$8 sps:$4 sm:$0xff]  }
 0x3ea   :  { %7679 = vrsqrt.f32 %v3550_v33 }
 0x3eb   :  { %v3551_v35 = vadd.f32 1e-05, %v3549_v34 }
 0x3ed   :  { %7681 = vrsqrt.f32 %v3551_v35 }
 0x3f7   :  { %v7680_v38 = vpop.eup %7679 }
 0x3f8   :  { %v3554_v41 = vmul.f32 %v7680_v38, %v3518_v14  ;;  %v3556_v50 = vmul.f32 %v7680_v38, %v3520_v15  ;;  %v3558_v58 = vmul.f32 %v7680_v38, %v3522_v10  ;;  %v7934_v10 = vmov 1983009808   ;;  %v7359_v15 = vld [vmem:[#allocation18 + $0x214] ss:$8 sps:$4 sm:$0xff]  }
 0x3f9   :  { %v3686_v17 = vunpack.c.l.s4 %v7934_v10  ;;  %v7354_v10 = vld [vmem:[#allocation18 + $0x320] ss:$8 sps:$4 sm:$0xff]  }
 0x3fa   :  { %v7682_v43 = vpop.eup %7681  ;;  %v3571_v60 = vmul.f32 %v3564_v37, %v3554_v41  ;;  %v3573_v61 = vmul.f32 %v3564_v37, %v3556_v50  ;;  %v3575_v53 = vmul.f32 %v3564_v37, %v3558_v58  ;;  %v7328_v37 = vld [vmem:[#allocation18 + $0x264] ss:$8 sps:$4 sm:$0xff]  }
 0x3fb   :  { %v3555_v48 = vmul.f32 %v7682_v43, %v3519_v20  ;;  %v3557_v3 = vmul.f32 %v7682_v43, %v3521_v22  ;;  %v3559_v4 = vmul.f32 %v7682_v43, %v3523_v23  ;;  %v3687_v21 = vunpack.c.0.s8 %v3686_v17  ;;  %v7362_v17 = vld [vmem:[#allocation18 + $0x314] ss:$8 sps:$4 sm:$0xff]  }
 0x3fc   :  { %v3588_v45 = vadd.f32 %v3581_v52, %v3571_v60  ;;  %v3590_v39 = vadd.f32 %v3581_v52, %v3573_v61  ;;  %v3592_v12 = vadd.f32 %v3581_v52, %v3575_v53  ;;  %v7332_v52 = vld [vmem:[#allocation18 + $0x364] ss:$8 sps:$4 sm:$0xff]   ;;  %v7335_v60 = vld [vmem:[#allocation18 + $0x254] ss:$8 sps:$4 sm:$0xff]   ;;  %v7330_v61 = vld [vmem:[#allocation18 + $0x360] ss:$8 sps:$4 sm:$0xff]  }
 0x3fd   :  { %v3572_v46 = vmul.f32 %v3568_v47, %v3555_v48  ;;  %v3574_v8 = vmul.f32 %v3568_v47, %v3557_v3  ;;  %v3576_v13 = vmul.f32 %v3568_v47, %v3559_v4  ;;  %v8331_v27 = vsub.s32 %v3687_v21, %v8097_v25  ;;  %v7326_v47 = vld [vmem:[#allocation18 + $0x260] ss:$8 sps:$4 sm:$0xff]   ;;  %v7338_v53 = vld [vmem:[#allocation18 + $0x354] ss:$8 sps:$4 sm:$0xff]   ;;  %v7333_v48 = vld [vmem:[#allocation18 + $0x250] ss:$8 sps:$4 sm:$0xff]  }
 0x3fe   :  { %3594 = vst [vmem:[#allocation4] sm:$0xff] %v3588_v45  ;;  %3596 = vst [vmem:[#allocation4 + $0x10] sm:$0xff] %v3590_v39  ;;  %v7341_v3 = vld [vmem:[#allocation18 + $0x244] ss:$8 sps:$4 sm:$0xff]   ;;  %v7336_v4 = vld [vmem:[#allocation18 + $0x350] ss:$8 sps:$4 sm:$0xff]  }
 0x3ff   :  { %3598 = vst [vmem:[#allocation4 + $0x20] sm:$0x3] %v3592_v12  ;;  %v3589_v59 = vadd.f32 %v3585_v57, %v3572_v46  ;;  %v3591_v63 = vadd.f32 %v3585_v57, %v3574_v8  ;;  %v3593_v14 = vadd.f32 %v3585_v57, %v3576_v13  ;;  %v7344_v57 = vld [vmem:[#allocation18 + $0x344] ss:$8 sps:$4 sm:$0xff]   ;;  %v7339_v45 = vld [vmem:[#allocation18 + $0x240] ss:$8 sps:$4 sm:$0xff]  }
 0x400   :  { %v7347_v39 = vld [vmem:[#allocation18 + $0x234] ss:$8 sps:$4 sm:$0xff]   ;;  %v7342_v12 = vld [vmem:[#allocation18 + $0x340] ss:$8 sps:$4 sm:$0xff]   ;;  %v7345_v8 = vld [vmem:[#allocation18 + $0x230] ss:$8 sps:$4 sm:$0xff]  }
 0x401   :  { %3595 = vst [vmem:[#allocation4 + $0x8] sm:$0xff] %v3589_v59  ;;  %3597 = vst [vmem:[#allocation4 + $0x18] sm:$0xff] %v3591_v63  ;;  %v7350_v46 = vld [vmem:[#allocation18 + $0x334] ss:$8 sps:$4 sm:$0xff]   ;;  %v7353_v13 = vld [vmem:[#allocation18 + $0x224] ss:$8 sps:$4 sm:$0xff]  }
 0x402   :  { %3599 = vst [vmem:[#allocation4 + $0x28] sm:$0x3] %v3593_v14  ;;  %v7348_v59 = vld [vmem:[#allocation18 + $0x330] ss:$8 sps:$4 sm:$0xff]   ;;  %v7356_v63 = vld [vmem:[#allocation18 + $0x324] ss:$8 sps:$4 sm:$0xff]  }
 0x403   :  { %v7351_v14 = vld [vmem:[#allocation18 + $0x220] ss:$8 sps:$4 sm:$0xff]  }
 0x404   :  { %v7363_v21 = vld [vmem:[#allocation18 + $0x200] ss:$8 sps:$4 sm:$0xff]  }
 0x408   :  { %v3600_v18 = vld [vmem:[#allocation4] ss:$8 sm:$0x3]  ;;  %v3607_v54 = vld [vmem:[#allocation4 + $0x1] ss:$8 sm:$0x3] }
 0x409   :  { %3605 = vst.msk [vmem:[#allocation5] ss:$2 sm:$0x3] %vm8306_vm7, %v3600_v18  ;;  %3609 = vst.msk [vmem:[#allocation5 + $0x4] ss:$2 sm:$0x3] %vm8306_vm7, %v3607_v54 }
 0x40a   :  { %v3639_v19 = vld [vmem:[#allocation4 + $0x11] ss:$8 sm:$0x3]  ;;  %v3643_v20 = vld [vmem:[#allocation4 + $0x12] ss:$8 sm:$0x3] }
 0x40b   :  { %3641 = vst.msk [vmem:[#allocation5 + $0x1] ss:$2 sm:$0x3] %vm8306_vm7, %v3639_v19  ;;  %3645 = vst.msk [vmem:[#allocation5 + $0x5] ss:$2 sm:$0x3] %vm8306_vm7, %v3643_v20 }
 0x40c   :  { %v3611_v22 = vld [vmem:[#allocation4 + $0x2] ss:$8 sm:$0x3]  ;;  %v3615_v23 = vld [vmem:[#allocation4 + $0x3] ss:$8 sm:$0x3] }
 0x40d   :  { %3613 = vst.msk [vmem:[#allocation5 + $0x8] ss:$2 sm:$0x3] %vm8306_vm7, %v3611_v22  ;;  %3617 = vst.msk [vmem:[#allocation5 + $0xc] ss:$2 sm:$0x3] %vm8306_vm7, %v3615_v23 }
 0x40e   :  { %v3647_v24 = vld [vmem:[#allocation4 + $0x13] ss:$8 sm:$0x3]  ;;  %v3651_v16 = vld [vmem:[#allocation4 + $0x14] ss:$8 sm:$0x3] }
 0x40f   :  { %3649 = vst.msk [vmem:[#allocation5 + $0x9] ss:$2 sm:$0x3] %vm8306_vm7, %v3647_v24  ;;  %3653 = vst.msk [vmem:[#allocation5 + $0xd] ss:$2 sm:$0x3] %vm8306_vm7, %v3651_v16 }
 0x410   :  { %v3619_v32 = vld [vmem:[#allocation4 + $0x4] ss:$8 sm:$0x3]  ;;  %v3623_v0 = vld [vmem:[#allocation4 + $0x5] ss:$8 sm:$0x3] }
 0x411   :  { %3621 = vst.msk [vmem:[#allocation5 + $0x10] ss:$2 sm:$0x3] %vm8306_vm7, %v3619_v32  ;;  %3625 = vst.msk [vmem:[#allocation5 + $0x14] ss:$2 sm:$0x3] %vm8306_vm7, %v3623_v0 }
 0x412   :  { %v3655_v49 = vld [vmem:[#allocation4 + $0x15] ss:$8 sm:$0x3]  ;;  %v3659_v26 = vld [vmem:[#allocation4 + $0x16] ss:$8 sm:$0x3] }
 0x413   :  { %3657 = vst.msk [vmem:[#allocation5 + $0x11] ss:$2 sm:$0x3] %vm8306_vm7, %v3655_v49  ;;  %3661 = vst.msk [vmem:[#allocation5 + $0x15] ss:$2 sm:$0x3] %vm8306_vm7, %v3659_v26 }
 0x414   :  { %v3674_v29 = vld [vmem:[#allocation5] sm:$0xff]  ;;  %v3627_v11 = vld [vmem:[#allocation4 + $0x6] ss:$8 sm:$0x3]  ;;  %v7366_v23 = vld [vmem:[#allocation18 + $0x300] ss:$8 sps:$4 sm:$0xff]  }
 0x415   :  { %v3691_v55 = vrot.slane %v3674_v29, %v8331_v27  ;;  %v3684_v40 = vcombine.high %v3674_v29, %v3674_v29  ;;  %3629 = vst.msk [vmem:[#allocation5 + $0x18] ss:$2 sm:$0x3] %vm8306_vm7, %v3627_v11  ;;  %v3631_v9 = vld [vmem:[#allocation4 + $0x7] ss:$8 sm:$0x3] }
 0x416   :  { %v3675_v2 = vld [vmem:[#allocation5 + $0x8] sm:$0xff]  ;;  %3633 = vst.msk [vmem:[#allocation5 + $0x1c] ss:$2 sm:$0x3] %vm8306_vm7, %v3631_v9  ;;  %v7365_v54 = vld [vmem:[#allocation18 + $0x204] ss:$8 sps:$4 sm:$0xff]  }
 0x417   :  { %v3699_v51 = vcombine.high %v3691_v55, %v3691_v55  ;;  %v3698_v25 = vrot.slane %v3684_v40, %v8331_v27  ;;  %v8342_v42 = vrot.slane %v3675_v2, %v8331_v27  ;;  %v3701_v56 = vcombine.high %v3675_v2, %v3675_v2  ;;  %v3663_v30 = vld [vmem:[#allocation4 + $0x17] ss:$8 sm:$0x3]  ;;  %v3667_v35 = vld [vmem:[#allocation4 + $0x20] ss:$8 sm:$0x3] }
 0x418   :  { %3665 = vst.msk [vmem:[#allocation5 + $0x19] ss:$2 sm:$0x3] %vm8306_vm7, %v3663_v30  ;;  %v3778_v33 = vpack.c.bf16 %v3691_v55, %v3691_v55  ;;  %v3635_v36 = vld [vmem:[#allocation4 + $0x10] ss:$8 sm:$0x3] }
 0x419   :  { %v3779_v62 = vpack.c.bf16 %v3699_v51, %v3699_v51  ;;  %v3700_v6 = vcombine.high %v3698_v25, %v3698_v25  ;;  %v3716_v44 = vcombine.high %v8342_v42, %v8342_v42  ;;  %v8351_v34 = vrot.slane %v3701_v56, %v8331_v27  ;;  %3669 = vst.msk [vmem:[#allocation5 + $0x1d] ss:$2 sm:$0x3] %vm8306_vm7, %v3667_v35  ;;  %v3671_v38 = vld [vmem:[#allocation4 + $0x21] ss:$8 sm:$0x3] }
 0x41a   :  { %3637 = vst.msk [vmem:[#allocation5 + $0x20] ss:$2 sm:$0x3] %vm8306_vm7, %v3635_v36  ;;  %v3780_v41 = vpack.c.bf16 %v3698_v25, %v3698_v25  ;;  %3673 = vst.msk [vmem:[#allocation5 + $0x21] ss:$2 sm:$0x3] %vm8306_vm7, %v3671_v38 }
 0x41b   :  { %5568 = vmatprep.mubr.bf16.mxu0 %v3779_v62  ;;  %v3781_v1 = vpack.c.bf16 %v3700_v6, %v3700_v6  ;;  %v3783_v50 = vpack.c.bf16 %v3716_v44, %v3716_v44  ;;  %v3717_v58 = vcombine.high %v8351_v34, %v8351_v34  ;;  %v7357_v18 = vld [vmem:[#allocation18 + $0x210] ss:$8 sps:$4 sm:$0xff]   ;;  %v7368_v20 = vld [vmem:[#allocation18 + $0x304] ss:$8 sps:$4 sm:$0xff]   ;;  %v7371_v22 = vld [vmem:[#allocation18 + $0x2f4] ss:$8 sps:$4 sm:$0xff]  }
 0x41c   :  { %5569 = vmatmul.mubr.bf16.vlgmr.msra.gmra.mxu0 %v3778_v33  ;;  %v7360_v19 = vld [vmem:[#allocation18 + $0x310] ss:$8 sps:$4 sm:$0xff]   ;;  %v7374_v24 = vld [vmem:[#allocation18 + $0x3f4] ss:$8 sps:$4 sm:$0xff]   ;;  %v7377_v32 = vld [vmem:[#allocation18 + $0x2e4] ss:$8 sps:$4 sm:$0xff]  }
 0x41d   :  { %5619 = vmatpush1.bf16.msra.mxu0 %v7319_v5  ;;  %5609 = vmatprep.mubr.bf16.mxu1 %v3781_v1  ;;  %v3785_v43 = vpack.c.bf16 %v3717_v58, %v3717_v58  ;;  %v7369_v16 = vld [vmem:[#allocation18 + $0x2f0] ss:$8 sps:$4 sm:$0xff]   ;;  %v7380_v49 = vld [vmem:[#allocation18 + $0x3e4] ss:$8 sps:$4 sm:$0xff]   ;;  %v7375_v26 = vld [vmem:[#allocation18 + $0x2e0] ss:$8 sps:$4 sm:$0xff]  }
 0x41e   :  { %5650 = vmatprep.mubr.bf16.mxu0 %v3783_v50  ;;  %5610 = vmatmul.mubr.bf16.vlgmr.msra.gmra.mxu1 %v3780_v41  ;;  %v7372_v0 = vld [vmem:[#allocation18 + $0x3f0] ss:$8 sps:$4 sm:$0xff]   ;;  %v7383_v29 = vld [vmem:[#allocation18 + $0x2d4] ss:$8 sps:$4 sm:$0xff]   ;;  %v7378_v11 = vld [vmem:[#allocation18 + $0x3e0] ss:$8 sps:$4 sm:$0xff]  }
 0x41f   :  { %5660 = vmatpush1.bf16.msra.mxu1 %v7323_v7  ;;  %5620 = vmatprep.subr.bf16.mxu0 %v7328_v37  ;;  %v7386_v55 = vld [vmem:[#allocation18 + $0x3d4] ss:$8 sps:$4 sm:$0xff]   ;;  %v7381_v40 = vld [vmem:[#allocation18 + $0x2d0] ss:$8 sps:$4 sm:$0xff]   ;;  %v7389_v2 = vld [vmem:[#allocation18 + $0x2c4] ss:$8 sps:$4 sm:$0xff]  }
 0x420   :  { %5691 = vmatprep.mubr.bf16.mxu1 %v3785_v43  ;;  %5661 = vmatprep.subr.bf16.mxu1 %v7332_v52  ;;  %v7384_v9 = vld [vmem:[#allocation18 + $0x3d0] ss:$8 sps:$4 sm:$0xff]   ;;  %v7392_v51 = vld [vmem:[#allocation18 + $0x3c4] ss:$8 sps:$4 sm:$0xff]   ;;  %v7387_v25 = vld [vmem:[#allocation18 + $0x2c0] ss:$8 sps:$4 sm:$0xff]  }
 0x421   :  { %5621 = vmatpush1.bf16.msra.mxu0 %v7326_v47  ;;  %v7395_v56 = vld [vmem:[#allocation18 + $0x2b4] ss:$8 sps:$4 sm:$0xff]   ;;  %v7390_v30 = vld [vmem:[#allocation18 + $0x3c0] ss:$8 sps:$4 sm:$0xff]   ;;  %v7393_v5 = vld [vmem:[#allocation18 + $0x2b0] ss:$8 sps:$4 sm:$0xff]  }
 0x422   :  { %5622 = vmatprep.subr.bf16.mxu0 %v7335_v60  ;;  %v7398_v62 = vld [vmem:[#allocation18 + $0x3b4] ss:$8 sps:$4 sm:$0xff]   ;;  %v7401_v6 = vld [vmem:[#allocation18 + $0x2a4] ss:$8 sps:$4 sm:$0xff]   ;;  %v7396_v44 = vld [vmem:[#allocation18 + $0x3b0] ss:$8 sps:$4 sm:$0xff]  }
 0x423   :  { %5662 = vmatpush1.bf16.msra.mxu1 %v7330_v61  ;;  %v7404_v7 = vld [vmem:[#allocation18 + $0x3a4] ss:$8 sps:$4 sm:$0xff]   ;;  %v7399_v33 = vld [vmem:[#allocation18 + $0x2a0] ss:$8 sps:$4 sm:$0xff]   ;;  %v7407_v35 = vld [vmem:[#allocation18 + $0x294] ss:$8 sps:$4 sm:$0xff]  }
 0x424   :  { %5663 = vmatprep.subr.bf16.mxu1 %v7338_v53  ;;  %v3676_v36 = vld [vmem:[#allocation5 + $0x10] sm:$0xff]  ;;  %v7410_v37 = vld [vmem:[#allocation18 + $0x394] ss:$8 sps:$4 sm:$0xff]   ;;  %v7405_v38 = vld [vmem:[#allocation18 + $0x290] ss:$8 sps:$4 sm:$0xff]  }
 0x425   :  { %5623 = vmatpush1.bf16.msra.mxu0 %v7333_v48  ;;  %v7402_v1 = vld [vmem:[#allocation18 + $0x3a0] ss:$8 sps:$4 sm:$0xff]   ;;  %v3718_v41 = vcombine.high %v3676_v36, %v3676_v36  ;;  %v7413_v50 = vld [vmem:[#allocation18 + $0x284] ss:$8 sps:$4 sm:$0xff]   ;;  %v7408_v58 = vld [vmem:[#allocation18 + $0x390] ss:$8 sps:$4 sm:$0xff]   ;;  %v8362_v52 = vrot.slane %v3676_v36, %v8331_v27 }
 0x426   :  { %5624 = vmatprep.subr.bf16.mxu0 %v7341_v3  ;;  %v7416_v47 = vld [vmem:[#allocation18 + $0x384] ss:$8 sps:$4 sm:$0xff]   ;;  %v7411_v43 = vld [vmem:[#allocation18 + $0x280] ss:$8 sps:$4 sm:$0xff]   ;;  %v7419_v61 = vld [vmem:[#allocation18 + $0x474] ss:$8 sps:$4 sm:$0xff]  }
 0x427   :  { %5664 = vmatpush1.bf16.msra.mxu1 %v7336_v4  ;;  %v8365_v60 = vrot.slane %v3718_v41, %v8331_v27  ;;  %v7414_v53 = vld [vmem:[#allocation18 + $0x380] ss:$8 sps:$4 sm:$0xff]   ;;  %v3733_v48 = vcombine.high %v8362_v52, %v8362_v52  ;;  %v7422_v3 = vld [vmem:[#allocation18 + $0x574] ss:$8 sps:$4 sm:$0xff]   ;;  %v7417_v4 = vld [vmem:[#allocation18 + $0x470] ss:$8 sps:$4 sm:$0xff]  }
 0x428   :  { %5665 = vmatprep.subr.bf16.mxu1 %v7344_v57  ;;  %v7486_v36 = vld [vmem:[#allocation18 + $0x4c4] ss:$8 sps:$4 sm:$0xff]   ;;  %v7492_v41 = vld [vmem:[#allocation18 + $0x4b4] ss:$8 sps:$4 sm:$0xff]  }
 0x429   :  { %5625 = vmatpush1.bf16.msra.mxu0 %v7339_v45  ;;  %v3734_v57 = vcombine.high %v8365_v60, %v8365_v60  ;;  %v3782_v45 = vpack.c.bf16 %v8342_v42, %v8342_v42  ;;  %v7427_v42 = vld [vmem:[#allocation18 + $0x560] ss:$8 sps:$4 sm:$0xff]  }
 0x42a   :  { %5626 = vmatprep.subr.bf16.mxu0 %v7347_v39  ;;  %v7426_v39 = vld [vmem:[#allocation18 + $0x464] ss:$8 sps:$4 sm:$0xff]  }
 0x42b   :  { %5666 = vmatpush1.bf16.msra.mxu1 %v7342_v12  ;;  %v3787_v12 = vpack.c.bf16 %v3733_v48, %v3733_v48  ;;  %v7496_v48 = vld [vmem:[#allocation18 + $0x4a0] ss:$8 sps:$4 sm:$0xff]  }
 0x42c   :  { %5667 = vmatprep.subr.bf16.mxu1 %v7350_v46  ;;  %v7420_v46 = vld [vmem:[#allocation18 + $0x570] ss:$8 sps:$4 sm:$0xff]  }
 0x42d   :  { %5627 = vmatpush1.bf16.msra.mxu0 %v7345_v8  ;;  %v3784_v8 = vpack.c.bf16 %v8351_v34, %v8351_v34  ;;  %v7433_v34 = vld [vmem:[#allocation18 + $0x550] ss:$8 sps:$4 sm:$0xff]  }
 0x42e   :  { %5628 = vmatprep.subr.bf16.mxu0 %v7353_v13  ;;  %v7429_v13 = vld [vmem:[#allocation18 + $0x564] ss:$8 sps:$4 sm:$0xff]  }
 0x42f   :  { %5668 = vmatpush1.bf16.msra.mxu1 %v7348_v59  ;;  %v3789_v59 = vpack.c.bf16 %v3734_v57, %v3734_v57  ;;  %v7499_v57 = vld [vmem:[#allocation18 + $0x5a0] ss:$8 sps:$4 sm:$0xff]  }
 0x430   :  { %5669 = vmatprep.subr.bf16.mxu1 %v7356_v63  ;;  %v7424_v63 = vld [vmem:[#allocation18 + $0x460] ss:$8 sps:$4 sm:$0xff]  }
 0x431   :  { %5629 = vmatpush1.bf16.msra.mxu0 %v7351_v14  ;;  %v7432_v14 = vld [vmem:[#allocation18 + $0x454] ss:$8 sps:$4 sm:$0xff]  }
 0x432   :  { %5630 = vmatprep.subr.bf16.mxu0 %v7359_v15  ;;  %v7435_v15 = vld [vmem:[#allocation18 + $0x554] ss:$8 sps:$4 sm:$0xff]  }
 0x433   :  { %5670 = vmatpush1.bf16.msra.mxu1 %v7354_v10  ;;  %v7430_v10 = vld [vmem:[#allocation18 + $0x450] ss:$8 sps:$4 sm:$0xff]  }
 0x434   :  { %5671 = vmatprep.subr.bf16.mxu1 %v7362_v17  ;;  %v7438_v17 = vld [vmem:[#allocation18 + $0x444] ss:$8 sps:$4 sm:$0xff]  }
 0x435   :  { %5631 = vmatpush1.bf16.msra.mxu0 %v7357_v18  ;;  %v7441_v18 = vld [vmem:[#allocation18 + $0x544] ss:$8 sps:$4 sm:$0xff]  }
 0x436   :  { %5632 = vmatprep.subr.bf16.mxu0 %v7365_v54  ;;  %v7436_v54 = vld [vmem:[#allocation18 + $0x440] ss:$8 sps:$4 sm:$0xff]  }
 0x437   :  { %5672 = vmatpush1.bf16.msra.mxu1 %v7360_v19  ;;  %v7444_v19 = vld [vmem:[#allocation18 + $0x434] ss:$8 sps:$4 sm:$0xff]  }
 0x438   :  { %5673 = vmatprep.subr.bf16.mxu1 %v7368_v20  ;;  %v7439_v20 = vld [vmem:[#allocation18 + $0x540] ss:$8 sps:$4 sm:$0xff]  }
 0x439   :  { %5633 = vmatpush1.bf16.msra.mxu0 %v7363_v21  ;;  %v7447_v21 = vld [vmem:[#allocation18 + $0x534] ss:$8 sps:$4 sm:$0xff]  }
 0x43a   :  { %5634 = vmatprep.subr.bf16.mxu0 %v7371_v22  ;;  %v7442_v22 = vld [vmem:[#allocation18 + $0x430] ss:$8 sps:$4 sm:$0xff]  }
 0x43b   :  { %5674 = vmatpush1.bf16.msra.mxu1 %v7366_v23  ;;  %v7450_v23 = vld [vmem:[#allocation18 + $0x424] ss:$8 sps:$4 sm:$0xff]  }
 0x43c   :  { %5675 = vmatprep.subr.bf16.mxu1 %v7374_v24  ;;  %v7445_v24 = vld [vmem:[#allocation18 + $0x530] ss:$8 sps:$4 sm:$0xff]  }
 0x43d   :  { %5635 = vmatpush2.bf16.msra.mxu0 %v7369_v16  ;;  %v7453_v16 = vld [vmem:[#allocation18 + $0x524] ss:$8 sps:$4 sm:$0xff]  }
 0x43e   :  { %5636 = vmatprep.subr.bf16.mxu0 %v7377_v32  ;;  %v7448_v32 = vld [vmem:[#allocation18 + $0x420] ss:$8 sps:$4 sm:$0xff]  }
 0x43f   :  { %5676 = vmatpush2.bf16.msra.mxu1 %v7372_v0  ;;  %v7456_v0 = vld [vmem:[#allocation18 + $0x414] ss:$8 sps:$4 sm:$0xff]  }
 0x440   :  { %5677 = vmatprep.subr.bf16.mxu1 %v7380_v49  ;;  %v7451_v49 = vld [vmem:[#allocation18 + $0x520] ss:$8 sps:$4 sm:$0xff]  }
 0x441   :  { %5637 = vmatpush2.bf16.msra.mxu0 %v7375_v26  ;;  %v7459_v26 = vld [vmem:[#allocation18 + $0x514] ss:$8 sps:$4 sm:$0xff]  }
 0x442   :  { %5638 = vmatprep.subr.bf16.mxu0 %v7383_v29  ;;  %v7454_v29 = vld [vmem:[#allocation18 + $0x410] ss:$8 sps:$4 sm:$0xff]  }
 0x443   :  { %5678 = vmatpush2.bf16.msra.mxu1 %v7378_v11  ;;  %v7462_v11 = vld [vmem:[#allocation18 + $0x404] ss:$8 sps:$4 sm:$0xff]  }
 0x444   :  { %5679 = vmatprep.subr.bf16.mxu1 %v7386_v55  ;;  %v7457_v55 = vld [vmem:[#allocation18 + $0x510] ss:$8 sps:$4 sm:$0xff]  }
 0x445   :  { %5639 = vmatpush2.bf16.msra.mxu0 %v7381_v40  ;;  %v7465_v40 = vld [vmem:[#allocation18 + $0x504] ss:$8 sps:$4 sm:$0xff]  }
 0x446   :  { %5640 = vmatprep.subr.bf16.mxu0 %v7389_v2  ;;  %v7460_v2 = vld [vmem:[#allocation18 + $0x400] ss:$8 sps:$4 sm:$0xff]  }
 0x447   :  { %5680 = vmatpush2.bf16.msra.mxu1 %v7384_v9  ;;  %v7468_v9 = vld [vmem:[#allocation18 + $0x4f4] ss:$8 sps:$4 sm:$0xff]  }
 0x448   :  { %5681 = vmatprep.subr.bf16.mxu1 %v7392_v51  ;;  %v7463_v51 = vld [vmem:[#allocation18 + $0x500] ss:$8 sps:$4 sm:$0xff]  }
 0x449   :  { %5641 = vmatpush2.bf16.msra.mxu0 %v7387_v25  ;;  %v7471_v25 = vld [vmem:[#allocation18 + $0x5f4] ss:$8 sps:$4 sm:$0xff]  }
 0x44a   :  { %5642 = vmatprep.subr.bf16.mxu0 %v7395_v56  ;;  %v7466_v56 = vld [vmem:[#allocation18 + $0x4f0] ss:$8 sps:$4 sm:$0xff]  }
 0x44b   :  { %5682 = vmatpush2.bf16.msra.mxu1 %v7390_v30  ;;  %v7474_v30 = vld [vmem:[#allocation18 + $0x4e4] ss:$8 sps:$4 sm:$0xff]  }
 0x44c   :  { %5683 = vmatprep.subr.bf16.mxu1 %v7398_v62  ;;  %v7469_v62 = vld [vmem:[#allocation18 + $0x5f0] ss:$8 sps:$4 sm:$0xff]  }
 0x44d   :  { %5643 = vmatpush2.bf16.msra.mxu0 %v7393_v5  ;;  %v7477_v5 = vld [vmem:[#allocation18 + $0x5e4] ss:$8 sps:$4 sm:$0xff]  }
 0x44e   :  { %5644 = vmatprep.subr.bf16.mxu0 %v7401_v6  ;;  %v7472_v6 = vld [vmem:[#allocation18 + $0x4e0] ss:$8 sps:$4 sm:$0xff]  }
 0x44f   :  { %5684 = vmatpush2.bf16.msra.mxu1 %v7396_v44  ;;  %v7480_v44 = vld [vmem:[#allocation18 + $0x4d4] ss:$8 sps:$4 sm:$0xff]  }
 0x450   :  { %5685 = vmatprep.subr.bf16.mxu1 %v7404_v7  ;;  %v7475_v7 = vld [vmem:[#allocation18 + $0x5e0] ss:$8 sps:$4 sm:$0xff]  }
 0x451   :  { %5645 = vmatpush2.bf16.msra.mxu0 %v7399_v33  ;;  %v7483_v33 = vld [vmem:[#allocation18 + $0x5d4] ss:$8 sps:$4 sm:$0xff]  }
 0x452   :  { %5646 = vmatprep.subr.bf16.mxu0 %v7407_v35  ;;  %v7478_v35 = vld [vmem:[#allocation18 + $0x4d0] ss:$8 sps:$4 sm:$0xff]  }
 0x453   :  { %5686 = vmatpush2.bf16.msra.mxu1 %v7402_v1  ;;  %v7481_v1 = vld [vmem:[#allocation18 + $0x5d0] ss:$8 sps:$4 sm:$0xff]  }
 0x454   :  { %5687 = vmatprep.subr.bf16.mxu1 %v7410_v37  ;;  %v7489_v37 = vld [vmem:[#allocation18 + $0x5c4] ss:$8 sps:$4 sm:$0xff]  }
 0x455   :  { %5647 = vmatpush2.bf16.msra.mxu0 %v7405_v38  ;;  %v7484_v38 = vld [vmem:[#allocation18 + $0x4c0] ss:$8 sps:$4 sm:$0xff]  }
 0x456   :  { %5648 = vmatprep.subr.bf16.mxu0 %v7413_v50  ;;  %v7487_v50 = vld [vmem:[#allocation18 + $0x5c0] ss:$8 sps:$4 sm:$0xff]  }
 0x457   :  { %5688 = vmatpush2.bf16.msra.mxu1 %v7408_v58  ;;  %v7495_v58 = vld [vmem:[#allocation18 + $0x5b4] ss:$8 sps:$4 sm:$0xff]  }
 0x458   :  { %5689 = vmatprep.subr.bf16.mxu1 %v7416_v47  ;;  %v7490_v47 = vld [vmem:[#allocation18 + $0x4b0] ss:$8 sps:$4 sm:$0xff]  }
 0x459   :  { %5649 = vmatpush2.bf16.msra.mxu0 %v7411_v43  ;;  %v7498_v43 = vld [vmem:[#allocation18 + $0x4a4] ss:$8 sps:$4 sm:$0xff]  }
 0x45a   :  { %5700 = vmatprep.subr.bf16.mxu0 %v7419_v61  ;;  %v7493_v61 = vld [vmem:[#allocation18 + $0x5b0] ss:$8 sps:$4 sm:$0xff]  }
 0x45b   :  { %5690 = vmatpush2.bf16.msra.mxu1 %v7414_v53  ;;  %v7501_v53 = vld [vmem:[#allocation18 + $0x5a4] ss:$8 sps:$4 sm:$0xff]  }
 0x45c   :  { %5651 = vmatmul.mubr.bf16.vlgmr.msra.gmra.mxu0 %v3782_v45  ;;  %5741 = vmatprep.subr.bf16.mxu1 %v7422_v3  ;;  %v7504_v3 = vld [vmem:[#allocation18 + $0x494] ss:$8 sps:$4 sm:$0xff]  }
 0x45d   :  { %5701 = vmatpush1.bf16.msra.mxu0 %v7417_v4  ;;  %5732 = vmatprep.mubr.bf16.mxu0 %v3787_v12  ;;  %v3677_v4 = vld [vmem:[#allocation5 + $0x18] sm:$0xff]  ;;  %v7507_v45 = vld [vmem:[#allocation18 + $0x594] ss:$8 sps:$4 sm:$0xff]  }
 0x45e   :  { %5692 = vmatmul.mubr.bf16.vlgmr.msra.gmra.mxu1 %v3784_v8  ;;  %5702 = vmatprep.subr.bf16.mxu0 %v7426_v39  ;;  %v7502_v39 = vld [vmem:[#allocation18 + $0x490] ss:$8 sps:$4 sm:$0xff]   ;;  %v3735_v12 = vcombine.high %v3677_v4, %v3677_v4 }
 0x45f   :  { %5742 = vmatpush1.bf16.msra.mxu1 %v7420_v46  ;;  %5773 = vmatprep.mubr.bf16.mxu1 %v3789_v59  ;;  %v7510_v46 = vld [vmem:[#allocation18 + $0x484] ss:$8 sps:$4 sm:$0xff]   ;;  %v7505_v8 = vld [vmem:[#allocation18 + $0x590] ss:$8 sps:$4 sm:$0xff]  }
 0x460   :  { %5743 = vmatprep.subr.bf16.mxu1 %v7429_v13  ;;  %v8376_v13 = vrot.slane %v3677_v4, %v8331_v27  ;;  %v7513_v59 = vld [vmem:[#allocation18 + $0x584] ss:$8 sps:$4 sm:$0xff]   ;;  %v7578_v4 = vld [vmem:[#allocation18 + $0x7d0] ss:$8 sps:$4 sm:$0xff]  }
 0x461   :  { %5703 = vmatpush1.bf16.msra.mxu0 %v7424_v63  ;;  %v7508_v63 = vld [vmem:[#allocation18 + $0x480] ss:$8 sps:$4 sm:$0xff]  }
 0x462   :  { %5704 = vmatprep.subr.bf16.mxu0 %v7432_v14  ;;  %v8379_v14 = vrot.slane %v3735_v12, %v8331_v27  ;;  %v7523_v27 = vld [vmem:[#allocation18 + $0x664] ss:$8 sps:$4 sm:$0xff]   ;;  %v7584_v12 = vld [vmem:[#allocation18 + $0x7c0] ss:$8 sps:$4 sm:$0xff]  }
 0x463   :  { %5744 = vmatpush1.bf16.msra.mxu1 %v7427_v42  ;;  %v7516_v42 = vld [vmem:[#allocation18 + $0x674] ss:$8 sps:$4 sm:$0xff]  }
 0x464   :  { %5745 = vmatprep.subr.bf16.mxu1 %v7435_v15  ;;  %v7511_v15 = vld [vmem:[#allocation18 + $0x580] ss:$8 sps:$4 sm:$0xff]  }
 0x465   :  { %5705 = vmatpush1.bf16.msra.mxu0 %v7430_v10  ;;  %v3750_v10 = vcombine.high %v8376_v13, %v8376_v13 }
 0x466   :  { %5706 = vmatprep.subr.bf16.mxu0 %v7438_v17  ;;  %v7519_v17 = vld [vmem:[#allocation18 + $0x774] ss:$8 sps:$4 sm:$0xff]  }
 0x467   :  { %5746 = vmatpush1.bf16.msra.mxu1 %v7433_v34  ;;  %v7514_v34 = vld [vmem:[#allocation18 + $0x670] ss:$8 sps:$4 sm:$0xff]  }
 0x468   :  { %5747 = vmatprep.subr.bf16.mxu1 %v7441_v18  ;;  %v3751_v18 = vcombine.high %v8379_v14, %v8379_v14 }
 0x469   :  { %5707 = vmatpush1.bf16.msra.mxu0 %v7436_v54  ;;  %v3786_v54 = vpack.c.bf16 %v8362_v52, %v8362_v52  ;;  %v7524_v52 = vld [vmem:[#allocation18 + $0x760] ss:$8 sps:$4 sm:$0xff]  }
 0x46a   :  { %5708 = vmatprep.subr.bf16.mxu0 %v7444_v19  ;;  %v3791_v19 = vpack.c.bf16 %v3750_v10, %v3750_v10  ;;  %v7601_v10 = vld [vmem:[#allocation18 + $0x694] ss:$8 sps:$4 sm:$0xff]  }
 0x46b   :  { %5748 = vmatpush1.bf16.msra.mxu1 %v7439_v20  ;;  %v7517_v20 = vld [vmem:[#allocation18 + $0x770] ss:$8 sps:$4 sm:$0xff]  }
 0x46c   :  { %5749 = vmatprep.subr.bf16.mxu1 %v7447_v21  ;;  %v3788_v21 = vpack.c.bf16 %v8365_v60, %v8365_v60  ;;  %v7530_v60 = vld [vmem:[#allocation18 + $0x750] ss:$8 sps:$4 sm:$0xff]  }
 0x46d   :  { %5709 = vmatpush1.bf16.msra.mxu0 %v7442_v22  ;;  %v7526_v22 = vld [vmem:[#allocation18 + $0x764] ss:$8 sps:$4 sm:$0xff]  }
 0x46e   :  { %5710 = vmatprep.subr.bf16.mxu0 %v7450_v23  ;;  %v3793_v23 = vpack.c.bf16 %v3751_v18, %v3751_v18  ;;  %v7599_v18 = vld [vmem:[#allocation18 + $0x690] ss:$8 sps:$4 sm:$0xff]  }
 0x46f   :  { %5750 = vmatpush1.bf16.msra.mxu1 %v7445_v24  ;;  %v7521_v24 = vld [vmem:[#allocation18 + $0x660] ss:$8 sps:$4 sm:$0xff]  }
 0x470   :  { %5751 = vmatprep.subr.bf16.mxu1 %v7453_v16  ;;  %v7529_v16 = vld [vmem:[#allocation18 + $0x654] ss:$8 sps:$4 sm:$0xff]  }
 0x471   :  { %5711 = vmatpush1.bf16.msra.mxu0 %v7448_v32  ;;  %v7532_v32 = vld [vmem:[#allocation18 + $0x754] ss:$8 sps:$4 sm:$0xff]  }
 0x472   :  { %5712 = vmatprep.subr.bf16.mxu0 %v7456_v0  ;;  %v7527_v0 = vld [vmem:[#allocation18 + $0x650] ss:$8 sps:$4 sm:$0xff]  }
 0x473   :  { %5752 = vmatpush1.bf16.msra.mxu1 %v7451_v49  ;;  %v7535_v49 = vld [vmem:[#allocation18 + $0x644] ss:$8 sps:$4 sm:$0xff]  }
 0x474   :  { %5753 = vmatprep.subr.bf16.mxu1 %v7459_v26  ;;  %v7538_v26 = vld [vmem:[#allocation18 + $0x744] ss:$8 sps:$4 sm:$0xff]  }
 0x475   :  { %5713 = vmatpush1.bf16.msra.mxu0 %v7454_v29  ;;  %v7533_v29 = vld [vmem:[#allocation18 + $0x640] ss:$8 sps:$4 sm:$0xff]  }
 0x476   :  { %5714 = vmatprep.subr.bf16.mxu0 %v7462_v11  ;;  %v7541_v11 = vld [vmem:[#allocation18 + $0x634] ss:$8 sps:$4 sm:$0xff]  }
 0x477   :  { %5754 = vmatpush1.bf16.msra.mxu1 %v7457_v55  ;;  %v7536_v55 = vld [vmem:[#allocation18 + $0x740] ss:$8 sps:$4 sm:$0xff]  }
 0x478   :  { %5755 = vmatprep.subr.bf16.mxu1 %v7465_v40  ;;  %v7544_v40 = vld [vmem:[#allocation18 + $0x734] ss:$8 sps:$4 sm:$0xff]  }
 0x479   :  { %5715 = vmatpush1.bf16.msra.mxu0 %v7460_v2  ;;  %v7539_v2 = vld [vmem:[#allocation18 + $0x630] ss:$8 sps:$4 sm:$0xff]  }
 0x47a   :  { %5716 = vmatprep.subr.bf16.mxu0 %v7468_v9  ;;  %v7547_v9 = vld [vmem:[#allocation18 + $0x624] ss:$8 sps:$4 sm:$0xff]  }
 0x47b   :  { %5756 = vmatpush1.bf16.msra.mxu1 %v7463_v51  ;;  %v7542_v51 = vld [vmem:[#allocation18 + $0x730] ss:$8 sps:$4 sm:$0xff]  }
 0x47c   :  { %5757 = vmatprep.subr.bf16.mxu1 %v7471_v25  ;;  %v7550_v25 = vld [vmem:[#allocation18 + $0x724] ss:$8 sps:$4 sm:$0xff]  }
 0x47d   :  { %5717 = vmatpush2.bf16.msra.mxu0 %v7466_v56  ;;  %v7545_v56 = vld [vmem:[#allocation18 + $0x620] ss:$8 sps:$4 sm:$0xff]  }
 0x47e   :  { %5718 = vmatprep.subr.bf16.mxu0 %v7474_v30  ;;  %v7553_v30 = vld [vmem:[#allocation18 + $0x614] ss:$8 sps:$4 sm:$0xff]  }
 0x47f   :  { %5758 = vmatpush2.bf16.msra.mxu1 %v7469_v62  ;;  %v7548_v62 = vld [vmem:[#allocation18 + $0x720] ss:$8 sps:$4 sm:$0xff]  }
 0x480   :  { %5759 = vmatprep.subr.bf16.mxu1 %v7477_v5  ;;  %v7556_v5 = vld [vmem:[#allocation18 + $0x714] ss:$8 sps:$4 sm:$0xff]  }
 0x481   :  { %5719 = vmatpush2.bf16.msra.mxu0 %v7472_v6  ;;  %v7551_v6 = vld [vmem:[#allocation18 + $0x610] ss:$8 sps:$4 sm:$0xff]  }
 0x482   :  { %5720 = vmatprep.subr.bf16.mxu0 %v7480_v44  ;;  %v7559_v44 = vld [vmem:[#allocation18 + $0x604] ss:$8 sps:$4 sm:$0xff]  }
 0x483   :  { %5760 = vmatpush2.bf16.msra.mxu1 %v7475_v7  ;;  %v7554_v7 = vld [vmem:[#allocation18 + $0x710] ss:$8 sps:$4 sm:$0xff]  }
 0x484   :  { %5761 = vmatprep.subr.bf16.mxu1 %v7483_v33  ;;  %v7562_v33 = vld [vmem:[#allocation18 + $0x704] ss:$8 sps:$4 sm:$0xff]  }
 0x485   :  { %5721 = vmatpush2.bf16.msra.mxu0 %v7478_v35  ;;  %v7557_v35 = vld [vmem:[#allocation18 + $0x600] ss:$8 sps:$4 sm:$0xff]  }
 0x486   :  { %5722 = vmatprep.subr.bf16.mxu0 %v7486_v36  ;;  %v7565_v36 = vld [vmem:[#allocation18 + $0x6f4] ss:$8 sps:$4 sm:$0xff]  }
 0x487   :  { %5762 = vmatpush2.bf16.msra.mxu1 %v7481_v1  ;;  %v7560_v1 = vld [vmem:[#allocation18 + $0x700] ss:$8 sps:$4 sm:$0xff]  }
 0x488   :  { %5763 = vmatprep.subr.bf16.mxu1 %v7489_v37  ;;  %v7568_v37 = vld [vmem:[#allocation18 + $0x7f4] ss:$8 sps:$4 sm:$0xff]  }
 0x489   :  { %5723 = vmatpush2.bf16.msra.mxu0 %v7484_v38  ;;  %v7563_v38 = vld [vmem:[#allocation18 + $0x6f0] ss:$8 sps:$4 sm:$0xff]  }
 0x48a   :  { %5724 = vmatprep.subr.bf16.mxu0 %v7492_v41  ;;  %v7571_v41 = vld [vmem:[#allocation18 + $0x6e4] ss:$8 sps:$4 sm:$0xff]  }
 0x48b   :  { %5764 = vmatpush2.bf16.msra.mxu1 %v7487_v50  ;;  %v7566_v50 = vld [vmem:[#allocation18 + $0x7f0] ss:$8 sps:$4 sm:$0xff]  }
 0x48c   :  { %5765 = vmatprep.subr.bf16.mxu1 %v7495_v58  ;;  %v7574_v58 = vld [vmem:[#allocation18 + $0x7e4] ss:$8 sps:$4 sm:$0xff]  }
 0x48d   :  { %5725 = vmatpush2.bf16.msra.mxu0 %v7490_v47  ;;  %v7569_v47 = vld [vmem:[#allocation18 + $0x6e0] ss:$8 sps:$4 sm:$0xff]  }
 0x48e   :  { %5726 = vmatprep.subr.bf16.mxu0 %v7498_v43  ;;  %v7577_v43 = vld [vmem:[#allocation18 + $0x6d4] ss:$8 sps:$4 sm:$0xff]  }
 0x48f   :  { %5766 = vmatpush2.bf16.msra.mxu1 %v7493_v61  ;;  %v7572_v61 = vld [vmem:[#allocation18 + $0x7e0] ss:$8 sps:$4 sm:$0xff]  }
 0x490   :  { %5767 = vmatprep.subr.bf16.mxu1 %v7501_v53  ;;  %v7580_v53 = vld [vmem:[#allocation18 + $0x7d4] ss:$8 sps:$4 sm:$0xff]  }
 0x491   :  { %5727 = vmatpush2.bf16.msra.mxu0 %v7496_v48  ;;  %v7575_v48 = vld [vmem:[#allocation18 + $0x6d0] ss:$8 sps:$4 sm:$0xff]  }
 0x492   :  { %5728 = vmatprep.subr.bf16.mxu0 %v7504_v3  ;;  %v7583_v3 = vld [vmem:[#allocation18 + $0x6c4] ss:$8 sps:$4 sm:$0xff]  }
 0x493   :  { %5768 = vmatpush2.bf16.msra.mxu1 %v7499_v57  ;;  %v7586_v57 = vld [vmem:[#allocation18 + $0x7c4] ss:$8 sps:$4 sm:$0xff]  }
 0x494   :  { %5769 = vmatprep.subr.bf16.mxu1 %v7507_v45  ;;  %v7581_v45 = vld [vmem:[#allocation18 + $0x6c0] ss:$8 sps:$4 sm:$0xff]  }
 0x495   :  { %5729 = vmatpush2.bf16.msra.mxu0 %v7502_v39  ;;  %v7589_v39 = vld [vmem:[#allocation18 + $0x6b4] ss:$8 sps:$4 sm:$0xff]  }
 0x496   :  { %5730 = vmatprep.subr.bf16.mxu0 %v7510_v46  ;;  %v7592_v46 = vld [vmem:[#allocation18 + $0x7b4] ss:$8 sps:$4 sm:$0xff]  }
 0x497   :  { %5770 = vmatpush2.bf16.msra.mxu1 %v7505_v8  ;;  %v7587_v8 = vld [vmem:[#allocation18 + $0x6b0] ss:$8 sps:$4 sm:$0xff]  }
 0x498   :  { %5771 = vmatprep.subr.bf16.mxu1 %v7513_v59  ;;  %v7595_v59 = vld [vmem:[#allocation18 + $0x6a4] ss:$8 sps:$4 sm:$0xff]  }
 0x499   :  { %5731 = vmatpush2.bf16.msra.mxu0 %v7508_v63  ;;  %v7590_v63 = vld [vmem:[#allocation18 + $0x7b0] ss:$8 sps:$4 sm:$0xff]  }
 0x49a   :  { %5782 = vmatprep.subr.bf16.mxu0 %v7516_v42  ;;  %v7598_v42 = vld [vmem:[#allocation18 + $0x7a4] ss:$8 sps:$4 sm:$0xff]  }
 0x49b   :  { %5772 = vmatpush2.bf16.msra.mxu1 %v7511_v15  ;;  %v7593_v15 = vld [vmem:[#allocation18 + $0x6a0] ss:$8 sps:$4 sm:$0xff]  }
 0x49c   :  { %5733 = vmatmul.mubr.bf16.vlgmr.msra.gmra.mxu0 %v3786_v54  ;;  %5823 = vmatprep.subr.bf16.mxu1 %v7519_v17  ;;  %v7596_v17 = vld [vmem:[#allocation18 + $0x7a0] ss:$8 sps:$4 sm:$0xff]   ;;  %v7607_v54 = vld [vmem:[#allocation18 + $0x684] ss:$8 sps:$4 sm:$0xff]  }
 0x49d   :  { %5783 = vmatpush1.bf16.msra.mxu0 %v7514_v34  ;;  %5814 = vmatprep.mubr.bf16.mxu0 %v3791_v19  ;;  %v7604_v34 = vld [vmem:[#allocation18 + $0x794] ss:$8 sps:$4 sm:$0xff]   ;;  %v7610_v19 = vld [vmem:[#allocation18 + $0x784] ss:$8 sps:$4 sm:$0xff]  }
 0x49e   :  { %5774 = vmatmul.mubr.bf16.vlgmr.msra.gmra.mxu1 %v3788_v21  ;;  %5784 = vmatprep.subr.bf16.mxu0 %v7523_v27  ;;  %v7602_v27 = vld [vmem:[#allocation18 + $0x790] ss:$8 sps:$4 sm:$0xff]   ;;  %v7605_v21 = vld [vmem:[#allocation18 + $0x680] ss:$8 sps:$4 sm:$0xff]  }
 0x49f   :  { %5824 = vmatpush1.bf16.msra.mxu1 %v7517_v20  ;;  %5855 = vmatprep.mubr.bf16.mxu1 %v3793_v23  ;;  %v8389_v20 = vld.sshfl [vmem:[#allocation5 + $0x20] sm:$0x33 pattern:$0x76325410]  ;;  %v4084_v23 = vld [vmem:[#allocation20] sm:$0x3] }
 0x4a0   :  { %5825 = vmatprep.subr.bf16.mxu1 %v7526_v22  ;;  %v7613_v22 = vld [vmem:[#allocation18 + $0x874] ss:$8 sps:$4 sm:$0xff]  }
 0x4a1   :  { %5785 = vmatpush1.bf16.msra.mxu0 %v7521_v24  ;;  %v7608_v24 = vld [vmem:[#allocation18 + $0x780] ss:$8 sps:$4 sm:$0xff]  }
 0x4a2   :  { %5786 = vmatprep.subr.bf16.mxu0 %v7529_v16  ;;  %v3759_v16 = vcombine.high %v8389_v20, %v8389_v20 }
 0x4a3   :  { %5826 = vmatpush1.bf16.msra.mxu1 %v7524_v52  ;;  %v7611_v52 = vld [vmem:[#allocation18 + $0x870] ss:$8 sps:$4 sm:$0xff]  }
 0x4a4   :  { %5827 = vmatprep.subr.bf16.mxu1 %v7532_v32  ;;  %v4089_v32 = vrot.slane %v4084_v23, %v8100_v28 }
 0x4a5   :  { %5787 = vmatpush1.bf16.msra.mxu0 %v7527_v0  ;;  %v3790_v0 = vpack.c.bf16 %v8376_v13, %v8376_v13  ;;  %v7619_v13 = vld [vmem:[#allocation18 + $0x854] ss:$8 sps:$4 sm:$0xff]  }
 0x4a6   :  { %5788 = vmatprep.subr.bf16.mxu0 %v7535_v49  ;;  %v7616_v49 = vld [vmem:[#allocation18 + $0x864] ss:$8 sps:$4 sm:$0xff]  }
 0x4a7   :  { %5828 = vmatpush1.bf16.msra.mxu1 %v7530_v60  ;;  %v3795_v60 = vpack.c.bf16 %v3759_v16, %v3759_v16  ;;  %v7661_v16 = vld [vmem:[%s8469_s11 + $0x70] sm:$0xff]  }
 0x4a8   :  { %5829 = vmatprep.subr.bf16.mxu1 %v7538_v26  ;;  %v4093_v26 = vrot.slane %v4084_v23, %v8103_v31 }
 0x4a9   :  { %5789 = vmatpush1.bf16.msra.mxu0 %v7533_v29 }
 0x4aa   :  { %5790 = vmatprep.subr.bf16.mxu0 %v7541_v11  ;;  %v3792_v11 = vpack.c.bf16 %v8379_v14, %v8379_v14 }
 0x4ab   :  { %5830 = vmatpush1.bf16.msra.mxu1 %v7536_v55 }
 0x4ac   :  { %5831 = vmatprep.subr.bf16.mxu1 %v7544_v40  ;;  %v7614_v40 = vld [vmem:[#allocation18 + $0x860] ss:$8 sps:$4 sm:$0xff]  }
 0x4ad   :  { %5791 = vmatpush1.bf16.msra.mxu0 %v7539_v2 }
 0x4ae   :  { %5792 = vmatprep.subr.bf16.mxu0 %v7547_v9 }
 0x4af   :  { %5832 = vmatpush1.bf16.msra.mxu1 %v7542_v51 }
 0x4b0   :  { %5833 = vmatprep.subr.bf16.mxu1 %v7550_v25 }
 0x4b1   :  { %5793 = vmatpush1.bf16.msra.mxu0 %v7545_v56 }
 0x4b2   :  { %5794 = vmatprep.subr.bf16.mxu0 %v7553_v30  ;;  %v7617_v30 = vld [vmem:[#allocation18 + $0x850] ss:$8 sps:$4 sm:$0xff]  }
 0x4b3   :  { %5834 = vmatpush1.bf16.msra.mxu1 %v7548_v62 }
 0x4b4   :  { %5835 = vmatprep.subr.bf16.mxu1 %v7556_v5  ;;  %v7622_v5 = vld [vmem:[#allocation18 + $0x844] ss:$8 sps:$4 sm:$0xff]  }
 0x4b5   :  { %5795 = vmatpush1.bf16.msra.mxu0 %v7551_v6 }
 0x4b6   :  { %5796 = vmatprep.subr.bf16.mxu0 %v7559_v44  ;;  %v7620_v44 = vld [vmem:[#allocation18 + $0x840] ss:$8 sps:$4 sm:$0xff]  }
 0x4b7   :  { %5836 = vmatpush1.bf16.msra.mxu1 %v7554_v7  ;;  %v7625_v7 = vld [vmem:[#allocation18 + $0x834] ss:$8 sps:$4 sm:$0xff]  }
 0x4b8   :  { %5837 = vmatprep.subr.bf16.mxu1 %v7562_v33  ;;  %v7623_v33 = vld [vmem:[#allocation18 + $0x830] ss:$8 sps:$4 sm:$0xff]  }
 0x4b9   :  { %5797 = vmatpush1.bf16.msra.mxu0 %v7557_v35  ;;  %v7628_v35 = vld [vmem:[#allocation18 + $0x824] ss:$8 sps:$4 sm:$0xff]  }
 0x4ba   :  { %5798 = vmatprep.subr.bf16.mxu0 %v7565_v36  ;;  %v7626_v36 = vld [vmem:[#allocation18 + $0x820] ss:$8 sps:$4 sm:$0xff]  }
 0x4bb   :  { %5838 = vmatpush1.bf16.msra.mxu1 %v7560_v1  ;;  %v7631_v1 = vld [vmem:[#allocation18 + $0x814] ss:$8 sps:$4 sm:$0xff]  }
 0x4bc   :  { %5839 = vmatprep.subr.bf16.mxu1 %v7568_v37  ;;  %v7629_v37 = vld [vmem:[#allocation18 + $0x810] ss:$8 sps:$4 sm:$0xff]  }
 0x4bd   :  { %5799 = vmatpush2.bf16.msra.mxu0 %v7563_v38  ;;  %v7634_v38 = vld [vmem:[#allocation18 + $0x804] ss:$8 sps:$4 sm:$0xff]  }
 0x4be   :  { %5800 = vmatprep.subr.bf16.mxu0 %v7571_v41  ;;  %v7632_v41 = vld [vmem:[#allocation18 + $0x800] ss:$8 sps:$4 sm:$0xff]  }
 0x4bf   :  { %5840 = vmatpush2.bf16.msra.mxu1 %v7566_v50  ;;  %v7637_v50 = vld [vmem:[#allocation18 + $0x8f4] ss:$8 sps:$4 sm:$0xff]  }
 0x4c0   :  { %5841 = vmatprep.subr.bf16.mxu1 %v7574_v58  ;;  %v7635_v58 = vld [vmem:[#allocation18 + $0x8f0] ss:$8 sps:$4 sm:$0xff]  }
 0x4c1   :  { %5801 = vmatpush2.bf16.msra.mxu0 %v7569_v47  ;;  %v7640_v47 = vld [vmem:[#allocation18 + $0x8e4] ss:$8 sps:$4 sm:$0xff]  }
 0x4c2   :  { %5802 = vmatprep.subr.bf16.mxu0 %v7577_v43  ;;  %v7638_v43 = vld [vmem:[#allocation18 + $0x8e0] ss:$8 sps:$4 sm:$0xff]  }
 0x4c3   :  { %5842 = vmatpush2.bf16.msra.mxu1 %v7572_v61  ;;  %v7643_v61 = vld [vmem:[#allocation18 + $0x8d4] ss:$8 sps:$4 sm:$0xff]  }
 0x4c4   :  { %5843 = vmatprep.subr.bf16.mxu1 %v7580_v53  ;;  %v7641_v53 = vld [vmem:[#allocation18 + $0x8d0] ss:$8 sps:$4 sm:$0xff]  }
 0x4c5   :  { %5803 = vmatpush2.bf16.msra.mxu0 %v7575_v48  ;;  %v7646_v48 = vld [vmem:[#allocation18 + $0x8c4] ss:$8 sps:$4 sm:$0xff]  }
 0x4c6   :  { %5804 = vmatprep.subr.bf16.mxu0 %v7583_v3  ;;  %v7644_v3 = vld [vmem:[#allocation18 + $0x8c0] ss:$8 sps:$4 sm:$0xff]  }
 0x4c7   :  { %5844 = vmatpush2.bf16.msra.mxu1 %v7578_v4  ;;  %v7649_v4 = vld [vmem:[#allocation18 + $0x8b4] ss:$8 sps:$4 sm:$0xff]  }
 0x4c8   :  { %5845 = vmatprep.subr.bf16.mxu1 %v7586_v57  ;;  %v7647_v57 = vld [vmem:[#allocation18 + $0x8b0] ss:$8 sps:$4 sm:$0xff]  }
 0x4c9   :  { %5805 = vmatpush2.bf16.msra.mxu0 %v7581_v45  ;;  %v7652_v45 = vld [vmem:[#allocation18 + $0x8a4] ss:$8 sps:$4 sm:$0xff]  }
 0x4ca   :  { %5806 = vmatprep.subr.bf16.mxu0 %v7589_v39  ;;  %v7650_v39 = vld [vmem:[#allocation18 + $0x8a0] ss:$8 sps:$4 sm:$0xff]  }
 0x4cb   :  { %5846 = vmatpush2.bf16.msra.mxu1 %v7584_v12  ;;  %v7655_v12 = vld [vmem:[#allocation18 + $0x894] ss:$8 sps:$4 sm:$0xff]  }
 0x4cc   :  { %5847 = vmatprep.subr.bf16.mxu1 %v7592_v46  ;;  %v7653_v46 = vld [vmem:[#allocation18 + $0x890] ss:$8 sps:$4 sm:$0xff]  }
 0x4cd   :  { %5807 = vmatpush2.bf16.msra.mxu0 %v7587_v8  ;;  %v7658_v8 = vld [vmem:[#allocation18 + $0x884] ss:$8 sps:$4 sm:$0xff]  }
 0x4ce   :  { %5808 = vmatprep.subr.bf16.mxu0 %v7595_v59  ;;  %v7656_v59 = vld [vmem:[#allocation18 + $0x880] ss:$8 sps:$4 sm:$0xff]  }
 0x4cf   :  { %5848 = vmatpush2.bf16.msra.mxu1 %v7590_v63  ;;  %v3794_v63 = vpack.c.bf16 %v8389_v20, %v8389_v20  ;;  %v7660_v20 = vld [vmem:[%s8469_s11 + $0x38] sm:$0xff]  }
 0x4d0   :  { %5849 = vmatprep.subr.bf16.mxu1 %v7598_v42 }
 0x4d1   :  { %5809 = vmatpush2.bf16.msra.mxu0 %v7593_v15 }
 0x4d2   :  { %5810 = vmatprep.subr.bf16.mxu0 %v7601_v10 }
 0x4d3   :  { %5850 = vmatpush2.bf16.msra.mxu1 %v7596_v17 }
 0x4d4   :  { %5851 = vmatprep.subr.bf16.mxu1 %v7604_v34 }
 0x4d5   :  { %5811 = vmatpush2.bf16.msra.mxu0 %v7599_v18 }
 0x4d6   :  { %5812 = vmatprep.subr.bf16.mxu0 %v7607_v54 }
 0x4d7   :  { %5852 = vmatpush2.bf16.msra.mxu1 %v7602_v27 }
 0x4d8   :  { %5853 = vmatprep.subr.bf16.mxu1 %v7610_v19 }
 0x4d9   :  { %5813 = vmatpush2.bf16.msra.mxu0 %v7605_v21 }
 0x4da   :  { %5864 = vmatprep.subr.bf16.mxu0 %v7613_v22 }
 0x4db   :  { %5854 = vmatpush2.bf16.msra.mxu1 %v7608_v24  ;;  %v7659_v24 = vld [vmem:[%s8469_s11 + $0x78] sm:$0xff]  }
 0x4dc   :  { %5815 = vmatmul.mubr.bf16.vlgmr.msra.gmra.mxu0 %v3790_v0  ;;  %v5570_v29 = vpop.f32.mrf.mxu0  ;;  %6726 = vmatprep.subr.bf16.mxu1 %v7659_v24  ;;  %v7664_v0 = vld [vmem:[%s8469_s11 + $0x28] sm:$0xff]  }
 0x4dd   :  { %v5571_v55 = vadd.f32 %v5570_v29, %v4089_v32  ;;  %5865 = vmatpush1.bf16.msra.mxu0 %v7611_v52  ;;  %5896 = vmatprep.mubr.bf16.mxu0 %v3795_v60  ;;  %v7662_v52 = vld [vmem:[%s8469_s11 + $0x30] sm:$0xff]   ;;  %v7663_v32 = vld [vmem:[%s8469_s11 + $0x68] sm:$0xff]   ;;  %v7666_v60 = vld [vmem:[%s8469_s11 + $0x20] sm:$0xff]  }
 0x4de   :  { %5856 = vmatmul.mubr.bf16.vlgmr.msra.gmra.mxu1 %v3792_v11  ;;  %v5572_v28 = vpop.f32.mrf.mxu0  ;;  %v5611_v2 = vpop.f32.mrf.mxu1  ;;  %5866 = vmatprep.subr.bf16.mxu0 %v7616_v49  ;;  %v7665_v49 = vld [vmem:[%s8469_s11 + $0x60] sm:$0xff]   ;;  %v7668_v29 = vld [vmem:[%s8469_s11 + $0x18] sm:$0xff]   ;;  %v7669_v11 = vld [vmem:[%s8469_s11 + $0x50] sm:$0xff]  }
 0x4df   :  { %v5573_v9 = vadd.f32 %v5572_v28, %v4093_v26  ;;  %v8399_v51 = vadd.f32 %v5611_v2, %v5571_v55  ;;  %6727 = vmatpush3.bf16.msra.mxu1 %v7660_v20  ;;  %v7667_v26 = vld [vmem:[%s8469_s11 + $0x58] sm:$0xff]   ;;  %v7670_v55 = vld [vmem:[%s8469_s11 + $0x10] sm:$0xff]  }
 0x4e0   :  { %v5574_v25 = vpop.f32.mrf.mxu0  ;;  %v5613_v56 = vpop.f32.mrf.mxu1  ;;  %6728 = vmatprep.subr.bf16.mxu1 %v7661_v16 }
 0x4e1   :  { %v8401_v31 = vadd.f32 %v5613_v56, %v5573_v9  ;;  %5867 = vmatpush1.bf16.msra.mxu0 %v7614_v40 }
 0x4e2   :  { %v5575_v62 = vpop.f32.mrf.mxu0  ;;  %v5615_v14 = vpop.f32.mrf.mxu1  ;;  %5868 = vmatprep.subr.bf16.mxu0 %v7619_v13 }
 0x4e3   :  { %6729 = vmatpush3.bf16.msra.mxu1 %v7662_v52  ;;  %v7671_v14 = vld [vmem:[%s8469_s11 + $0x48] sm:$0xff]  }
 0x4e4   :  { %v5616_v6 = vpop.f32.mrf.mxu1  ;;  %6730 = vmatprep.subr.bf16.mxu1 %v7663_v32 }
 0x4e5   :  { %5869 = vmatpush1.bf16.msra.mxu0 %v7617_v30  ;;  %v7673_v6 = vld [vmem:[%s8469_s11 + $0x40] sm:$0xff]  }
 0x4e6   :  { %5870 = vmatprep.subr.bf16.mxu0 %v7622_v5  ;;  %v7672_v5 = vld [vmem:[%s8469_s11 + $0x8] sm:$0xff]  }
 0x4e7   :  { %6731 = vmatpush3.bf16.msra.mxu1 %v7664_v0 }
 0x4e8   :  { %6732 = vmatprep.subr.bf16.mxu1 %v7665_v49 }
 0x4e9   :  { %5871 = vmatpush1.bf16.msra.mxu0 %v7620_v44 }
 0x4ea   :  { %5872 = vmatprep.subr.bf16.mxu0 %v7625_v7  ;;  %v7674_v7 = vld [vmem:[%s8469_s11] sm:$0xff]   ;;  %s7935_s11 = smov [#allocation23]  }
 0x4eb   :  { %6733 = vmatpush3.bf16.msra.mxu1 %v7666_v60  ;;  %s6097_s4 = sshll.u32 %s7935_s11, 4  ;;  %s6098_s4 = int_to_ptr.vmem [resolvable:$true] %s6097_s4 }
 0x4ec   :  { %6734 = vmatprep.subr.bf16.mxu1 %v7667_v26  ;;  %s7887_s25 = scalar_lea.vmem %s6098_s4, 32  ;;  %p7892_p9 = scmp.lt.s32.totalorder %s6098_s4, %s6098_s4 }
 0x4ed   :  { %5873 = vmatpush1.bf16.msra.mxu0 %v7623_v33  ;;  %p7888_p8 = scmp.ne.s32.totalorder %s6098_s4, %s7887_s25  ;;  %p7893_p10 = scmp.lt.s32.totalorder %s7887_s25, %s7887_s25 }
 0x4ee   :  { %5874 = vmatprep.subr.bf16.mxu0 %v7628_v35 }
 0x4ef   :  { %6735 = vmatpush3.bf16.msra.mxu1 %v7668_v29  ;;  %p7894_p11 = por %p7893_p10, %p7892_p9 }
 0x4f0   :  { %6736 = vmatprep.subr.bf16.mxu1 %v7669_v11 }
 0x4f1   :  { %5875 = vmatpush1.bf16.msra.mxu0 %v7626_v36  ;;  %p7895_p12 = pnand %p7894_p11, %p7888_p8 }
 0x4f2   :  { %5876 = vmatprep.subr.bf16.mxu0 %v7631_v1 }
 0x4f3   :  { %6737 = vmatpush3.bf16.msra.mxu1 %v7670_v55 }
 0x4f4   :  { %6738 = vmatprep.subr.bf16.mxu1 %v7671_v14 }
 0x4f5   :  { %5877 = vmatpush1.bf16.msra.mxu0 %v7629_v37 }
 0x4f6   :  { %5878 = vmatprep.subr.bf16.mxu0 %v7634_v38 }
 0x4f7   :  { %6739 = vmatpush3.bf16.msra.mxu1 %v7672_v5 }
 0x4f8   :  { %6740 = vmatprep.subr.bf16.mxu1 %v7673_v6 }
 0x4f9   :  { %5879 = vmatpush1.bf16.msra.mxu0 %v7632_v41 }
 0x4fa   :  { %5880 = vmatprep.subr.bf16.mxu0 %v7637_v50 }
 0x4fb   :  { %6741 = vmatpush3.bf16.msra.mxu1 %v7674_v7 }
 0x4fd   :  { %5881 = vmatpush2.bf16.msra.mxu0 %v7635_v58 }
 0x4fe   :  { %5882 = vmatprep.subr.bf16.mxu0 %v7640_v47 }
 0x501   :  { %5883 = vmatpush2.bf16.msra.mxu0 %v7638_v43 }
 0x502   :  { %5884 = vmatprep.subr.bf16.mxu0 %v7643_v61 }
 0x505   :  { %5885 = vmatpush2.bf16.msra.mxu0 %v7641_v53 }
 0x506   :  { %5886 = vmatprep.subr.bf16.mxu0 %v7646_v48 }
 0x509   :  { %5887 = vmatpush2.bf16.msra.mxu0 %v7644_v3 }
 0x50a   :  { %5888 = vmatprep.subr.bf16.mxu0 %v7649_v4 }
 0x50d   :  { %5889 = vmatpush2.bf16.msra.mxu0 %v7647_v57 }
 0x50e   :  { %5890 = vmatprep.subr.bf16.mxu0 %v7652_v45 }
 0x511   :  { %5891 = vmatpush2.bf16.msra.mxu0 %v7650_v39 }
 0x512   :  { %5892 = vmatprep.subr.bf16.mxu0 %v7655_v12 }
 0x515   :  { %5893 = vmatpush2.bf16.msra.mxu0 %v7653_v46 }
 0x516   :  { %5894 = vmatprep.subr.bf16.mxu0 %v7658_v8 }
 0x519   :  { %5895 = vmatpush2.bf16.msra.mxu0 %v7656_v59 }
 0x51c   :  { %v5652_v42 = vpop.f32.mrf.mxu0  ;;  %5897 = vmatmul.mubr.bf16.vlgmr.msra.gmra.mxu0 %v3794_v63  ;;  %v6708_v63 = vld [vmem:[#allocation21] ss:$0 sm:$0xff] }
 0x51d   :  { %v5653_v15 = vadd.f32 %v5652_v42, %v8399_v51 }
 0x51e   :  { %v5654_v10 = vpop.f32.mrf.mxu0  ;;  %v5693_v17 = vpop.f32.mrf.mxu1 }
 0x51f   :  { %v5655_v34 = vadd.f32 %v5654_v10, %v8401_v31  ;;  %v5694_v18 = vadd.f32 %v5693_v17, %v5653_v15 }
 0x520   :  { %v5656_v54 = vpop.f32.mrf.mxu0  ;;  %v5695_v27 = vpop.f32.mrf.mxu1 }
 0x521   :  { %v5696_v19 = vadd.f32 %v5695_v27, %v5655_v34 }
 0x522   :  { %v5657_v21 = vpop.f32.mrf.mxu0  ;;  %v5697_v22 = vpop.f32.mrf.mxu1 }
 0x524   :  { %v5698_v23 = vpop.f32.mrf.mxu1 }
 0x55c   :  { %v5734_v40 = vpop.f32.mrf.mxu0 }
 0x55d   :  { %v5735_v28 = vadd.f32 %v5734_v40, %v5694_v18 }
 0x55e   :  { %v5736_v2 = vpop.f32.mrf.mxu0  ;;  %v5775_v13 = vpop.f32.mrf.mxu1 }
 0x55f   :  { %v5737_v9 = vadd.f32 %v5736_v2, %v5696_v19  ;;  %v5776_v51 = vadd.f32 %v5775_v13, %v5735_v28 }
 0x560   :  { %v5738_v25 = vpop.f32.mrf.mxu0  ;;  %v5777_v56 = vpop.f32.mrf.mxu1 }
 0x561   :  { %v5778_v31 = vadd.f32 %v5777_v56, %v5737_v9 }
 0x562   :  { %v5739_v30 = vpop.f32.mrf.mxu0  ;;  %v5779_v62 = vpop.f32.mrf.mxu1 }
 0x564   :  { %v5780_v44 = vpop.f32.mrf.mxu1 }
 0x59c   :  { %v5816_v33 = vpop.f32.mrf.mxu0 }
 0x59d   :  { %v5817_v58 = vadd.f32 %v5816_v33, %v5776_v51 }
 0x59e   :  { %v5818_v35 = vpop.f32.mrf.mxu0  ;;  %v5857_v36 = vpop.f32.mrf.mxu1 }
 0x59f   :  { %v5819_v47 = vadd.f32 %v5818_v35, %v5778_v31  ;;  %v5858_v43 = vadd.f32 %v5857_v36, %v5817_v58 }
 0x5a0   :  { %v5820_v1 = vpop.f32.mrf.mxu0  ;;  %v5859_v37 = vpop.f32.mrf.mxu1 }
 0x5a1   :  { %v5860_v53 = vadd.f32 %v5859_v37, %v5819_v47 }
 0x5a2   :  { %v5821_v38 = vpop.f32.mrf.mxu0  ;;  %v5861_v41 = vpop.f32.mrf.mxu1 }
 0x5a4   :  { %v5862_v50 = vpop.f32.mrf.mxu1 }
 0x5dc   :  { %v5898_v61 = vpop.f32.mrf.mxu0 }
 0x5dd   :  { %v5899_v48 = vadd.f32 %v5898_v61, %v5858_v43 }
 0x5de   :  { %v5900_v3 = vpop.f32.mrf.mxu0 }
 0x5df   :  { %v5901_v4 = vadd.f32 %v5900_v3, %v5860_v53  ;;  %v5905_v57 = vmax.f32 %v5899_v48, 0.0 }
 0x5e0   :  { %v5902_v45 = vpop.f32.mrf.mxu0 }
 0x5e1   :  { %v5906_v39 = vmax.f32 %v5901_v4, 0.0  ;;  %v5907_v8 = vpack.c.bf16 %v5905_v57, %v5905_v57 }
 0x5e2   :  { %v5903_v12 = vpop.f32.mrf.mxu0 }
 0x5e3   :  { %v5908_v46 = vpack.c.bf16 %v5906_v39, %v5906_v39 }
 0x5e5   :  { %6076 = vmatprep.mubr.bf16.mxu1 %v5908_v46 }
 0x5e6   :  { %6077 = vmatmul.mubr.bf16.vlgmr.msra.gmra.mxu1 %v5907_v8 }
 0x6a6   :  { %v6742_v59 = vpop.f32.mrf.mxu1 }
 0x6a8   :  { %v6743_v42 = vpop.f32.mrf.mxu1 }
 0x6a9   :  { %v6744_v15 = vadd.f32 %v6743_v42, %v6742_v59 }
 0x6aa   :  { %v6745_v10 = vpop.f32.mrf.mxu1 }
 0x6ab   :  { %v6079_v17 = vadd.f32 %v6744_v15, %v6708_v63 }
 0x6ac   :  { %v6746_v34 = vpop.f32.mrf.mxu1 }
 0x6ad   :  { %v6725_v18 = vmul.f32 -1.442695, %v6079_v17 }
 0x6af   :  { %7683 = vpow2.f32 %v6725_v18 }
 0x6bc   :  { %v7684_v54 = vpop.eup %7683 }
 0x6bd   :  { %v6087_v27 = vadd.f32 1.0, %v7684_v54 }
 0x6bf   :  { %7685 = vrcp.f32 %v6087_v27 }
 0x6cc   :  { %v7686_v19 = vpop.eup %7685 }
 0x6cd   :  { %6090 = vst [vmem:[#allocation23] sm:$0x3] %v7686_v19 }
 0x6ce   :  { %7898 = shalt.err (!%p7895_p12)
}
 0x6cf   :  { %6100 = dma.vmem_to_hbm [thread:$0]  %s6098_s4, 32, %s8471_s13, [#allocation8]  }
 0x6d0   :  { %7919 = dma.done.wait [#allocation8], 32  }
 0x6d1   :  { %7920 = vsyncadd [#allocation8], 4294967264 }
 0x6d2   :  { %6104 = vsyncpa [#allocation7], 1 }
 0x6d3   :  { %6105 = vsyncpa [#allocation10], 1 }
 0x6d4   :  { %6106 = vsyncpa [#allocation13], 1 }
 0x6d5   :  { %6107 = vsyncpa [#allocation16], 1 }
 0x6d6   :  { %6108 = vsyncpa [#allocation19], 1 }
 0x6d7   :  { %6109 = vsyncpa [#allocation22], 1 }
 0x6d8   :  { %6110 = vsyncpa [#allocation8], 1 }

</bundles_post_ra>
